<compile_context>
chip_gen: v7x
topology: tpu7x:2x2x1
jax: 0.10.0
libtpu: 0.0.40
codegen_flags: <defaults>
</compile_context>

<pallas_src>
import functools

import jax
import jax.numpy as jnp
import numpy as np
from jax.experimental import pallas as pl
from jax.experimental.pallas import tpu as pltpu


def _cbam_kernel(x_ref, w1_ref, w2_ref, wm_ref, y_ref, *, W, K, HW_real):
    """CBAM forward for a block of `Bblk` images.

    x_ref : (Bblk, C, HWp)   VMEM input block (free NCHW reshape, lane-padded)
    w1_ref: (Cr, C)          VMEM mlp first 1x1 conv weight
    w2_ref: (C, Cr)          VMEM mlp second 1x1 conv weight
    wm_ref: (K*K, 2, HWp)    VMEM spatial conv weight x SAME/lane-pad mask per tap
    y_ref : (Bblk, C, HWp)   VMEM output block
    """
    Bblk, C, HWp = x_ref.shape
    pad = K // 2
    inv_hw = 1.0 / HW_real
    inv_c = 1.0 / C
    lane_pad = HWp != HW_real

    # ---- channel attention: per-image pooling, ONE batched MLP ----------------
    if lane_pad:
        lane_valid = jax.lax.broadcasted_iota(jnp.int32, (1, HWp), 1) < HW_real
    mx_list, av_list = [], []
    for b in range(Bblk):
        xb = x_ref[b].astype(jnp.float32)                       # (C, HWp)
        xb_m = jnp.where(lane_valid, xb, -jnp.inf) if lane_pad else xb
        mx_list.append(jnp.max(xb_m, axis=1, keepdims=True))    # (C, 1)
        av_list.append(jnp.sum(xb, axis=1, keepdims=True) * inv_hw)

    pooled_t = jnp.concatenate(mx_list + av_list, axis=1)       # (C, 2*Bblk)
    hid_t = jnp.maximum(
        jnp.dot(w1_ref[...], pooled_t,
                preferred_element_type=jnp.float32), 0.0)       # (Cr, 2*Bblk)
    out_t = jnp.dot(w2_ref[...], hid_t,
                    preferred_element_type=jnp.float32)         # (C, 2*Bblk)
    ch_att = jax.nn.sigmoid(out_t[:, :Bblk] + out_t[:, Bblk:])  # (C, Bblk)

    # ---- apply channel attention; per-image spatial max/mean maps -------------
    xc_list, smax_list, smean_list = [], [], []
    for b in range(Bblk):
        xb = x_ref[b].astype(jnp.float32)
        xcb = xb * ch_att[:, b:b + 1]                            # (C, HWp)
        xc_list.append(xcb)
        smax_list.append(jnp.max(xcb, axis=0, keepdims=True))    # (1, HWp)
        smean_list.append(jnp.sum(xcb, axis=0, keepdims=True) * inv_c)

    # Stacked [smax; smean] slab -> ONE roll per tap, batched over the block.
    s = jnp.concatenate(smax_list + smean_list, axis=0)          # (2*Bblk, HWp)

    acc_mx = jnp.zeros((Bblk, HWp), jnp.float32)
    acc_av = jnp.zeros((Bblk, HWp), jnp.float32)
    for di in range(K):
        for dj in range(K):
            t = di * K + dj
            off = (di - pad) * W + (dj - pad)
            sh = (-off) % HWp
            rs = pltpu.roll(s, sh, axis=1) if sh else s
            wt = wm_ref[t]                                       # (2, HWp), mask-fused
            acc_mx = acc_mx + wt[0:1, :] * rs[0:Bblk, :]
            acc_av = acc_av + wt[1:2, :] * rs[Bblk:2 * Bblk, :]

    sp_att = jax.nn.sigmoid(acc_mx + acc_av)                     # (Bblk, HWp)

    # ---- apply spatial attention; lane-dense stores ----------------------------
    for b in range(Bblk):
        y_ref[b] = (xc_list[b] * sp_att[b:b + 1, :]).astype(y_ref.dtype)


def _pick_block_batch(B, image_bytes_f32, vmem_capacity, max_images=64):
    """Images per grid step: as many as comfortably fit the VMEM budget (to
    amortize the ~0.35us per-grid-step overhead), preferring multiples of 8 so
    the stacked (2*Bblk, HW) spatial slab is sublane-aligned, and keeping >= 2
    grid steps when cheap so v7x's two TensorCores both get work."""
    budget = max(1, vmem_capacity // 3)
    max_imgs = min(max_images, max(1, budget // max(1, 10 * image_bytes_f32)))
    divisors = [d for d in range(1, B + 1) if B % d == 0 and d <= max_imgs]
    bblk = max(divisors) if divisors else 1
    mult8 = [d for d in divisors if d % 8 == 0]
    if mult8 and 2 * max(mult8) >= bblk:
        bblk = max(mult8)
    if bblk == B and B > 1:                      # leave >= 2 steps when cheap
        smaller = [d for d in divisors if d < bblk]
        if smaller and (max(smaller) >= 8 or 2 * max(smaller) >= B):
            bblk = max(smaller)
    return bblk


def cbam_pallas(x_nchw, W1, W2, Wc, *, block_batch=None):
    """x_nchw: (B, C, H, W); W1: (Cr, C); W2: (C, Cr); Wc: (1, 2, K, K) OIHW."""
    B, C, H, W = x_nchw.shape
    HW = H * W
    HWp = -(-HW // 128) * 128              # lane-dense padding to a 128 multiple
    Cr = W1.shape[0]
    K = Wc.shape[-1]
    pad = K // 2
    n_taps = K * K

    # Free reshape (no transpose): channels -> sublanes, H*W -> lanes; zero-pad
    # the flattened spatial axis so rolls/stores stay unmasked and lane-dense.
    x_k = x_nchw.reshape(B, C, HW)
    if HWp != HW:
        x_k = jnp.pad(x_k, ((0, 0), (0, 0), (0, HWp - HW)))

    # Static SAME-padding (+ lane-padding) validity masks, fused with the spatial
    # conv weights so the in-kernel tap loop is pure roll + FMA.
    r = np.arange(HW, dtype=np.int64) // W
    c = np.arange(HW, dtype=np.int64) % W
    masks = np.zeros((n_taps, 1, HWp), np.float32)
    for di in range(K):
        for dj in range(K):
            valid = ((r + di - pad >= 0) & (r + di - pad < H) &
                     (c + dj - pad >= 0) & (c + dj - pad < W))
            masks[di * K + dj, 0, :HW] = valid.astype(np.float32)
    w_taps = Wc.astype(jnp.float32).reshape(2, n_taps).T        # (n_taps, 2)
    wm = w_taps[:, :, None] * jnp.asarray(masks)                # (n_taps, 2, HWp)

    try:
        vmem_capacity = int(pltpu.get_tpu_info().vmem_capacity_bytes)
    except Exception:                        # generation-agnostic safe fallback
        vmem_capacity = 64 * 1024 * 1024     # v7x per-TC lower bound

    image_bytes_f32 = C * HWp * 4
    bblk = (_pick_block_batch(B, image_bytes_f32, vmem_capacity)
            if block_batch is None else block_batch)
    assert B % bblk == 0
    grid = (B // bblk,)

    wm_bytes = n_taps * 2 * HWp * 4
    vmem_limit = int(min(vmem_capacity * 9 // 10,
                         max(32 << 20,
                             10 * bblk * image_bytes_f32 + 2 * wm_bytes + (8 << 20))))

    kernel = functools.partial(_cbam_kernel, W=W, K=K, HW_real=HW)

    y_k = pl.pallas_call(
        kernel,
        out_shape=jax.ShapeDtypeStruct((B, C, HWp), x_nchw.dtype),
        grid=grid,
        in_specs=[
            pl.BlockSpec((bblk, C, HWp), lambda b: (b, 0, 0)),
            pl.BlockSpec((Cr, C), lambda b: (0, 0)),
            pl.BlockSpec((C, Cr), lambda b: (0, 0)),
            pl.BlockSpec((n_taps, 2, HWp), lambda b: (0, 0, 0)),
        ],
        out_specs=pl.BlockSpec((bblk, C, HWp), lambda b: (b, 0, 0)),
        compiler_params=pltpu.CompilerParams(
            dimension_semantics=("parallel",),
            vmem_limit_bytes=vmem_limit),
    )(x_k, W1.astype(jnp.float32), W2.astype(jnp.float32), wm)

    if HWp != HW:
        y_k = y_k[:, :, :HW]
    return y_k.reshape(B, C, H, W)


def cbam_reference(x, W1, W2, Wc):
    """Pure-JAX reference matching the PyTorch CBAMLayer forward (NCHW)."""
    mx = jnp.max(x, axis=(2, 3))    # (B, C)
    av = jnp.mean(x, axis=(2, 3))   # (B, C)

    def mlp(p):
        h = jnp.maximum(p @ W1.T, 0.0)   # (B, Cr)
        return h @ W2.T                  # (B, C)

    ch_att = jax.nn.sigmoid(mlp(mx) + mlp(av))       # (B, C)
    xc = x * ch_att[:, :, None, None]
    smax = jnp.max(xc, axis=1, keepdims=True)
    smean = jnp.mean(xc, axis=1, keepdims=True)
    sp_in = jnp.concatenate([smax, smean], axis=1)   # (B, 2, H, W)
    conv = jax.lax.conv_general_dilated(
        sp_in, Wc, window_strides=(1, 1), padding="SAME",
        dimension_numbers=("NCHW", "OIHW", "NCHW"))
    return jax.nn.sigmoid(conv) * xc


if __name__ == "__main__":
    def run_case(key, B, C, H, W, reduction=16, spatial_kernel=7):
        Cr = max(1, C // reduction)
        kx, k1, k2, k3 = jax.random.split(key, 4)
        x = jax.random.normal(kx, (B, C, H, W), jnp.float32)
        # deterministic synthetic params (same shapes as the nn.Module's weights)
        W1 = jax.random.normal(k1, (Cr, C), jnp.float32) * 0.2   # Conv2d(C, Cr, 1).weight[..., 0, 0]
        W2 = jax.random.normal(k2, (C, Cr), jnp.float32) * 0.2   # Conv2d(Cr, C, 1).weight[..., 0, 0]
        Wc = jax.random.normal(k3, (1, 2, spatial_kernel, spatial_kernel),
                               jnp.float32) * 0.1
        y = jax.block_until_ready(cbam_pallas(x, W1, W2, Wc))
        y_ref = cbam_reference(x, W1, W2, Wc)
        np.testing.assert_allclose(np.asarray(y), np.asarray(y_ref),
                                   atol=2e-4, rtol=2e-4)

    key = jax.random.PRNGKey(0)
    k_a, k_b = jax.random.split(key)
    # batched-block path (block_batch=2 per grid step), lane-dense 16x16 map
    run_case(k_a, B=4, C=32, H=16, W=16)
    # non-128-multiple feature map (10x10 = 100 -> lane-padded to 128)
    run_case(k_b, B=2, C=32, H=10, W=10)
    print("KERNEL_OK")
</pallas_src>

<mosaic_0001>
module attributes {stable_mosaic.version = 11 : i64} {
  func.func @_cbam_kernel(%arg0: i32, %arg1: memref<2x32x256xf32, #tpu.memory_space<vmem>>, %arg2: memref<2x32xf32, #tpu.memory_space<vmem>>, %arg3: memref<32x2xf32, #tpu.memory_space<vmem>>, %arg4: memref<49x2x256xf32, #tpu.memory_space<vmem>>, %arg5: memref<2x32x256xf32, #tpu.memory_space<vmem>>) attributes {dimension_semantics = [#tpu.dimension_semantics<parallel>], iteration_bounds = array<i64: 2>, scalar_prefetch = 0 : i64, scratch_operands = 0 : i64, tpu.core_type = #tpu.core_type<tc>, window_params = [{transform_indices = @transform_0, window_bounds = array<i64: 2, 32, 256>}, {pipeline_mode = #tpu.pipeline_mode<synchronous>, transform_indices = @transform_1, window_bounds = array<i64: 2, 32>}, {pipeline_mode = #tpu.pipeline_mode<synchronous>, transform_indices = @transform_2, window_bounds = array<i64: 32, 2>}, {pipeline_mode = #tpu.pipeline_mode<synchronous>, transform_indices = @transform_3, window_bounds = array<i64: 49, 2, 256>}, {transform_indices = @transform_4, window_bounds = array<i64: 2, 32, 256>}]} {
    %c0 = arith.constant 0 : index
    %c0_0 = arith.constant 0 : index
    %c0_1 = arith.constant 0 : index
    %0 = vector.load %arg1[%c0, %c0_0, %c0_1] : memref<2x32x256xf32, #tpu.memory_space<vmem>>, vector<1x32x256xf32>
    %1 = vector.shape_cast %0 : vector<1x32x256xf32> to vector<32x256xf32>
    %cst = arith.constant dense<0xFF800000> : vector<32xf32>
    %2 = vector.multi_reduction <maximumf>, %1, %cst [1] : vector<32x256xf32> to vector<32xf32>
    %3 = vector.shape_cast %2 : vector<32xf32> to vector<32x1xf32>
    %cst_2 = arith.constant dense<0.000000e+00> : vector<32xf32>
    %4 = vector.multi_reduction <add>, %1, %cst_2 [1] : vector<32x256xf32> to vector<32xf32>
    %5 = vector.shape_cast %4 : vector<32xf32> to vector<32x1xf32>
    %cst_3 = arith.constant 3.906250e-03 : f32
    %6 = vector.broadcast %cst_3 : f32 to vector<32x1xf32>
    %7 = arith.mulf %5, %6 : vector<32x1xf32>
    %c1 = arith.constant 1 : index
    %c0_4 = arith.constant 0 : index
    %c0_5 = arith.constant 0 : index
    %8 = vector.load %arg1[%c1, %c0_4, %c0_5] : memref<2x32x256xf32, #tpu.memory_space<vmem>>, vector<1x32x256xf32>
    %9 = vector.shape_cast %8 : vector<1x32x256xf32> to vector<32x256xf32>
    %cst_6 = arith.constant dense<0xFF800000> : vector<32xf32>
    %10 = vector.multi_reduction <maximumf>, %9, %cst_6 [1] : vector<32x256xf32> to vector<32xf32>
    %11 = vector.shape_cast %10 : vector<32xf32> to vector<32x1xf32>
    %cst_7 = arith.constant dense<0.000000e+00> : vector<32xf32>
    %12 = vector.multi_reduction <add>, %9, %cst_7 [1] : vector<32x256xf32> to vector<32xf32>
    %13 = vector.shape_cast %12 : vector<32xf32> to vector<32x1xf32>
    %cst_8 = arith.constant 3.906250e-03 : f32
    %14 = vector.broadcast %cst_8 : f32 to vector<32x1xf32>
    %15 = arith.mulf %13, %14 : vector<32x1xf32>
    %16 = tpu.concatenate %3, %11, %7, %15 in 1 : vector<32x1xf32>, vector<32x1xf32>, vector<32x1xf32>, vector<32x1xf32> -> vector<32x4xf32>
    %c0_9 = arith.constant 0 : index
    %c0_10 = arith.constant 0 : index
    %17 = vector.load %arg2[%c0_9, %c0_10] : memref<2x32xf32, #tpu.memory_space<vmem>>, vector<2x32xf32>
    %cst_11 = arith.constant dense<0.000000e+00> : vector<2x4xf32>
    %18 = tpu.matmul %17, %16, %cst_11 {dimension_numbers = #tpu.dot_dimension_numbers<[1], [0], [0], [1], [0, 0, 1, 1], [], []>} : vector<2x32xf32>, vector<32x4xf32>, vector<2x4xf32> -> vector<2x4xf32>
    %cst_12 = arith.constant 0.000000e+00 : f32
    %19 = vector.broadcast %cst_12 : f32 to vector<2x4xf32>
    %20 = arith.maximumf %18, %19 : vector<2x4xf32>
    %c0_13 = arith.constant 0 : index
    %c0_14 = arith.constant 0 : index
    %21 = vector.load %arg3[%c0_13, %c0_14] : memref<32x2xf32, #tpu.memory_space<vmem>>, vector<32x2xf32>
    %cst_15 = arith.constant dense<0.000000e+00> : vector<32x4xf32>
    %22 = tpu.matmul %21, %20, %cst_15 {dimension_numbers = #tpu.dot_dimension_numbers<[1], [0], [0], [1], [0, 0, 1, 1], [], []>} : vector<32x2xf32>, vector<2x4xf32>, vector<32x4xf32> -> vector<32x4xf32>
    %23 = vector.extract_strided_slice %22 {offsets = [0, 0], sizes = [32, 2], strides = [1, 1]} : vector<32x4xf32> to vector<32x2xf32>
    %24 = vector.extract_strided_slice %22 {offsets = [0, 2], sizes = [32, 2], strides = [1, 1]} : vector<32x4xf32> to vector<32x2xf32>
    %25 = arith.addf %23, %24 : vector<32x2xf32>
    %26 = arith.negf %25 : vector<32x2xf32>
    %27 = math.exp %26 : vector<32x2xf32>
    %cst_16 = arith.constant 1.000000e+00 : f32
    %28 = vector.broadcast %cst_16 : f32 to vector<32x2xf32>
    %29 = arith.addf %28, %27 : vector<32x2xf32>
    %30 = arith.divf %28, %29 : vector<32x2xf32>
    %c0_17 = arith.constant 0 : index
    %c0_18 = arith.constant 0 : index
    %c0_19 = arith.constant 0 : index
    %31 = vector.load %arg1[%c0_17, %c0_18, %c0_19] : memref<2x32x256xf32, #tpu.memory_space<vmem>>, vector<1x32x256xf32>
    %32 = vector.shape_cast %31 : vector<1x32x256xf32> to vector<32x256xf32>
    %33 = vector.extract_strided_slice %30 {offsets = [0, 0], sizes = [32, 1], strides = [1, 1]} : vector<32x2xf32> to vector<32x1xf32>
    %34 = vector.broadcast %33 : vector<32x1xf32> to vector<32x256xf32>
    %35 = arith.mulf %32, %34 : vector<32x256xf32>
    %cst_20 = arith.constant dense<0xFF800000> : vector<256xf32>
    %36 = vector.multi_reduction <maximumf>, %35, %cst_20 [0] : vector<32x256xf32> to vector<256xf32>
    %37 = vector.shape_cast %36 : vector<256xf32> to vector<1x256xf32>
    %cst_21 = arith.constant dense<0.000000e+00> : vector<256xf32>
    %38 = vector.multi_reduction <add>, %35, %cst_21 [0] : vector<32x256xf32> to vector<256xf32>
    %39 = vector.shape_cast %38 : vector<256xf32> to vector<1x256xf32>
    %cst_22 = arith.constant 3.125000e-02 : f32
    %40 = vector.broadcast %cst_22 : f32 to vector<1x256xf32>
    %41 = arith.mulf %39, %40 : vector<1x256xf32>
    %c1_23 = arith.constant 1 : index
    %c0_24 = arith.constant 0 : index
    %c0_25 = arith.constant 0 : index
    %42 = vector.load %arg1[%c1_23, %c0_24, %c0_25] : memref<2x32x256xf32, #tpu.memory_space<vmem>>, vector<1x32x256xf32>
    %43 = vector.shape_cast %42 : vector<1x32x256xf32> to vector<32x256xf32>
    %44 = vector.extract_strided_slice %30 {offsets = [0, 1], sizes = [32, 1], strides = [1, 1]} : vector<32x2xf32> to vector<32x1xf32>
    %45 = vector.broadcast %44 : vector<32x1xf32> to vector<32x256xf32>
    %46 = arith.mulf %43, %45 : vector<32x256xf32>
    %cst_26 = arith.constant dense<0xFF800000> : vector<256xf32>
    %47 = vector.multi_reduction <maximumf>, %46, %cst_26 [0] : vector<32x256xf32> to vector<256xf32>
    %48 = vector.shape_cast %47 : vector<256xf32> to vector<1x256xf32>
    %cst_27 = arith.constant dense<0.000000e+00> : vector<256xf32>
    %49 = vector.multi_reduction <add>, %46, %cst_27 [0] : vector<32x256xf32> to vector<256xf32>
    %50 = vector.shape_cast %49 : vector<256xf32> to vector<1x256xf32>
    %cst_28 = arith.constant 3.125000e-02 : f32
    %51 = vector.broadcast %cst_28 : f32 to vector<1x256xf32>
    %52 = arith.mulf %50, %51 : vector<1x256xf32>
    %53 = tpu.concatenate %37, %48, %41, %52 in 0 : vector<1x256xf32>, vector<1x256xf32>, vector<1x256xf32>, vector<1x256xf32> -> vector<4x256xf32>
    %cst_29 = arith.constant 0.000000e+00 : f32
    %54 = vector.broadcast %cst_29 : f32 to vector<2x256xf32>
    %cst_30 = arith.constant 0.000000e+00 : f32
    %55 = vector.broadcast %cst_30 : f32 to vector<2x256xf32>
    %c51_i32 = arith.constant 51 : i32
    %56 = tpu.dynamic_rotate %53 by %c51_i32 dim 1 : vector<4x256xf32>, i32 -> vector<4x256xf32>
    %c0_31 = arith.constant 0 : index
    %c0_32 = arith.constant 0 : index
    %c0_33 = arith.constant 0 : index
    %57 = vector.load %arg4[%c0_31, %c0_32, %c0_33] : memref<49x2x256xf32, #tpu.memory_space<vmem>>, vector<1x2x256xf32>
    %58 = vector.shape_cast %57 : vector<1x2x256xf32> to vector<2x256xf32>
    %59 = vector.extract_strided_slice %58 {offsets = [0, 0], sizes = [1, 256], strides = [1, 1]} : vector<2x256xf32> to vector<1x256xf32>
    %60 = vector.extract_strided_slice %56 {offsets = [0, 0], sizes = [2, 256], strides = [1, 1]} : vector<4x256xf32> to vector<2x256xf32>
    %61 = vector.broadcast %59 : vector<1x256xf32> to vector<2x256xf32>
    %62 = arith.mulf %61, %60 : vector<2x256xf32>
    %63 = arith.addf %54, %62 : vector<2x256xf32>
    %64 = vector.extract_strided_slice %58 {offsets = [1, 0], sizes = [1, 256], strides = [1, 1]} : vector<2x256xf32> to vector<1x256xf32>
    %65 = vector.extract_strided_slice %56 {offsets = [2, 0], sizes = [2, 256], strides = [1, 1]} : vector<4x256xf32> to vector<2x256xf32>
    %66 = vector.broadcast %64 : vector<1x256xf32> to vector<2x256xf32>
    %67 = arith.mulf %66, %65 : vector<2x256xf32>
    %68 = arith.addf %55, %67 : vector<2x256xf32>
    %c50_i32 = arith.constant 50 : i32
    %69 = tpu.dynamic_rotate %53 by %c50_i32 dim 1 : vector<4x256xf32>, i32 -> vector<4x256xf32>
    %c1_34 = arith.constant 1 : index
    %c0_35 = arith.constant 0 : index
    %c0_36 = arith.constant 0 : index
    %70 = vector.load %arg4[%c1_34, %c0_35, %c0_36] : memref<49x2x256xf32, #tpu.memory_space<vmem>>, vector<1x2x256xf32>
    %71 = vector.shape_cast %70 : vector<1x2x256xf32> to vector<2x256xf32>
    %72 = vector.extract_strided_slice %71 {offsets = [0, 0], sizes = [1, 256], strides = [1, 1]} : vector<2x256xf32> to vector<1x256xf32>
    %73 = vector.extract_strided_slice %69 {offsets = [0, 0], sizes = [2, 256], strides = [1, 1]} : vector<4x256xf32> to vector<2x256xf32>
    %74 = vector.broadcast %72 : vector<1x256xf32> to vector<2x256xf32>
    %75 = arith.mulf %74, %73 : vector<2x256xf32>
    %76 = arith.addf %63, %75 : vector<2x256xf32>
    %77 = vector.extract_strided_slice %71 {offsets = [1, 0], sizes = [1, 256], strides = [1, 1]} : vector<2x256xf32> to vector<1x256xf32>
    %78 = vector.extract_strided_slice %69 {offsets = [2, 0], sizes = [2, 256], strides = [1, 1]} : vector<4x256xf32> to vector<2x256xf32>
    %79 = vector.broadcast %77 : vector<1x256xf32> to vector<2x256xf32>
    %80 = arith.mulf %79, %78 : vector<2x256xf32>
    %81 = arith.addf %68, %80 : vector<2x256xf32>
    %c49_i32 = arith.constant 49 : i32
    %82 = tpu.dynamic_rotate %53 by %c49_i32 dim 1 : vector<4x256xf32>, i32 -> vector<4x256xf32>
    %c2 = arith.constant 2 : index
    %c0_37 = arith.constant 0 : index
    %c0_38 = arith.constant 0 : index
    %83 = vector.load %arg4[%c2, %c0_37, %c0_38] : memref<49x2x256xf32, #tpu.memory_space<vmem>>, vector<1x2x256xf32>
    %84 = vector.shape_cast %83 : vector<1x2x256xf32> to vector<2x256xf32>
    %85 = vector.extract_strided_slice %84 {offsets = [0, 0], sizes = [1, 256], strides = [1, 1]} : vector<2x256xf32> to vector<1x256xf32>
    %86 = vector.extract_strided_slice %82 {offsets = [0, 0], sizes = [2, 256], strides = [1, 1]} : vector<4x256xf32> to vector<2x256xf32>
    %87 = vector.broadcast %85 : vector<1x256xf32> to vector<2x256xf32>
    %88 = arith.mulf %87, %86 : vector<2x256xf32>
    %89 = arith.addf %76, %88 : vector<2x256xf32>
    %90 = vector.extract_strided_slice %84 {offsets = [1, 0], sizes = [1, 256], strides = [1, 1]} : vector<2x256xf32> to vector<1x256xf32>
    %91 = vector.extract_strided_slice %82 {offsets = [2, 0], sizes = [2, 256], strides = [1, 1]} : vector<4x256xf32> to vector<2x256xf32>
    %92 = vector.broadcast %90 : vector<1x256xf32> to vector<2x256xf32>
    %93 = arith.mulf %92, %91 : vector<2x256xf32>
    %94 = arith.addf %81, %93 : vector<2x256xf32>
    %c48_i32 = arith.constant 48 : i32
    %95 = tpu.dynamic_rotate %53 by %c48_i32 dim 1 : vector<4x256xf32>, i32 -> vector<4x256xf32>
    %c3 = arith.constant 3 : index
    %c0_39 = arith.constant 0 : index
    %c0_40 = arith.constant 0 : index
    %96 = vector.load %arg4[%c3, %c0_39, %c0_40] : memref<49x2x256xf32, #tpu.memory_space<vmem>>, vector<1x2x256xf32>
    %97 = vector.shape_cast %96 : vector<1x2x256xf32> to vector<2x256xf32>
    %98 = vector.extract_strided_slice %97 {offsets = [0, 0], sizes = [1, 256], strides = [1, 1]} : vector<2x256xf32> to vector<1x256xf32>
    %99 = vector.extract_strided_slice %95 {offsets = [0, 0], sizes = [2, 256], strides = [1, 1]} : vector<4x256xf32> to vector<2x256xf32>
    %100 = vector.broadcast %98 : vector<1x256xf32> to vector<2x256xf32>
    %101 = arith.mulf %100, %99 : vector<2x256xf32>
    %102 = arith.addf %89, %101 : vector<2x256xf32>
    %103 = vector.extract_strided_slice %97 {offsets = [1, 0], sizes = [1, 256], strides = [1, 1]} : vector<2x256xf32> to vector<1x256xf32>
    %104 = vector.extract_strided_slice %95 {offsets = [2, 0], sizes = [2, 256], strides = [1, 1]} : vector<4x256xf32> to vector<2x256xf32>
    %105 = vector.broadcast %103 : vector<1x256xf32> to vector<2x256xf32>
    %106 = arith.mulf %105, %104 : vector<2x256xf32>
    %107 = arith.addf %94, %106 : vector<2x256xf32>
    %c47_i32 = arith.constant 47 : i32
    %108 = tpu.dynamic_rotate %53 by %c47_i32 dim 1 : vector<4x256xf32>, i32 -> vector<4x256xf32>
    %c4 = arith.constant 4 : index
    %c0_41 = arith.constant 0 : index
    %c0_42 = arith.constant 0 : index
    %109 = vector.load %arg4[%c4, %c0_41, %c0_42] : memref<49x2x256xf32, #tpu.memory_space<vmem>>, vector<1x2x256xf32>
    %110 = vector.shape_cast %109 : vector<1x2x256xf32> to vector<2x256xf32>
    %111 = vector.extract_strided_slice %110 {offsets = [0, 0], sizes = [1, 256], strides = [1, 1]} : vector<2x256xf32> to vector<1x256xf32>
    %112 = vector.extract_strided_slice %108 {offsets = [0, 0], sizes = [2, 256], strides = [1, 1]} : vector<4x256xf32> to vector<2x256xf32>
    %113 = vector.broadcast %111 : vector<1x256xf32> to vector<2x256xf32>
    %114 = arith.mulf %113, %112 : vector<2x256xf32>
    %115 = arith.addf %102, %114 : vector<2x256xf32>
    %116 = vector.extract_strided_slice %110 {offsets = [1, 0], sizes = [1, 256], strides = [1, 1]} : vector<2x256xf32> to vector<1x256xf32>
    %117 = vector.extract_strided_slice %108 {offsets = [2, 0], sizes = [2, 256], strides = [1, 1]} : vector<4x256xf32> to vector<2x256xf32>
    %118 = vector.broadcast %116 : vector<1x256xf32> to vector<2x256xf32>
    %119 = arith.mulf %118, %117 : vector<2x256xf32>
    %120 = arith.addf %107, %119 : vector<2x256xf32>
    %c46_i32 = arith.constant 46 : i32
    %121 = tpu.dynamic_rotate %53 by %c46_i32 dim 1 : vector<4x256xf32>, i32 -> vector<4x256xf32>
    %c5 = arith.constant 5 : index
    %c0_43 = arith.constant 0 : index
    %c0_44 = arith.constant 0 : index
    %122 = vector.load %arg4[%c5, %c0_43, %c0_44] : memref<49x2x256xf32, #tpu.memory_space<vmem>>, vector<1x2x256xf32>
    %123 = vector.shape_cast %122 : vector<1x2x256xf32> to vector<2x256xf32>
    %124 = vector.extract_strided_slice %123 {offsets = [0, 0], sizes = [1, 256], strides = [1, 1]} : vector<2x256xf32> to vector<1x256xf32>
    %125 = vector.extract_strided_slice %121 {offsets = [0, 0], sizes = [2, 256], strides = [1, 1]} : vector<4x256xf32> to vector<2x256xf32>
    %126 = vector.broadcast %124 : vector<1x256xf32> to vector<2x256xf32>
    %127 = arith.mulf %126, %125 : vector<2x256xf32>
    %128 = arith.addf %115, %127 : vector<2x256xf32>
    %129 = vector.extract_strided_slice %123 {offsets = [1, 0], sizes = [1, 256], strides = [1, 1]} : vector<2x256xf32> to vector<1x256xf32>
    %130 = vector.extract_strided_slice %121 {offsets = [2, 0], sizes = [2, 256], strides = [1, 1]} : vector<4x256xf32> to vector<2x256xf32>
    %131 = vector.broadcast %129 : vector<1x256xf32> to vector<2x256xf32>
    %132 = arith.mulf %131, %130 : vector<2x256xf32>
    %133 = arith.addf %120, %132 : vector<2x256xf32>
    %c45_i32 = arith.constant 45 : i32
    %134 = tpu.dynamic_rotate %53 by %c45_i32 dim 1 : vector<4x256xf32>, i32 -> vector<4x256xf32>
    %c6 = arith.constant 6 : index
    %c0_45 = arith.constant 0 : index
    %c0_46 = arith.constant 0 : index
    %135 = vector.load %arg4[%c6, %c0_45, %c0_46] : memref<49x2x256xf32, #tpu.memory_space<vmem>>, vector<1x2x256xf32>
    %136 = vector.shape_cast %135 : vector<1x2x256xf32> to vector<2x256xf32>
    %137 = vector.extract_strided_slice %136 {offsets = [0, 0], sizes = [1, 256], strides = [1, 1]} : vector<2x256xf32> to vector<1x256xf32>
    %138 = vector.extract_strided_slice %134 {offsets = [0, 0], sizes = [2, 256], strides = [1, 1]} : vector<4x256xf32> to vector<2x256xf32>
    %139 = vector.broadcast %137 : vector<1x256xf32> to vector<2x256xf32>
    %140 = arith.mulf %139, %138 : vector<2x256xf32>
    %141 = arith.addf %128, %140 : vector<2x256xf32>
    %142 = vector.extract_strided_slice %136 {offsets = [1, 0], sizes = [1, 256], strides = [1, 1]} : vector<2x256xf32> to vector<1x256xf32>
    %143 = vector.extract_strided_slice %134 {offsets = [2, 0], sizes = [2, 256], strides = [1, 1]} : vector<4x256xf32> to vector<2x256xf32>
    %144 = vector.broadcast %142 : vector<1x256xf32> to vector<2x256xf32>
    %145 = arith.mulf %144, %143 : vector<2x256xf32>
    %146 = arith.addf %133, %145 : vector<2x256xf32>
    %c35_i32 = arith.constant 35 : i32
    %147 = tpu.dynamic_rotate %53 by %c35_i32 dim 1 : vector<4x256xf32>, i32 -> vector<4x256xf32>
    %c7 = arith.constant 7 : index
    %c0_47 = arith.constant 0 : index
    %c0_48 = arith.constant 0 : index
    %148 = vector.load %arg4[%c7, %c0_47, %c0_48] : memref<49x2x256xf32, #tpu.memory_space<vmem>>, vector<1x2x256xf32>
    %149 = vector.shape_cast %148 : vector<1x2x256xf32> to vector<2x256xf32>
    %150 = vector.extract_strided_slice %149 {offsets = [0, 0], sizes = [1, 256], strides = [1, 1]} : vector<2x256xf32> to vector<1x256xf32>
    %151 = vector.extract_strided_slice %147 {offsets = [0, 0], sizes = [2, 256], strides = [1, 1]} : vector<4x256xf32> to vector<2x256xf32>
    %152 = vector.broadcast %150 : vector<1x256xf32> to vector<2x256xf32>
    %153 = arith.mulf %152, %151 : vector<2x256xf32>
    %154 = arith.addf %141, %153 : vector<2x256xf32>
    %155 = vector.extract_strided_slice %149 {offsets = [1, 0], sizes = [1, 256], strides = [1, 1]} : vector<2x256xf32> to vector<1x256xf32>
    %156 = vector.extract_strided_slice %147 {offsets = [2, 0], sizes = [2, 256], strides = [1, 1]} : vector<4x256xf32> to vector<2x256xf32>
    %157 = vector.broadcast %155 : vector<1x256xf32> to vector<2x256xf32>
    %158 = arith.mulf %157, %156 : vector<2x256xf32>
    %159 = arith.addf %146, %158 : vector<2x256xf32>
    %c34_i32 = arith.constant 34 : i32
    %160 = tpu.dynamic_rotate %53 by %c34_i32 dim 1 : vector<4x256xf32>, i32 -> vector<4x256xf32>
    %c8 = arith.constant 8 : index
    %c0_49 = arith.constant 0 : index
    %c0_50 = arith.constant 0 : index
    %161 = vector.load %arg4[%c8, %c0_49, %c0_50] : memref<49x2x256xf32, #tpu.memory_space<vmem>>, vector<1x2x256xf32>
    %162 = vector.shape_cast %161 : vector<1x2x256xf32> to vector<2x256xf32>
    %163 = vector.extract_strided_slice %162 {offsets = [0, 0], sizes = [1, 256], strides = [1, 1]} : vector<2x256xf32> to vector<1x256xf32>
    %164 = vector.extract_strided_slice %160 {offsets = [0, 0], sizes = [2, 256], strides = [1, 1]} : vector<4x256xf32> to vector<2x256xf32>
    %165 = vector.broadcast %163 : vector<1x256xf32> to vector<2x256xf32>
    %166 = arith.mulf %165, %164 : vector<2x256xf32>
    %167 = arith.addf %154, %166 : vector<2x256xf32>
    %168 = vector.extract_strided_slice %162 {offsets = [1, 0], sizes = [1, 256], strides = [1, 1]} : vector<2x256xf32> to vector<1x256xf32>
    %169 = vector.extract_strided_slice %160 {offsets = [2, 0], sizes = [2, 256], strides = [1, 1]} : vector<4x256xf32> to vector<2x256xf32>
    %170 = vector.broadcast %168 : vector<1x256xf32> to vector<2x256xf32>
    %171 = arith.mulf %170, %169 : vector<2x256xf32>
    %172 = arith.addf %159, %171 : vector<2x256xf32>
    %c33_i32 = arith.constant 33 : i32
    %173 = tpu.dynamic_rotate %53 by %c33_i32 dim 1 : vector<4x256xf32>, i32 -> vector<4x256xf32>
    %c9 = arith.constant 9 : index
    %c0_51 = arith.constant 0 : index
    %c0_52 = arith.constant 0 : index
    %174 = vector.load %arg4[%c9, %c0_51, %c0_52] : memref<49x2x256xf32, #tpu.memory_space<vmem>>, vector<1x2x256xf32>
    %175 = vector.shape_cast %174 : vector<1x2x256xf32> to vector<2x256xf32>
    %176 = vector.extract_strided_slice %175 {offsets = [0, 0], sizes = [1, 256], strides = [1, 1]} : vector<2x256xf32> to vector<1x256xf32>
    %177 = vector.extract_strided_slice %173 {offsets = [0, 0], sizes = [2, 256], strides = [1, 1]} : vector<4x256xf32> to vector<2x256xf32>
    %178 = vector.broadcast %176 : vector<1x256xf32> to vector<2x256xf32>
    %179 = arith.mulf %178, %177 : vector<2x256xf32>
    %180 = arith.addf %167, %179 : vector<2x256xf32>
    %181 = vector.extract_strided_slice %175 {offsets = [1, 0], sizes = [1, 256], strides = [1, 1]} : vector<2x256xf32> to vector<1x256xf32>
    %182 = vector.extract_strided_slice %173 {offsets = [2, 0], sizes = [2, 256], strides = [1, 1]} : vector<4x256xf32> to vector<2x256xf32>
    %183 = vector.broadcast %181 : vector<1x256xf32> to vector<2x256xf32>
    %184 = arith.mulf %183, %182 : vector<2x256xf32>
    %185 = arith.addf %172, %184 : vector<2x256xf32>
    %c32_i32 = arith.constant 32 : i32
    %186 = tpu.dynamic_rotate %53 by %c32_i32 dim 1 : vector<4x256xf32>, i32 -> vector<4x256xf32>
    %c10 = arith.constant 10 : index
    %c0_53 = arith.constant 0 : index
    %c0_54 = arith.constant 0 : index
    %187 = vector.load %arg4[%c10, %c0_53, %c0_54] : memref<49x2x256xf32, #tpu.memory_space<vmem>>, vector<1x2x256xf32>
    %188 = vector.shape_cast %187 : vector<1x2x256xf32> to vector<2x256xf32>
    %189 = vector.extract_strided_slice %188 {offsets = [0, 0], sizes = [1, 256], strides = [1, 1]} : vector<2x256xf32> to vector<1x256xf32>
    %190 = vector.extract_strided_slice %186 {offsets = [0, 0], sizes = [2, 256], strides = [1, 1]} : vector<4x256xf32> to vector<2x256xf32>
    %191 = vector.broadcast %189 : vector<1x256xf32> to vector<2x256xf32>
    %192 = arith.mulf %191, %190 : vector<2x256xf32>
    %193 = arith.addf %180, %192 : vector<2x256xf32>
    %194 = vector.extract_strided_slice %188 {offsets = [1, 0], sizes = [1, 256], strides = [1, 1]} : vector<2x256xf32> to vector<1x256xf32>
    %195 = vector.extract_strided_slice %186 {offsets = [2, 0], sizes = [2, 256], strides = [1, 1]} : vector<4x256xf32> to vector<2x256xf32>
    %196 = vector.broadcast %194 : vector<1x256xf32> to vector<2x256xf32>
    %197 = arith.mulf %196, %195 : vector<2x256xf32>
    %198 = arith.addf %185, %197 : vector<2x256xf32>
    %c31_i32 = arith.constant 31 : i32
    %199 = tpu.dynamic_rotate %53 by %c31_i32 dim 1 : vector<4x256xf32>, i32 -> vector<4x256xf32>
    %c11 = arith.constant 11 : index
    %c0_55 = arith.constant 0 : index
    %c0_56 = arith.constant 0 : index
    %200 = vector.load %arg4[%c11, %c0_55, %c0_56] : memref<49x2x256xf32, #tpu.memory_space<vmem>>, vector<1x2x256xf32>
    %201 = vector.shape_cast %200 : vector<1x2x256xf32> to vector<2x256xf32>
    %202 = vector.extract_strided_slice %201 {offsets = [0, 0], sizes = [1, 256], strides = [1, 1]} : vector<2x256xf32> to vector<1x256xf32>
    %203 = vector.extract_strided_slice %199 {offsets = [0, 0], sizes = [2, 256], strides = [1, 1]} : vector<4x256xf32> to vector<2x256xf32>
    %204 = vector.broadcast %202 : vector<1x256xf32> to vector<2x256xf32>
    %205 = arith.mulf %204, %203 : vector<2x256xf32>
    %206 = arith.addf %193, %205 : vector<2x256xf32>
    %207 = vector.extract_strided_slice %201 {offsets = [1, 0], sizes = [1, 256], strides = [1, 1]} : vector<2x256xf32> to vector<1x256xf32>
    %208 = vector.extract_strided_slice %199 {offsets = [2, 0], sizes = [2, 256], strides = [1, 1]} : vector<4x256xf32> to vector<2x256xf32>
    %209 = vector.broadcast %207 : vector<1x256xf32> to vector<2x256xf32>
    %210 = arith.mulf %209, %208 : vector<2x256xf32>
    %211 = arith.addf %198, %210 : vector<2x256xf32>
    %c30_i32 = arith.constant 30 : i32
    %212 = tpu.dynamic_rotate %53 by %c30_i32 dim 1 : vector<4x256xf32>, i32 -> vector<4x256xf32>
    %c12 = arith.constant 12 : index
    %c0_57 = arith.constant 0 : index
    %c0_58 = arith.constant 0 : index
    %213 = vector.load %arg4[%c12, %c0_57, %c0_58] : memref<49x2x256xf32, #tpu.memory_space<vmem>>, vector<1x2x256xf32>
    %214 = vector.shape_cast %213 : vector<1x2x256xf32> to vector<2x256xf32>
    %215 = vector.extract_strided_slice %214 {offsets = [0, 0], sizes = [1, 256], strides = [1, 1]} : vector<2x256xf32> to vector<1x256xf32>
    %216 = vector.extract_strided_slice %212 {offsets = [0, 0], sizes = [2, 256], strides = [1, 1]} : vector<4x256xf32> to vector<2x256xf32>
    %217 = vector.broadcast %215 : vector<1x256xf32> to vector<2x256xf32>
    %218 = arith.mulf %217, %216 : vector<2x256xf32>
    %219 = arith.addf %206, %218 : vector<2x256xf32>
    %220 = vector.extract_strided_slice %214 {offsets = [1, 0], sizes = [1, 256], strides = [1, 1]} : vector<2x256xf32> to vector<1x256xf32>
    %221 = vector.extract_strided_slice %212 {offsets = [2, 0], sizes = [2, 256], strides = [1, 1]} : vector<4x256xf32> to vector<2x256xf32>
    %222 = vector.broadcast %220 : vector<1x256xf32> to vector<2x256xf32>
    %223 = arith.mulf %222, %221 : vector<2x256xf32>
    %224 = arith.addf %211, %223 : vector<2x256xf32>
    %c29_i32 = arith.constant 29 : i32
    %225 = tpu.dynamic_rotate %53 by %c29_i32 dim 1 : vector<4x256xf32>, i32 -> vector<4x256xf32>
    %c13 = arith.constant 13 : index
    %c0_59 = arith.constant 0 : index
    %c0_60 = arith.constant 0 : index
    %226 = vector.load %arg4[%c13, %c0_59, %c0_60] : memref<49x2x256xf32, #tpu.memory_space<vmem>>, vector<1x2x256xf32>
    %227 = vector.shape_cast %226 : vector<1x2x256xf32> to vector<2x256xf32>
    %228 = vector.extract_strided_slice %227 {offsets = [0, 0], sizes = [1, 256], strides = [1, 1]} : vector<2x256xf32> to vector<1x256xf32>
    %229 = vector.extract_strided_slice %225 {offsets = [0, 0], sizes = [2, 256], strides = [1, 1]} : vector<4x256xf32> to vector<2x256xf32>
    %230 = vector.broadcast %228 : vector<1x256xf32> to vector<2x256xf32>
    %231 = arith.mulf %230, %229 : vector<2x256xf32>
    %232 = arith.addf %219, %231 : vector<2x256xf32>
    %233 = vector.extract_strided_slice %227 {offsets = [1, 0], sizes = [1, 256], strides = [1, 1]} : vector<2x256xf32> to vector<1x256xf32>
    %234 = vector.extract_strided_slice %225 {offsets = [2, 0], sizes = [2, 256], strides = [1, 1]} : vector<4x256xf32> to vector<2x256xf32>
    %235 = vector.broadcast %233 : vector<1x256xf32> to vector<2x256xf32>
    %236 = arith.mulf %235, %234 : vector<2x256xf32>
    %237 = arith.addf %224, %236 : vector<2x256xf32>
    %c19_i32 = arith.constant 19 : i32
    %238 = tpu.dynamic_rotate %53 by %c19_i32 dim 1 : vector<4x256xf32>, i32 -> vector<4x256xf32>
    %c14 = arith.constant 14 : index
    %c0_61 = arith.constant 0 : index
    %c0_62 = arith.constant 0 : index
    %239 = vector.load %arg4[%c14, %c0_61, %c0_62] : memref<49x2x256xf32, #tpu.memory_space<vmem>>, vector<1x2x256xf32>
    %240 = vector.shape_cast %239 : vector<1x2x256xf32> to vector<2x256xf32>
    %241 = vector.extract_strided_slice %240 {offsets = [0, 0], sizes = [1, 256], strides = [1, 1]} : vector<2x256xf32> to vector<1x256xf32>
    %242 = vector.extract_strided_slice %238 {offsets = [0, 0], sizes = [2, 256], strides = [1, 1]} : vector<4x256xf32> to vector<2x256xf32>
    %243 = vector.broadcast %241 : vector<1x256xf32> to vector<2x256xf32>
    %244 = arith.mulf %243, %242 : vector<2x256xf32>
    %245 = arith.addf %232, %244 : vector<2x256xf32>
    %246 = vector.extract_strided_slice %240 {offsets = [1, 0], sizes = [1, 256], strides = [1, 1]} : vector<2x256xf32> to vector<1x256xf32>
    %247 = vector.extract_strided_slice %238 {offsets = [2, 0], sizes = [2, 256], strides = [1, 1]} : vector<4x256xf32> to vector<2x256xf32>
    %248 = vector.broadcast %246 : vector<1x256xf32> to vector<2x256xf32>
    %249 = arith.mulf %248, %247 : vector<2x256xf32>
    %250 = arith.addf %237, %249 : vector<2x256xf32>
    %c18_i32 = arith.constant 18 : i32
    %251 = tpu.dynamic_rotate %53 by %c18_i32 dim 1 : vector<4x256xf32>, i32 -> vector<4x256xf32>
    %c15 = arith.constant 15 : index
    %c0_63 = arith.constant 0 : index
    %c0_64 = arith.constant 0 : index
    %252 = vector.load %arg4[%c15, %c0_63, %c0_64] : memref<49x2x256xf32, #tpu.memory_space<vmem>>, vector<1x2x256xf32>
    %253 = vector.shape_cast %252 : vector<1x2x256xf32> to vector<2x256xf32>
    %254 = vector.extract_strided_slice %253 {offsets = [0, 0], sizes = [1, 256], strides = [1, 1]} : vector<2x256xf32> to vector<1x256xf32>
    %255 = vector.extract_strided_slice %251 {offsets = [0, 0], sizes = [2, 256], strides = [1, 1]} : vector<4x256xf32> to vector<2x256xf32>
    %256 = vector.broadcast %254 : vector<1x256xf32> to vector<2x256xf32>
    %257 = arith.mulf %256, %255 : vector<2x256xf32>
    %258 = arith.addf %245, %257 : vector<2x256xf32>
    %259 = vector.extract_strided_slice %253 {offsets = [1, 0], sizes = [1, 256], strides = [1, 1]} : vector<2x256xf32> to vector<1x256xf32>
    %260 = vector.extract_strided_slice %251 {offsets = [2, 0], sizes = [2, 256], strides = [1, 1]} : vector<4x256xf32> to vector<2x256xf32>
    %261 = vector.broadcast %259 : vector<1x256xf32> to vector<2x256xf32>
    %262 = arith.mulf %261, %260 : vector<2x256xf32>
    %263 = arith.addf %250, %262 : vector<2x256xf32>
    %c17_i32 = arith.constant 17 : i32
    %264 = tpu.dynamic_rotate %53 by %c17_i32 dim 1 : vector<4x256xf32>, i32 -> vector<4x256xf32>
    %c16 = arith.constant 16 : index
    %c0_65 = arith.constant 0 : index
    %c0_66 = arith.constant 0 : index
    %265 = vector.load %arg4[%c16, %c0_65, %c0_66] : memref<49x2x256xf32, #tpu.memory_space<vmem>>, vector<1x2x256xf32>
    %266 = vector.shape_cast %265 : vector<1x2x256xf32> to vector<2x256xf32>
    %267 = vector.extract_strided_slice %266 {offsets = [0, 0], sizes = [1, 256], strides = [1, 1]} : vector<2x256xf32> to vector<1x256xf32>
    %268 = vector.extract_strided_slice %264 {offsets = [0, 0], sizes = [2, 256], strides = [1, 1]} : vector<4x256xf32> to vector<2x256xf32>
    %269 = vector.broadcast %267 : vector<1x256xf32> to vector<2x256xf32>
    %270 = arith.mulf %269, %268 : vector<2x256xf32>
    %271 = arith.addf %258, %270 : vector<2x256xf32>
    %272 = vector.extract_strided_slice %266 {offsets = [1, 0], sizes = [1, 256], strides = [1, 1]} : vector<2x256xf32> to vector<1x256xf32>
    %273 = vector.extract_strided_slice %264 {offsets = [2, 0], sizes = [2, 256], strides = [1, 1]} : vector<4x256xf32> to vector<2x256xf32>
    %274 = vector.broadcast %272 : vector<1x256xf32> to vector<2x256xf32>
    %275 = arith.mulf %274, %273 : vector<2x256xf32>
    %276 = arith.addf %263, %275 : vector<2x256xf32>
    %c16_i32 = arith.constant 16 : i32
    %277 = tpu.dynamic_rotate %53 by %c16_i32 dim 1 : vector<4x256xf32>, i32 -> vector<4x256xf32>
    %c17 = arith.constant 17 : index
    %c0_67 = arith.constant 0 : index
    %c0_68 = arith.constant 0 : index
    %278 = vector.load %arg4[%c17, %c0_67, %c0_68] : memref<49x2x256xf32, #tpu.memory_space<vmem>>, vector<1x2x256xf32>
    %279 = vector.shape_cast %278 : vector<1x2x256xf32> to vector<2x256xf32>
    %280 = vector.extract_strided_slice %279 {offsets = [0, 0], sizes = [1, 256], strides = [1, 1]} : vector<2x256xf32> to vector<1x256xf32>
    %281 = vector.extract_strided_slice %277 {offsets = [0, 0], sizes = [2, 256], strides = [1, 1]} : vector<4x256xf32> to vector<2x256xf32>
    %282 = vector.broadcast %280 : vector<1x256xf32> to vector<2x256xf32>
    %283 = arith.mulf %282, %281 : vector<2x256xf32>
    %284 = arith.addf %271, %283 : vector<2x256xf32>
    %285 = vector.extract_strided_slice %279 {offsets = [1, 0], sizes = [1, 256], strides = [1, 1]} : vector<2x256xf32> to vector<1x256xf32>
    %286 = vector.extract_strided_slice %277 {offsets = [2, 0], sizes = [2, 256], strides = [1, 1]} : vector<4x256xf32> to vector<2x256xf32>
    %287 = vector.broadcast %285 : vector<1x256xf32> to vector<2x256xf32>
    %288 = arith.mulf %287, %286 : vector<2x256xf32>
    %289 = arith.addf %276, %288 : vector<2x256xf32>
    %c15_i32 = arith.constant 15 : i32
    %290 = tpu.dynamic_rotate %53 by %c15_i32 dim 1 : vector<4x256xf32>, i32 -> vector<4x256xf32>
    %c18 = arith.constant 18 : index
    %c0_69 = arith.constant 0 : index
    %c0_70 = arith.constant 0 : index
    %291 = vector.load %arg4[%c18, %c0_69, %c0_70] : memref<49x2x256xf32, #tpu.memory_space<vmem>>, vector<1x2x256xf32>
    %292 = vector.shape_cast %291 : vector<1x2x256xf32> to vector<2x256xf32>
    %293 = vector.extract_strided_slice %292 {offsets = [0, 0], sizes = [1, 256], strides = [1, 1]} : vector<2x256xf32> to vector<1x256xf32>
    %294 = vector.extract_strided_slice %290 {offsets = [0, 0], sizes = [2, 256], strides = [1, 1]} : vector<4x256xf32> to vector<2x256xf32>
    %295 = vector.broadcast %293 : vector<1x256xf32> to vector<2x256xf32>
    %296 = arith.mulf %295, %294 : vector<2x256xf32>
    %297 = arith.addf %284, %296 : vector<2x256xf32>
    %298 = vector.extract_strided_slice %292 {offsets = [1, 0], sizes = [1, 256], strides = [1, 1]} : vector<2x256xf32> to vector<1x256xf32>
    %299 = vector.extract_strided_slice %290 {offsets = [2, 0], sizes = [2, 256], strides = [1, 1]} : vector<4x256xf32> to vector<2x256xf32>
    %300 = vector.broadcast %298 : vector<1x256xf32> to vector<2x256xf32>
    %301 = arith.mulf %300, %299 : vector<2x256xf32>
    %302 = arith.addf %289, %301 : vector<2x256xf32>
    %c14_i32 = arith.constant 14 : i32
    %303 = tpu.dynamic_rotate %53 by %c14_i32 dim 1 : vector<4x256xf32>, i32 -> vector<4x256xf32>
    %c19 = arith.constant 19 : index
    %c0_71 = arith.constant 0 : index
    %c0_72 = arith.constant 0 : index
    %304 = vector.load %arg4[%c19, %c0_71, %c0_72] : memref<49x2x256xf32, #tpu.memory_space<vmem>>, vector<1x2x256xf32>
    %305 = vector.shape_cast %304 : vector<1x2x256xf32> to vector<2x256xf32>
    %306 = vector.extract_strided_slice %305 {offsets = [0, 0], sizes = [1, 256], strides = [1, 1]} : vector<2x256xf32> to vector<1x256xf32>
    %307 = vector.extract_strided_slice %303 {offsets = [0, 0], sizes = [2, 256], strides = [1, 1]} : vector<4x256xf32> to vector<2x256xf32>
    %308 = vector.broadcast %306 : vector<1x256xf32> to vector<2x256xf32>
    %309 = arith.mulf %308, %307 : vector<2x256xf32>
    %310 = arith.addf %297, %309 : vector<2x256xf32>
    %311 = vector.extract_strided_slice %305 {offsets = [1, 0], sizes = [1, 256], strides = [1, 1]} : vector<2x256xf32> to vector<1x256xf32>
    %312 = vector.extract_strided_slice %303 {offsets = [2, 0], sizes = [2, 256], strides = [1, 1]} : vector<4x256xf32> to vector<2x256xf32>
    %313 = vector.broadcast %311 : vector<1x256xf32> to vector<2x256xf32>
    %314 = arith.mulf %313, %312 : vector<2x256xf32>
    %315 = arith.addf %302, %314 : vector<2x256xf32>
    %c13_i32 = arith.constant 13 : i32
    %316 = tpu.dynamic_rotate %53 by %c13_i32 dim 1 : vector<4x256xf32>, i32 -> vector<4x256xf32>
    %c20 = arith.constant 20 : index
    %c0_73 = arith.constant 0 : index
    %c0_74 = arith.constant 0 : index
    %317 = vector.load %arg4[%c20, %c0_73, %c0_74] : memref<49x2x256xf32, #tpu.memory_space<vmem>>, vector<1x2x256xf32>
    %318 = vector.shape_cast %317 : vector<1x2x256xf32> to vector<2x256xf32>
    %319 = vector.extract_strided_slice %318 {offsets = [0, 0], sizes = [1, 256], strides = [1, 1]} : vector<2x256xf32> to vector<1x256xf32>
    %320 = vector.extract_strided_slice %316 {offsets = [0, 0], sizes = [2, 256], strides = [1, 1]} : vector<4x256xf32> to vector<2x256xf32>
    %321 = vector.broadcast %319 : vector<1x256xf32> to vector<2x256xf32>
    %322 = arith.mulf %321, %320 : vector<2x256xf32>
    %323 = arith.addf %310, %322 : vector<2x256xf32>
    %324 = vector.extract_strided_slice %318 {offsets = [1, 0], sizes = [1, 256], strides = [1, 1]} : vector<2x256xf32> to vector<1x256xf32>
    %325 = vector.extract_strided_slice %316 {offsets = [2, 0], sizes = [2, 256], strides = [1, 1]} : vector<4x256xf32> to vector<2x256xf32>
    %326 = vector.broadcast %324 : vector<1x256xf32> to vector<2x256xf32>
    %327 = arith.mulf %326, %325 : vector<2x256xf32>
    %328 = arith.addf %315, %327 : vector<2x256xf32>
    %c3_i32 = arith.constant 3 : i32
    %329 = tpu.dynamic_rotate %53 by %c3_i32 dim 1 : vector<4x256xf32>, i32 -> vector<4x256xf32>
    %c21 = arith.constant 21 : index
    %c0_75 = arith.constant 0 : index
    %c0_76 = arith.constant 0 : index
    %330 = vector.load %arg4[%c21, %c0_75, %c0_76] : memref<49x2x256xf32, #tpu.memory_space<vmem>>, vector<1x2x256xf32>
    %331 = vector.shape_cast %330 : vector<1x2x256xf32> to vector<2x256xf32>
    %332 = vector.extract_strided_slice %331 {offsets = [0, 0], sizes = [1, 256], strides = [1, 1]} : vector<2x256xf32> to vector<1x256xf32>
    %333 = vector.extract_strided_slice %329 {offsets = [0, 0], sizes = [2, 256], strides = [1, 1]} : vector<4x256xf32> to vector<2x256xf32>
    %334 = vector.broadcast %332 : vector<1x256xf32> to vector<2x256xf32>
    %335 = arith.mulf %334, %333 : vector<2x256xf32>
    %336 = arith.addf %323, %335 : vector<2x256xf32>
    %337 = vector.extract_strided_slice %331 {offsets = [1, 0], sizes = [1, 256], strides = [1, 1]} : vector<2x256xf32> to vector<1x256xf32>
    %338 = vector.extract_strided_slice %329 {offsets = [2, 0], sizes = [2, 256], strides = [1, 1]} : vector<4x256xf32> to vector<2x256xf32>
    %339 = vector.broadcast %337 : vector<1x256xf32> to vector<2x256xf32>
    %340 = arith.mulf %339, %338 : vector<2x256xf32>
    %341 = arith.addf %328, %340 : vector<2x256xf32>
    %c2_i32 = arith.constant 2 : i32
    %342 = tpu.dynamic_rotate %53 by %c2_i32 dim 1 : vector<4x256xf32>, i32 -> vector<4x256xf32>
    %c22 = arith.constant 22 : index
    %c0_77 = arith.constant 0 : index
    %c0_78 = arith.constant 0 : index
    %343 = vector.load %arg4[%c22, %c0_77, %c0_78] : memref<49x2x256xf32, #tpu.memory_space<vmem>>, vector<1x2x256xf32>
    %344 = vector.shape_cast %343 : vector<1x2x256xf32> to vector<2x256xf32>
    %345 = vector.extract_strided_slice %344 {offsets = [0, 0], sizes = [1, 256], strides = [1, 1]} : vector<2x256xf32> to vector<1x256xf32>
    %346 = vector.extract_strided_slice %342 {offsets = [0, 0], sizes = [2, 256], strides = [1, 1]} : vector<4x256xf32> to vector<2x256xf32>
    %347 = vector.broadcast %345 : vector<1x256xf32> to vector<2x256xf32>
    %348 = arith.mulf %347, %346 : vector<2x256xf32>
    %349 = arith.addf %336, %348 : vector<2x256xf32>
    %350 = vector.extract_strided_slice %344 {offsets = [1, 0], sizes = [1, 256], strides = [1, 1]} : vector<2x256xf32> to vector<1x256xf32>
    %351 = vector.extract_strided_slice %342 {offsets = [2, 0], sizes = [2, 256], strides = [1, 1]} : vector<4x256xf32> to vector<2x256xf32>
    %352 = vector.broadcast %350 : vector<1x256xf32> to vector<2x256xf32>
    %353 = arith.mulf %352, %351 : vector<2x256xf32>
    %354 = arith.addf %341, %353 : vector<2x256xf32>
    %c1_i32 = arith.constant 1 : i32
    %355 = tpu.dynamic_rotate %53 by %c1_i32 dim 1 : vector<4x256xf32>, i32 -> vector<4x256xf32>
    %c23 = arith.constant 23 : index
    %c0_79 = arith.constant 0 : index
    %c0_80 = arith.constant 0 : index
    %356 = vector.load %arg4[%c23, %c0_79, %c0_80] : memref<49x2x256xf32, #tpu.memory_space<vmem>>, vector<1x2x256xf32>
    %357 = vector.shape_cast %356 : vector<1x2x256xf32> to vector<2x256xf32>
    %358 = vector.extract_strided_slice %357 {offsets = [0, 0], sizes = [1, 256], strides = [1, 1]} : vector<2x256xf32> to vector<1x256xf32>
    %359 = vector.extract_strided_slice %355 {offsets = [0, 0], sizes = [2, 256], strides = [1, 1]} : vector<4x256xf32> to vector<2x256xf32>
    %360 = vector.broadcast %358 : vector<1x256xf32> to vector<2x256xf32>
    %361 = arith.mulf %360, %359 : vector<2x256xf32>
    %362 = arith.addf %349, %361 : vector<2x256xf32>
    %363 = vector.extract_strided_slice %357 {offsets = [1, 0], sizes = [1, 256], strides = [1, 1]} : vector<2x256xf32> to vector<1x256xf32>
    %364 = vector.extract_strided_slice %355 {offsets = [2, 0], sizes = [2, 256], strides = [1, 1]} : vector<4x256xf32> to vector<2x256xf32>
    %365 = vector.broadcast %363 : vector<1x256xf32> to vector<2x256xf32>
    %366 = arith.mulf %365, %364 : vector<2x256xf32>
    %367 = arith.addf %354, %366 : vector<2x256xf32>
    %c24 = arith.constant 24 : index
    %c0_81 = arith.constant 0 : index
    %c0_82 = arith.constant 0 : index
    %368 = vector.load %arg4[%c24, %c0_81, %c0_82] : memref<49x2x256xf32, #tpu.memory_space<vmem>>, vector<1x2x256xf32>
    %369 = vector.shape_cast %368 : vector<1x2x256xf32> to vector<2x256xf32>
    %370 = vector.extract_strided_slice %369 {offsets = [0, 0], sizes = [1, 256], strides = [1, 1]} : vector<2x256xf32> to vector<1x256xf32>
    %371 = vector.extract_strided_slice %53 {offsets = [0, 0], sizes = [2, 256], strides = [1, 1]} : vector<4x256xf32> to vector<2x256xf32>
    %372 = vector.broadcast %370 : vector<1x256xf32> to vector<2x256xf32>
    %373 = arith.mulf %372, %371 : vector<2x256xf32>
    %374 = arith.addf %362, %373 : vector<2x256xf32>
    %375 = vector.extract_strided_slice %369 {offsets = [1, 0], sizes = [1, 256], strides = [1, 1]} : vector<2x256xf32> to vector<1x256xf32>
    %376 = vector.extract_strided_slice %53 {offsets = [2, 0], sizes = [2, 256], strides = [1, 1]} : vector<4x256xf32> to vector<2x256xf32>
    %377 = vector.broadcast %375 : vector<1x256xf32> to vector<2x256xf32>
    %378 = arith.mulf %377, %376 : vector<2x256xf32>
    %379 = arith.addf %367, %378 : vector<2x256xf32>
    %c255_i32 = arith.constant 255 : i32
    %380 = tpu.dynamic_rotate %53 by %c255_i32 dim 1 : vector<4x256xf32>, i32 -> vector<4x256xf32>
    %c25 = arith.constant 25 : index
    %c0_83 = arith.constant 0 : index
    %c0_84 = arith.constant 0 : index
    %381 = vector.load %arg4[%c25, %c0_83, %c0_84] : memref<49x2x256xf32, #tpu.memory_space<vmem>>, vector<1x2x256xf32>
    %382 = vector.shape_cast %381 : vector<1x2x256xf32> to vector<2x256xf32>
    %383 = vector.extract_strided_slice %382 {offsets = [0, 0], sizes = [1, 256], strides = [1, 1]} : vector<2x256xf32> to vector<1x256xf32>
    %384 = vector.extract_strided_slice %380 {offsets = [0, 0], sizes = [2, 256], strides = [1, 1]} : vector<4x256xf32> to vector<2x256xf32>
    %385 = vector.broadcast %383 : vector<1x256xf32> to vector<2x256xf32>
    %386 = arith.mulf %385, %384 : vector<2x256xf32>
    %387 = arith.addf %374, %386 : vector<2x256xf32>
    %388 = vector.extract_strided_slice %382 {offsets = [1, 0], sizes = [1, 256], strides = [1, 1]} : vector<2x256xf32> to vector<1x256xf32>
    %389 = vector.extract_strided_slice %380 {offsets = [2, 0], sizes = [2, 256], strides = [1, 1]} : vector<4x256xf32> to vector<2x256xf32>
    %390 = vector.broadcast %388 : vector<1x256xf32> to vector<2x256xf32>
    %391 = arith.mulf %390, %389 : vector<2x256xf32>
    %392 = arith.addf %379, %391 : vector<2x256xf32>
    %c254_i32 = arith.constant 254 : i32
    %393 = tpu.dynamic_rotate %53 by %c254_i32 dim 1 : vector<4x256xf32>, i32 -> vector<4x256xf32>
    %c26 = arith.constant 26 : index
    %c0_85 = arith.constant 0 : index
    %c0_86 = arith.constant 0 : index
    %394 = vector.load %arg4[%c26, %c0_85, %c0_86] : memref<49x2x256xf32, #tpu.memory_space<vmem>>, vector<1x2x256xf32>
    %395 = vector.shape_cast %394 : vector<1x2x256xf32> to vector<2x256xf32>
    %396 = vector.extract_strided_slice %395 {offsets = [0, 0], sizes = [1, 256], strides = [1, 1]} : vector<2x256xf32> to vector<1x256xf32>
    %397 = vector.extract_strided_slice %393 {offsets = [0, 0], sizes = [2, 256], strides = [1, 1]} : vector<4x256xf32> to vector<2x256xf32>
    %398 = vector.broadcast %396 : vector<1x256xf32> to vector<2x256xf32>
    %399 = arith.mulf %398, %397 : vector<2x256xf32>
    %400 = arith.addf %387, %399 : vector<2x256xf32>
    %401 = vector.extract_strided_slice %395 {offsets = [1, 0], sizes = [1, 256], strides = [1, 1]} : vector<2x256xf32> to vector<1x256xf32>
    %402 = vector.extract_strided_slice %393 {offsets = [2, 0], sizes = [2, 256], strides = [1, 1]} : vector<4x256xf32> to vector<2x256xf32>
    %403 = vector.broadcast %401 : vector<1x256xf32> to vector<2x256xf32>
    %404 = arith.mulf %403, %402 : vector<2x256xf32>
    %405 = arith.addf %392, %404 : vector<2x256xf32>
    %c253_i32 = arith.constant 253 : i32
    %406 = tpu.dynamic_rotate %53 by %c253_i32 dim 1 : vector<4x256xf32>, i32 -> vector<4x256xf32>
    %c27 = arith.constant 27 : index
    %c0_87 = arith.constant 0 : index
    %c0_88 = arith.constant 0 : index
    %407 = vector.load %arg4[%c27, %c0_87, %c0_88] : memref<49x2x256xf32, #tpu.memory_space<vmem>>, vector<1x2x256xf32>
    %408 = vector.shape_cast %407 : vector<1x2x256xf32> to vector<2x256xf32>
    %409 = vector.extract_strided_slice %408 {offsets = [0, 0], sizes = [1, 256], strides = [1, 1]} : vector<2x256xf32> to vector<1x256xf32>
    %410 = vector.extract_strided_slice %406 {offsets = [0, 0], sizes = [2, 256], strides = [1, 1]} : vector<4x256xf32> to vector<2x256xf32>
    %411 = vector.broadcast %409 : vector<1x256xf32> to vector<2x256xf32>
    %412 = arith.mulf %411, %410 : vector<2x256xf32>
    %413 = arith.addf %400, %412 : vector<2x256xf32>
    %414 = vector.extract_strided_slice %408 {offsets = [1, 0], sizes = [1, 256], strides = [1, 1]} : vector<2x256xf32> to vector<1x256xf32>
    %415 = vector.extract_strided_slice %406 {offsets = [2, 0], sizes = [2, 256], strides = [1, 1]} : vector<4x256xf32> to vector<2x256xf32>
    %416 = vector.broadcast %414 : vector<1x256xf32> to vector<2x256xf32>
    %417 = arith.mulf %416, %415 : vector<2x256xf32>
    %418 = arith.addf %405, %417 : vector<2x256xf32>
    %c243_i32 = arith.constant 243 : i32
    %419 = tpu.dynamic_rotate %53 by %c243_i32 dim 1 : vector<4x256xf32>, i32 -> vector<4x256xf32>
    %c28 = arith.constant 28 : index
    %c0_89 = arith.constant 0 : index
    %c0_90 = arith.constant 0 : index
    %420 = vector.load %arg4[%c28, %c0_89, %c0_90] : memref<49x2x256xf32, #tpu.memory_space<vmem>>, vector<1x2x256xf32>
    %421 = vector.shape_cast %420 : vector<1x2x256xf32> to vector<2x256xf32>
    %422 = vector.extract_strided_slice %421 {offsets = [0, 0], sizes = [1, 256], strides = [1, 1]} : vector<2x256xf32> to vector<1x256xf32>
    %423 = vector.extract_strided_slice %419 {offsets = [0, 0], sizes = [2, 256], strides = [1, 1]} : vector<4x256xf32> to vector<2x256xf32>
    %424 = vector.broadcast %422 : vector<1x256xf32> to vector<2x256xf32>
    %425 = arith.mulf %424, %423 : vector<2x256xf32>
    %426 = arith.addf %413, %425 : vector<2x256xf32>
    %427 = vector.extract_strided_slice %421 {offsets = [1, 0], sizes = [1, 256], strides = [1, 1]} : vector<2x256xf32> to vector<1x256xf32>
    %428 = vector.extract_strided_slice %419 {offsets = [2, 0], sizes = [2, 256], strides = [1, 1]} : vector<4x256xf32> to vector<2x256xf32>
    %429 = vector.broadcast %427 : vector<1x256xf32> to vector<2x256xf32>
    %430 = arith.mulf %429, %428 : vector<2x256xf32>
    %431 = arith.addf %418, %430 : vector<2x256xf32>
    %c242_i32 = arith.constant 242 : i32
    %432 = tpu.dynamic_rotate %53 by %c242_i32 dim 1 : vector<4x256xf32>, i32 -> vector<4x256xf32>
    %c29 = arith.constant 29 : index
    %c0_91 = arith.constant 0 : index
    %c0_92 = arith.constant 0 : index
    %433 = vector.load %arg4[%c29, %c0_91, %c0_92] : memref<49x2x256xf32, #tpu.memory_space<vmem>>, vector<1x2x256xf32>
    %434 = vector.shape_cast %433 : vector<1x2x256xf32> to vector<2x256xf32>
    %435 = vector.extract_strided_slice %434 {offsets = [0, 0], sizes = [1, 256], strides = [1, 1]} : vector<2x256xf32> to vector<1x256xf32>
    %436 = vector.extract_strided_slice %432 {offsets = [0, 0], sizes = [2, 256], strides = [1, 1]} : vector<4x256xf32> to vector<2x256xf32>
    %437 = vector.broadcast %435 : vector<1x256xf32> to vector<2x256xf32>
    %438 = arith.mulf %437, %436 : vector<2x256xf32>
    %439 = arith.addf %426, %438 : vector<2x256xf32>
    %440 = vector.extract_strided_slice %434 {offsets = [1, 0], sizes = [1, 256], strides = [1, 1]} : vector<2x256xf32> to vector<1x256xf32>
    %441 = vector.extract_strided_slice %432 {offsets = [2, 0], sizes = [2, 256], strides = [1, 1]} : vector<4x256xf32> to vector<2x256xf32>
    %442 = vector.broadcast %440 : vector<1x256xf32> to vector<2x256xf32>
    %443 = arith.mulf %442, %441 : vector<2x256xf32>
    %444 = arith.addf %431, %443 : vector<2x256xf32>
    %c241_i32 = arith.constant 241 : i32
    %445 = tpu.dynamic_rotate %53 by %c241_i32 dim 1 : vector<4x256xf32>, i32 -> vector<4x256xf32>
    %c30 = arith.constant 30 : index
    %c0_93 = arith.constant 0 : index
    %c0_94 = arith.constant 0 : index
    %446 = vector.load %arg4[%c30, %c0_93, %c0_94] : memref<49x2x256xf32, #tpu.memory_space<vmem>>, vector<1x2x256xf32>
    %447 = vector.shape_cast %446 : vector<1x2x256xf32> to vector<2x256xf32>
    %448 = vector.extract_strided_slice %447 {offsets = [0, 0], sizes = [1, 256], strides = [1, 1]} : vector<2x256xf32> to vector<1x256xf32>
    %449 = vector.extract_strided_slice %445 {offsets = [0, 0], sizes = [2, 256], strides = [1, 1]} : vector<4x256xf32> to vector<2x256xf32>
    %450 = vector.broadcast %448 : vector<1x256xf32> to vector<2x256xf32>
    %451 = arith.mulf %450, %449 : vector<2x256xf32>
    %452 = arith.addf %439, %451 : vector<2x256xf32>
    %453 = vector.extract_strided_slice %447 {offsets = [1, 0], sizes = [1, 256], strides = [1, 1]} : vector<2x256xf32> to vector<1x256xf32>
    %454 = vector.extract_strided_slice %445 {offsets = [2, 0], sizes = [2, 256], strides = [1, 1]} : vector<4x256xf32> to vector<2x256xf32>
    %455 = vector.broadcast %453 : vector<1x256xf32> to vector<2x256xf32>
    %456 = arith.mulf %455, %454 : vector<2x256xf32>
    %457 = arith.addf %444, %456 : vector<2x256xf32>
    %c240_i32 = arith.constant 240 : i32
    %458 = tpu.dynamic_rotate %53 by %c240_i32 dim 1 : vector<4x256xf32>, i32 -> vector<4x256xf32>
    %c31 = arith.constant 31 : index
    %c0_95 = arith.constant 0 : index
    %c0_96 = arith.constant 0 : index
    %459 = vector.load %arg4[%c31, %c0_95, %c0_96] : memref<49x2x256xf32, #tpu.memory_space<vmem>>, vector<1x2x256xf32>
    %460 = vector.shape_cast %459 : vector<1x2x256xf32> to vector<2x256xf32>
    %461 = vector.extract_strided_slice %460 {offsets = [0, 0], sizes = [1, 256], strides = [1, 1]} : vector<2x256xf32> to vector<1x256xf32>
    %462 = vector.extract_strided_slice %458 {offsets = [0, 0], sizes = [2, 256], strides = [1, 1]} : vector<4x256xf32> to vector<2x256xf32>
    %463 = vector.broadcast %461 : vector<1x256xf32> to vector<2x256xf32>
    %464 = arith.mulf %463, %462 : vector<2x256xf32>
    %465 = arith.addf %452, %464 : vector<2x256xf32>
    %466 = vector.extract_strided_slice %460 {offsets = [1, 0], sizes = [1, 256], strides = [1, 1]} : vector<2x256xf32> to vector<1x256xf32>
    %467 = vector.extract_strided_slice %458 {offsets = [2, 0], sizes = [2, 256], strides = [1, 1]} : vector<4x256xf32> to vector<2x256xf32>
    %468 = vector.broadcast %466 : vector<1x256xf32> to vector<2x256xf32>
    %469 = arith.mulf %468, %467 : vector<2x256xf32>
    %470 = arith.addf %457, %469 : vector<2x256xf32>
    %c239_i32 = arith.constant 239 : i32
    %471 = tpu.dynamic_rotate %53 by %c239_i32 dim 1 : vector<4x256xf32>, i32 -> vector<4x256xf32>
    %c32 = arith.constant 32 : index
    %c0_97 = arith.constant 0 : index
    %c0_98 = arith.constant 0 : index
    %472 = vector.load %arg4[%c32, %c0_97, %c0_98] : memref<49x2x256xf32, #tpu.memory_space<vmem>>, vector<1x2x256xf32>
    %473 = vector.shape_cast %472 : vector<1x2x256xf32> to vector<2x256xf32>
    %474 = vector.extract_strided_slice %473 {offsets = [0, 0], sizes = [1, 256], strides = [1, 1]} : vector<2x256xf32> to vector<1x256xf32>
    %475 = vector.extract_strided_slice %471 {offsets = [0, 0], sizes = [2, 256], strides = [1, 1]} : vector<4x256xf32> to vector<2x256xf32>
    %476 = vector.broadcast %474 : vector<1x256xf32> to vector<2x256xf32>
    %477 = arith.mulf %476, %475 : vector<2x256xf32>
    %478 = arith.addf %465, %477 : vector<2x256xf32>
    %479 = vector.extract_strided_slice %473 {offsets = [1, 0], sizes = [1, 256], strides = [1, 1]} : vector<2x256xf32> to vector<1x256xf32>
    %480 = vector.extract_strided_slice %471 {offsets = [2, 0], sizes = [2, 256], strides = [1, 1]} : vector<4x256xf32> to vector<2x256xf32>
    %481 = vector.broadcast %479 : vector<1x256xf32> to vector<2x256xf32>
    %482 = arith.mulf %481, %480 : vector<2x256xf32>
    %483 = arith.addf %470, %482 : vector<2x256xf32>
    %c238_i32 = arith.constant 238 : i32
    %484 = tpu.dynamic_rotate %53 by %c238_i32 dim 1 : vector<4x256xf32>, i32 -> vector<4x256xf32>
    %c33 = arith.constant 33 : index
    %c0_99 = arith.constant 0 : index
    %c0_100 = arith.constant 0 : index
    %485 = vector.load %arg4[%c33, %c0_99, %c0_100] : memref<49x2x256xf32, #tpu.memory_space<vmem>>, vector<1x2x256xf32>
    %486 = vector.shape_cast %485 : vector<1x2x256xf32> to vector<2x256xf32>
    %487 = vector.extract_strided_slice %486 {offsets = [0, 0], sizes = [1, 256], strides = [1, 1]} : vector<2x256xf32> to vector<1x256xf32>
    %488 = vector.extract_strided_slice %484 {offsets = [0, 0], sizes = [2, 256], strides = [1, 1]} : vector<4x256xf32> to vector<2x256xf32>
    %489 = vector.broadcast %487 : vector<1x256xf32> to vector<2x256xf32>
    %490 = arith.mulf %489, %488 : vector<2x256xf32>
    %491 = arith.addf %478, %490 : vector<2x256xf32>
    %492 = vector.extract_strided_slice %486 {offsets = [1, 0], sizes = [1, 256], strides = [1, 1]} : vector<2x256xf32> to vector<1x256xf32>
    %493 = vector.extract_strided_slice %484 {offsets = [2, 0], sizes = [2, 256], strides = [1, 1]} : vector<4x256xf32> to vector<2x256xf32>
    %494 = vector.broadcast %492 : vector<1x256xf32> to vector<2x256xf32>
    %495 = arith.mulf %494, %493 : vector<2x256xf32>
    %496 = arith.addf %483, %495 : vector<2x256xf32>
    %c237_i32 = arith.constant 237 : i32
    %497 = tpu.dynamic_rotate %53 by %c237_i32 dim 1 : vector<4x256xf32>, i32 -> vector<4x256xf32>
    %c34 = arith.constant 34 : index
    %c0_101 = arith.constant 0 : index
    %c0_102 = arith.constant 0 : index
    %498 = vector.load %arg4[%c34, %c0_101, %c0_102] : memref<49x2x256xf32, #tpu.memory_space<vmem>>, vector<1x2x256xf32>
    %499 = vector.shape_cast %498 : vector<1x2x256xf32> to vector<2x256xf32>
    %500 = vector.extract_strided_slice %499 {offsets = [0, 0], sizes = [1, 256], strides = [1, 1]} : vector<2x256xf32> to vector<1x256xf32>
    %501 = vector.extract_strided_slice %497 {offsets = [0, 0], sizes = [2, 256], strides = [1, 1]} : vector<4x256xf32> to vector<2x256xf32>
    %502 = vector.broadcast %500 : vector<1x256xf32> to vector<2x256xf32>
    %503 = arith.mulf %502, %501 : vector<2x256xf32>
    %504 = arith.addf %491, %503 : vector<2x256xf32>
    %505 = vector.extract_strided_slice %499 {offsets = [1, 0], sizes = [1, 256], strides = [1, 1]} : vector<2x256xf32> to vector<1x256xf32>
    %506 = vector.extract_strided_slice %497 {offsets = [2, 0], sizes = [2, 256], strides = [1, 1]} : vector<4x256xf32> to vector<2x256xf32>
    %507 = vector.broadcast %505 : vector<1x256xf32> to vector<2x256xf32>
    %508 = arith.mulf %507, %506 : vector<2x256xf32>
    %509 = arith.addf %496, %508 : vector<2x256xf32>
    %c227_i32 = arith.constant 227 : i32
    %510 = tpu.dynamic_rotate %53 by %c227_i32 dim 1 : vector<4x256xf32>, i32 -> vector<4x256xf32>
    %c35 = arith.constant 35 : index
    %c0_103 = arith.constant 0 : index
    %c0_104 = arith.constant 0 : index
    %511 = vector.load %arg4[%c35, %c0_103, %c0_104] : memref<49x2x256xf32, #tpu.memory_space<vmem>>, vector<1x2x256xf32>
    %512 = vector.shape_cast %511 : vector<1x2x256xf32> to vector<2x256xf32>
    %513 = vector.extract_strided_slice %512 {offsets = [0, 0], sizes = [1, 256], strides = [1, 1]} : vector<2x256xf32> to vector<1x256xf32>
    %514 = vector.extract_strided_slice %510 {offsets = [0, 0], sizes = [2, 256], strides = [1, 1]} : vector<4x256xf32> to vector<2x256xf32>
    %515 = vector.broadcast %513 : vector<1x256xf32> to vector<2x256xf32>
    %516 = arith.mulf %515, %514 : vector<2x256xf32>
    %517 = arith.addf %504, %516 : vector<2x256xf32>
    %518 = vector.extract_strided_slice %512 {offsets = [1, 0], sizes = [1, 256], strides = [1, 1]} : vector<2x256xf32> to vector<1x256xf32>
    %519 = vector.extract_strided_slice %510 {offsets = [2, 0], sizes = [2, 256], strides = [1, 1]} : vector<4x256xf32> to vector<2x256xf32>
    %520 = vector.broadcast %518 : vector<1x256xf32> to vector<2x256xf32>
    %521 = arith.mulf %520, %519 : vector<2x256xf32>
    %522 = arith.addf %509, %521 : vector<2x256xf32>
    %c226_i32 = arith.constant 226 : i32
    %523 = tpu.dynamic_rotate %53 by %c226_i32 dim 1 : vector<4x256xf32>, i32 -> vector<4x256xf32>
    %c36 = arith.constant 36 : index
    %c0_105 = arith.constant 0 : index
    %c0_106 = arith.constant 0 : index
    %524 = vector.load %arg4[%c36, %c0_105, %c0_106] : memref<49x2x256xf32, #tpu.memory_space<vmem>>, vector<1x2x256xf32>
    %525 = vector.shape_cast %524 : vector<1x2x256xf32> to vector<2x256xf32>
    %526 = vector.extract_strided_slice %525 {offsets = [0, 0], sizes = [1, 256], strides = [1, 1]} : vector<2x256xf32> to vector<1x256xf32>
    %527 = vector.extract_strided_slice %523 {offsets = [0, 0], sizes = [2, 256], strides = [1, 1]} : vector<4x256xf32> to vector<2x256xf32>
    %528 = vector.broadcast %526 : vector<1x256xf32> to vector<2x256xf32>
    %529 = arith.mulf %528, %527 : vector<2x256xf32>
    %530 = arith.addf %517, %529 : vector<2x256xf32>
    %531 = vector.extract_strided_slice %525 {offsets = [1, 0], sizes = [1, 256], strides = [1, 1]} : vector<2x256xf32> to vector<1x256xf32>
    %532 = vector.extract_strided_slice %523 {offsets = [2, 0], sizes = [2, 256], strides = [1, 1]} : vector<4x256xf32> to vector<2x256xf32>
    %533 = vector.broadcast %531 : vector<1x256xf32> to vector<2x256xf32>
    %534 = arith.mulf %533, %532 : vector<2x256xf32>
    %535 = arith.addf %522, %534 : vector<2x256xf32>
    %c225_i32 = arith.constant 225 : i32
    %536 = tpu.dynamic_rotate %53 by %c225_i32 dim 1 : vector<4x256xf32>, i32 -> vector<4x256xf32>
    %c37 = arith.constant 37 : index
    %c0_107 = arith.constant 0 : index
    %c0_108 = arith.constant 0 : index
    %537 = vector.load %arg4[%c37, %c0_107, %c0_108] : memref<49x2x256xf32, #tpu.memory_space<vmem>>, vector<1x2x256xf32>
    %538 = vector.shape_cast %537 : vector<1x2x256xf32> to vector<2x256xf32>
    %539 = vector.extract_strided_slice %538 {offsets = [0, 0], sizes = [1, 256], strides = [1, 1]} : vector<2x256xf32> to vector<1x256xf32>
    %540 = vector.extract_strided_slice %536 {offsets = [0, 0], sizes = [2, 256], strides = [1, 1]} : vector<4x256xf32> to vector<2x256xf32>
    %541 = vector.broadcast %539 : vector<1x256xf32> to vector<2x256xf32>
    %542 = arith.mulf %541, %540 : vector<2x256xf32>
    %543 = arith.addf %530, %542 : vector<2x256xf32>
    %544 = vector.extract_strided_slice %538 {offsets = [1, 0], sizes = [1, 256], strides = [1, 1]} : vector<2x256xf32> to vector<1x256xf32>
    %545 = vector.extract_strided_slice %536 {offsets = [2, 0], sizes = [2, 256], strides = [1, 1]} : vector<4x256xf32> to vector<2x256xf32>
    %546 = vector.broadcast %544 : vector<1x256xf32> to vector<2x256xf32>
    %547 = arith.mulf %546, %545 : vector<2x256xf32>
    %548 = arith.addf %535, %547 : vector<2x256xf32>
    %c224_i32 = arith.constant 224 : i32
    %549 = tpu.dynamic_rotate %53 by %c224_i32 dim 1 : vector<4x256xf32>, i32 -> vector<4x256xf32>
    %c38 = arith.constant 38 : index
    %c0_109 = arith.constant 0 : index
    %c0_110 = arith.constant 0 : index
    %550 = vector.load %arg4[%c38, %c0_109, %c0_110] : memref<49x2x256xf32, #tpu.memory_space<vmem>>, vector<1x2x256xf32>
    %551 = vector.shape_cast %550 : vector<1x2x256xf32> to vector<2x256xf32>
    %552 = vector.extract_strided_slice %551 {offsets = [0, 0], sizes = [1, 256], strides = [1, 1]} : vector<2x256xf32> to vector<1x256xf32>
    %553 = vector.extract_strided_slice %549 {offsets = [0, 0], sizes = [2, 256], strides = [1, 1]} : vector<4x256xf32> to vector<2x256xf32>
    %554 = vector.broadcast %552 : vector<1x256xf32> to vector<2x256xf32>
    %555 = arith.mulf %554, %553 : vector<2x256xf32>
    %556 = arith.addf %543, %555 : vector<2x256xf32>
    %557 = vector.extract_strided_slice %551 {offsets = [1, 0], sizes = [1, 256], strides = [1, 1]} : vector<2x256xf32> to vector<1x256xf32>
    %558 = vector.extract_strided_slice %549 {offsets = [2, 0], sizes = [2, 256], strides = [1, 1]} : vector<4x256xf32> to vector<2x256xf32>
    %559 = vector.broadcast %557 : vector<1x256xf32> to vector<2x256xf32>
    %560 = arith.mulf %559, %558 : vector<2x256xf32>
    %561 = arith.addf %548, %560 : vector<2x256xf32>
    %c223_i32 = arith.constant 223 : i32
    %562 = tpu.dynamic_rotate %53 by %c223_i32 dim 1 : vector<4x256xf32>, i32 -> vector<4x256xf32>
    %c39 = arith.constant 39 : index
    %c0_111 = arith.constant 0 : index
    %c0_112 = arith.constant 0 : index
    %563 = vector.load %arg4[%c39, %c0_111, %c0_112] : memref<49x2x256xf32, #tpu.memory_space<vmem>>, vector<1x2x256xf32>
    %564 = vector.shape_cast %563 : vector<1x2x256xf32> to vector<2x256xf32>
    %565 = vector.extract_strided_slice %564 {offsets = [0, 0], sizes = [1, 256], strides = [1, 1]} : vector<2x256xf32> to vector<1x256xf32>
    %566 = vector.extract_strided_slice %562 {offsets = [0, 0], sizes = [2, 256], strides = [1, 1]} : vector<4x256xf32> to vector<2x256xf32>
    %567 = vector.broadcast %565 : vector<1x256xf32> to vector<2x256xf32>
    %568 = arith.mulf %567, %566 : vector<2x256xf32>
    %569 = arith.addf %556, %568 : vector<2x256xf32>
    %570 = vector.extract_strided_slice %564 {offsets = [1, 0], sizes = [1, 256], strides = [1, 1]} : vector<2x256xf32> to vector<1x256xf32>
    %571 = vector.extract_strided_slice %562 {offsets = [2, 0], sizes = [2, 256], strides = [1, 1]} : vector<4x256xf32> to vector<2x256xf32>
    %572 = vector.broadcast %570 : vector<1x256xf32> to vector<2x256xf32>
    %573 = arith.mulf %572, %571 : vector<2x256xf32>
    %574 = arith.addf %561, %573 : vector<2x256xf32>
    %c222_i32 = arith.constant 222 : i32
    %575 = tpu.dynamic_rotate %53 by %c222_i32 dim 1 : vector<4x256xf32>, i32 -> vector<4x256xf32>
    %c40 = arith.constant 40 : index
    %c0_113 = arith.constant 0 : index
    %c0_114 = arith.constant 0 : index
    %576 = vector.load %arg4[%c40, %c0_113, %c0_114] : memref<49x2x256xf32, #tpu.memory_space<vmem>>, vector<1x2x256xf32>
    %577 = vector.shape_cast %576 : vector<1x2x256xf32> to vector<2x256xf32>
    %578 = vector.extract_strided_slice %577 {offsets = [0, 0], sizes = [1, 256], strides = [1, 1]} : vector<2x256xf32> to vector<1x256xf32>
    %579 = vector.extract_strided_slice %575 {offsets = [0, 0], sizes = [2, 256], strides = [1, 1]} : vector<4x256xf32> to vector<2x256xf32>
    %580 = vector.broadcast %578 : vector<1x256xf32> to vector<2x256xf32>
    %581 = arith.mulf %580, %579 : vector<2x256xf32>
    %582 = arith.addf %569, %581 : vector<2x256xf32>
    %583 = vector.extract_strided_slice %577 {offsets = [1, 0], sizes = [1, 256], strides = [1, 1]} : vector<2x256xf32> to vector<1x256xf32>
    %584 = vector.extract_strided_slice %575 {offsets = [2, 0], sizes = [2, 256], strides = [1, 1]} : vector<4x256xf32> to vector<2x256xf32>
    %585 = vector.broadcast %583 : vector<1x256xf32> to vector<2x256xf32>
    %586 = arith.mulf %585, %584 : vector<2x256xf32>
    %587 = arith.addf %574, %586 : vector<2x256xf32>
    %c221_i32 = arith.constant 221 : i32
    %588 = tpu.dynamic_rotate %53 by %c221_i32 dim 1 : vector<4x256xf32>, i32 -> vector<4x256xf32>
    %c41 = arith.constant 41 : index
    %c0_115 = arith.constant 0 : index
    %c0_116 = arith.constant 0 : index
    %589 = vector.load %arg4[%c41, %c0_115, %c0_116] : memref<49x2x256xf32, #tpu.memory_space<vmem>>, vector<1x2x256xf32>
    %590 = vector.shape_cast %589 : vector<1x2x256xf32> to vector<2x256xf32>
    %591 = vector.extract_strided_slice %590 {offsets = [0, 0], sizes = [1, 256], strides = [1, 1]} : vector<2x256xf32> to vector<1x256xf32>
    %592 = vector.extract_strided_slice %588 {offsets = [0, 0], sizes = [2, 256], strides = [1, 1]} : vector<4x256xf32> to vector<2x256xf32>
    %593 = vector.broadcast %591 : vector<1x256xf32> to vector<2x256xf32>
    %594 = arith.mulf %593, %592 : vector<2x256xf32>
    %595 = arith.addf %582, %594 : vector<2x256xf32>
    %596 = vector.extract_strided_slice %590 {offsets = [1, 0], sizes = [1, 256], strides = [1, 1]} : vector<2x256xf32> to vector<1x256xf32>
    %597 = vector.extract_strided_slice %588 {offsets = [2, 0], sizes = [2, 256], strides = [1, 1]} : vector<4x256xf32> to vector<2x256xf32>
    %598 = vector.broadcast %596 : vector<1x256xf32> to vector<2x256xf32>
    %599 = arith.mulf %598, %597 : vector<2x256xf32>
    %600 = arith.addf %587, %599 : vector<2x256xf32>
    %c211_i32 = arith.constant 211 : i32
    %601 = tpu.dynamic_rotate %53 by %c211_i32 dim 1 : vector<4x256xf32>, i32 -> vector<4x256xf32>
    %c42 = arith.constant 42 : index
    %c0_117 = arith.constant 0 : index
    %c0_118 = arith.constant 0 : index
    %602 = vector.load %arg4[%c42, %c0_117, %c0_118] : memref<49x2x256xf32, #tpu.memory_space<vmem>>, vector<1x2x256xf32>
    %603 = vector.shape_cast %602 : vector<1x2x256xf32> to vector<2x256xf32>
    %604 = vector.extract_strided_slice %603 {offsets = [0, 0], sizes = [1, 256], strides = [1, 1]} : vector<2x256xf32> to vector<1x256xf32>
    %605 = vector.extract_strided_slice %601 {offsets = [0, 0], sizes = [2, 256], strides = [1, 1]} : vector<4x256xf32> to vector<2x256xf32>
    %606 = vector.broadcast %604 : vector<1x256xf32> to vector<2x256xf32>
    %607 = arith.mulf %606, %605 : vector<2x256xf32>
    %608 = arith.addf %595, %607 : vector<2x256xf32>
    %609 = vector.extract_strided_slice %603 {offsets = [1, 0], sizes = [1, 256], strides = [1, 1]} : vector<2x256xf32> to vector<1x256xf32>
    %610 = vector.extract_strided_slice %601 {offsets = [2, 0], sizes = [2, 256], strides = [1, 1]} : vector<4x256xf32> to vector<2x256xf32>
    %611 = vector.broadcast %609 : vector<1x256xf32> to vector<2x256xf32>
    %612 = arith.mulf %611, %610 : vector<2x256xf32>
    %613 = arith.addf %600, %612 : vector<2x256xf32>
    %c210_i32 = arith.constant 210 : i32
    %614 = tpu.dynamic_rotate %53 by %c210_i32 dim 1 : vector<4x256xf32>, i32 -> vector<4x256xf32>
    %c43 = arith.constant 43 : index
    %c0_119 = arith.constant 0 : index
    %c0_120 = arith.constant 0 : index
    %615 = vector.load %arg4[%c43, %c0_119, %c0_120] : memref<49x2x256xf32, #tpu.memory_space<vmem>>, vector<1x2x256xf32>
    %616 = vector.shape_cast %615 : vector<1x2x256xf32> to vector<2x256xf32>
    %617 = vector.extract_strided_slice %616 {offsets = [0, 0], sizes = [1, 256], strides = [1, 1]} : vector<2x256xf32> to vector<1x256xf32>
    %618 = vector.extract_strided_slice %614 {offsets = [0, 0], sizes = [2, 256], strides = [1, 1]} : vector<4x256xf32> to vector<2x256xf32>
    %619 = vector.broadcast %617 : vector<1x256xf32> to vector<2x256xf32>
    %620 = arith.mulf %619, %618 : vector<2x256xf32>
    %621 = arith.addf %608, %620 : vector<2x256xf32>
    %622 = vector.extract_strided_slice %616 {offsets = [1, 0], sizes = [1, 256], strides = [1, 1]} : vector<2x256xf32> to vector<1x256xf32>
    %623 = vector.extract_strided_slice %614 {offsets = [2, 0], sizes = [2, 256], strides = [1, 1]} : vector<4x256xf32> to vector<2x256xf32>
    %624 = vector.broadcast %622 : vector<1x256xf32> to vector<2x256xf32>
    %625 = arith.mulf %624, %623 : vector<2x256xf32>
    %626 = arith.addf %613, %625 : vector<2x256xf32>
    %c209_i32 = arith.constant 209 : i32
    %627 = tpu.dynamic_rotate %53 by %c209_i32 dim 1 : vector<4x256xf32>, i32 -> vector<4x256xf32>
    %c44 = arith.constant 44 : index
    %c0_121 = arith.constant 0 : index
    %c0_122 = arith.constant 0 : index
    %628 = vector.load %arg4[%c44, %c0_121, %c0_122] : memref<49x2x256xf32, #tpu.memory_space<vmem>>, vector<1x2x256xf32>
    %629 = vector.shape_cast %628 : vector<1x2x256xf32> to vector<2x256xf32>
    %630 = vector.extract_strided_slice %629 {offsets = [0, 0], sizes = [1, 256], strides = [1, 1]} : vector<2x256xf32> to vector<1x256xf32>
    %631 = vector.extract_strided_slice %627 {offsets = [0, 0], sizes = [2, 256], strides = [1, 1]} : vector<4x256xf32> to vector<2x256xf32>
    %632 = vector.broadcast %630 : vector<1x256xf32> to vector<2x256xf32>
    %633 = arith.mulf %632, %631 : vector<2x256xf32>
    %634 = arith.addf %621, %633 : vector<2x256xf32>
    %635 = vector.extract_strided_slice %629 {offsets = [1, 0], sizes = [1, 256], strides = [1, 1]} : vector<2x256xf32> to vector<1x256xf32>
    %636 = vector.extract_strided_slice %627 {offsets = [2, 0], sizes = [2, 256], strides = [1, 1]} : vector<4x256xf32> to vector<2x256xf32>
    %637 = vector.broadcast %635 : vector<1x256xf32> to vector<2x256xf32>
    %638 = arith.mulf %637, %636 : vector<2x256xf32>
    %639 = arith.addf %626, %638 : vector<2x256xf32>
    %c208_i32 = arith.constant 208 : i32
    %640 = tpu.dynamic_rotate %53 by %c208_i32 dim 1 : vector<4x256xf32>, i32 -> vector<4x256xf32>
    %c45 = arith.constant 45 : index
    %c0_123 = arith.constant 0 : index
    %c0_124 = arith.constant 0 : index
    %641 = vector.load %arg4[%c45, %c0_123, %c0_124] : memref<49x2x256xf32, #tpu.memory_space<vmem>>, vector<1x2x256xf32>
    %642 = vector.shape_cast %641 : vector<1x2x256xf32> to vector<2x256xf32>
    %643 = vector.extract_strided_slice %642 {offsets = [0, 0], sizes = [1, 256], strides = [1, 1]} : vector<2x256xf32> to vector<1x256xf32>
    %644 = vector.extract_strided_slice %640 {offsets = [0, 0], sizes = [2, 256], strides = [1, 1]} : vector<4x256xf32> to vector<2x256xf32>
    %645 = vector.broadcast %643 : vector<1x256xf32> to vector<2x256xf32>
    %646 = arith.mulf %645, %644 : vector<2x256xf32>
    %647 = arith.addf %634, %646 : vector<2x256xf32>
    %648 = vector.extract_strided_slice %642 {offsets = [1, 0], sizes = [1, 256], strides = [1, 1]} : vector<2x256xf32> to vector<1x256xf32>
    %649 = vector.extract_strided_slice %640 {offsets = [2, 0], sizes = [2, 256], strides = [1, 1]} : vector<4x256xf32> to vector<2x256xf32>
    %650 = vector.broadcast %648 : vector<1x256xf32> to vector<2x256xf32>
    %651 = arith.mulf %650, %649 : vector<2x256xf32>
    %652 = arith.addf %639, %651 : vector<2x256xf32>
    %c207_i32 = arith.constant 207 : i32
    %653 = tpu.dynamic_rotate %53 by %c207_i32 dim 1 : vector<4x256xf32>, i32 -> vector<4x256xf32>
    %c46 = arith.constant 46 : index
    %c0_125 = arith.constant 0 : index
    %c0_126 = arith.constant 0 : index
    %654 = vector.load %arg4[%c46, %c0_125, %c0_126] : memref<49x2x256xf32, #tpu.memory_space<vmem>>, vector<1x2x256xf32>
    %655 = vector.shape_cast %654 : vector<1x2x256xf32> to vector<2x256xf32>
    %656 = vector.extract_strided_slice %655 {offsets = [0, 0], sizes = [1, 256], strides = [1, 1]} : vector<2x256xf32> to vector<1x256xf32>
    %657 = vector.extract_strided_slice %653 {offsets = [0, 0], sizes = [2, 256], strides = [1, 1]} : vector<4x256xf32> to vector<2x256xf32>
    %658 = vector.broadcast %656 : vector<1x256xf32> to vector<2x256xf32>
    %659 = arith.mulf %658, %657 : vector<2x256xf32>
    %660 = arith.addf %647, %659 : vector<2x256xf32>
    %661 = vector.extract_strided_slice %655 {offsets = [1, 0], sizes = [1, 256], strides = [1, 1]} : vector<2x256xf32> to vector<1x256xf32>
    %662 = vector.extract_strided_slice %653 {offsets = [2, 0], sizes = [2, 256], strides = [1, 1]} : vector<4x256xf32> to vector<2x256xf32>
    %663 = vector.broadcast %661 : vector<1x256xf32> to vector<2x256xf32>
    %664 = arith.mulf %663, %662 : vector<2x256xf32>
    %665 = arith.addf %652, %664 : vector<2x256xf32>
    %c206_i32 = arith.constant 206 : i32
    %666 = tpu.dynamic_rotate %53 by %c206_i32 dim 1 : vector<4x256xf32>, i32 -> vector<4x256xf32>
    %c47 = arith.constant 47 : index
    %c0_127 = arith.constant 0 : index
    %c0_128 = arith.constant 0 : index
    %667 = vector.load %arg4[%c47, %c0_127, %c0_128] : memref<49x2x256xf32, #tpu.memory_space<vmem>>, vector<1x2x256xf32>
    %668 = vector.shape_cast %667 : vector<1x2x256xf32> to vector<2x256xf32>
    %669 = vector.extract_strided_slice %668 {offsets = [0, 0], sizes = [1, 256], strides = [1, 1]} : vector<2x256xf32> to vector<1x256xf32>
    %670 = vector.extract_strided_slice %666 {offsets = [0, 0], sizes = [2, 256], strides = [1, 1]} : vector<4x256xf32> to vector<2x256xf32>
    %671 = vector.broadcast %669 : vector<1x256xf32> to vector<2x256xf32>
    %672 = arith.mulf %671, %670 : vector<2x256xf32>
    %673 = arith.addf %660, %672 : vector<2x256xf32>
    %674 = vector.extract_strided_slice %668 {offsets = [1, 0], sizes = [1, 256], strides = [1, 1]} : vector<2x256xf32> to vector<1x256xf32>
    %675 = vector.extract_strided_slice %666 {offsets = [2, 0], sizes = [2, 256], strides = [1, 1]} : vector<4x256xf32> to vector<2x256xf32>
    %676 = vector.broadcast %674 : vector<1x256xf32> to vector<2x256xf32>
    %677 = arith.mulf %676, %675 : vector<2x256xf32>
    %678 = arith.addf %665, %677 : vector<2x256xf32>
    %c205_i32 = arith.constant 205 : i32
    %679 = tpu.dynamic_rotate %53 by %c205_i32 dim 1 : vector<4x256xf32>, i32 -> vector<4x256xf32>
    %c48 = arith.constant 48 : index
    %c0_129 = arith.constant 0 : index
    %c0_130 = arith.constant 0 : index
    %680 = vector.load %arg4[%c48, %c0_129, %c0_130] : memref<49x2x256xf32, #tpu.memory_space<vmem>>, vector<1x2x256xf32>
    %681 = vector.shape_cast %680 : vector<1x2x256xf32> to vector<2x256xf32>
    %682 = vector.extract_strided_slice %681 {offsets = [0, 0], sizes = [1, 256], strides = [1, 1]} : vector<2x256xf32> to vector<1x256xf32>
    %683 = vector.extract_strided_slice %679 {offsets = [0, 0], sizes = [2, 256], strides = [1, 1]} : vector<4x256xf32> to vector<2x256xf32>
    %684 = vector.broadcast %682 : vector<1x256xf32> to vector<2x256xf32>
    %685 = arith.mulf %684, %683 : vector<2x256xf32>
    %686 = arith.addf %673, %685 : vector<2x256xf32>
    %687 = vector.extract_strided_slice %681 {offsets = [1, 0], sizes = [1, 256], strides = [1, 1]} : vector<2x256xf32> to vector<1x256xf32>
    %688 = vector.extract_strided_slice %679 {offsets = [2, 0], sizes = [2, 256], strides = [1, 1]} : vector<4x256xf32> to vector<2x256xf32>
    %689 = vector.broadcast %687 : vector<1x256xf32> to vector<2x256xf32>
    %690 = arith.mulf %689, %688 : vector<2x256xf32>
    %691 = arith.addf %678, %690 : vector<2x256xf32>
    %692 = arith.addf %686, %691 : vector<2x256xf32>
    %693 = arith.negf %692 : vector<2x256xf32>
    %694 = math.exp %693 : vector<2x256xf32>
    %cst_131 = arith.constant 1.000000e+00 : f32
    %695 = vector.broadcast %cst_131 : f32 to vector<2x256xf32>
    %696 = arith.addf %695, %694 : vector<2x256xf32>
    %697 = arith.divf %695, %696 : vector<2x256xf32>
    %698 = vector.extract_strided_slice %697 {offsets = [0, 0], sizes = [1, 256], strides = [1, 1]} : vector<2x256xf32> to vector<1x256xf32>
    %699 = vector.broadcast %698 : vector<1x256xf32> to vector<32x256xf32>
    %700 = arith.mulf %35, %699 : vector<32x256xf32>
    %c0_132 = arith.constant 0 : index
    %c0_133 = arith.constant 0 : index
    %c0_134 = arith.constant 0 : index
    %701 = vector.load %arg5[%c0_132, %c0_133, %c0_134] : memref<2x32x256xf32, #tpu.memory_space<vmem>>, vector<1x32x256xf32>
    %702 = vector.shape_cast %701 : vector<1x32x256xf32> to vector<32x256xf32>
    %703 = vector.shape_cast %700 : vector<32x256xf32> to vector<1x32x256xf32>
    tpu.vector_store %arg5[%c0_132, %c0_133, %c0_134], %703 {strides = array<i32>} : memref<2x32x256xf32, #tpu.memory_space<vmem>>, vector<1x32x256xf32>,
    %704 = vector.extract_strided_slice %697 {offsets = [1, 0], sizes = [1, 256], strides = [1, 1]} : vector<2x256xf32> to vector<1x256xf32>
    %705 = vector.broadcast %704 : vector<1x256xf32> to vector<32x256xf32>
    %706 = arith.mulf %46, %705 : vector<32x256xf32>
    %c1_135 = arith.constant 1 : index
    %c0_136 = arith.constant 0 : index
    %c0_137 = arith.constant 0 : index
    %707 = vector.load %arg5[%c1_135, %c0_136, %c0_137] : memref<2x32x256xf32, #tpu.memory_space<vmem>>, vector<1x32x256xf32>
    %708 = vector.shape_cast %707 : vector<1x32x256xf32> to vector<32x256xf32>
    %709 = vector.shape_cast %706 : vector<32x256xf32> to vector<1x32x256xf32>
    tpu.vector_store %arg5[%c1_135, %c0_136, %c0_137], %709 {strides = array<i32>} : memref<2x32x256xf32, #tpu.memory_space<vmem>>, vector<1x32x256xf32>,
    return
  }
  func.func @transform_0(%arg0: i32) -> (i32, i32, i32) {
    %c0_i32 = arith.constant 0 : i32
    %c0_i32_0 = arith.constant 0 : i32
    %c0_i32_1 = arith.constant 0 : i32
    return %arg0, %c0_i32, %c0_i32_0 : i32, i32, i32
  }
  func.func @transform_1(%arg0: i32) -> (i32, i32) {
    %c0_i32 = arith.constant 0 : i32
    %c0_i32_0 = arith.constant 0 : i32
    %c0_i32_1 = arith.constant 0 : i32
    return %c0_i32, %c0_i32_0 : i32, i32
  }
  func.func @transform_2(%arg0: i32) -> (i32, i32) {
    %c0_i32 = arith.constant 0 : i32
    %c0_i32_0 = arith.constant 0 : i32
    %c0_i32_1 = arith.constant 0 : i32
    return %c0_i32, %c0_i32_0 : i32, i32
  }
  func.func @transform_3(%arg0: i32) -> (i32, i32, i32) {
    %c0_i32 = arith.constant 0 : i32
    %c0_i32_0 = arith.constant 0 : i32
    %c0_i32_1 = arith.constant 0 : i32
    %c0_i32_2 = arith.constant 0 : i32
    return %c0_i32, %c0_i32_0, %c0_i32_1 : i32, i32, i32
  }
  func.func @transform_4(%arg0: i32) -> (i32, i32, i32) {
    %c0_i32 = arith.constant 0 : i32
    %c0_i32_0 = arith.constant 0 : i32
    %c0_i32_1 = arith.constant 0 : i32
    return %arg0, %c0_i32, %c0_i32_0 : i32, i32, i32
  }
}

</mosaic_0001>

<bundles_post_ra>
// kernel: tpu_custom_call.1
= control target key start
LH: loop header
LB: loop body
LE: loop exit
PB: predicated region body
PF: predicated region fallthrough
CT: control target
= control target key end

     0   :  { %9 = vsyncpa [#allocation3], 0  ;;  %s5951_s0 = inlined_call_operand.hbm [shape: f32[4,32,256], index: 0, kind: input, shape index: {}]   ;;  %s5952_s1 = inlined_call_operand.vmem [shape: f32[2,32], index: 1, kind: input, shape index: {}]   ;;  %s5953_s2 = inlined_call_operand.vmem [shape: f32[32,2], index: 2, kind: input, shape index: {}]   ;;  %s5954_s3 = inlined_call_operand.hbm [shape: f32[49,2,256], index: 3, kind: input, shape index: {}]   ;;  %s5955_s4 = inlined_call_operand.hbm [shape: f32[4,32,256], index: 4, kind: output, shape index: {}]  }
   0x1   :  { %11 = vsyncpa [#allocation3 + $0x1], 0 }
   0x2   :  { %12 = vsyncpa [#allocation6], 0 }
   0x3   :  { %13 = vsyncpa [#allocation4], 0 }
   0x4   :  { %15 = vsyncpa [#allocation4 + $0x1], 0  ;;  %s3938_s15 = smov 0   ;;  %s3940_s16 = smov 0  }
   0x5   :  { %s3942_s17 = smov 0   ;;  %s3944_s18 = smov 0  }
   0x6 LB: > { %s3959_s19 = sadd.s32 4294967295, %s3850_s18   ;;  %s3490_s20 = sadd.s32 4294967294, %s3850_s18   ;;  %s3850_s18 = sphi %s3944_s18, %s6249_s18   ;;  %s3846_s17 = sphi %s3942_s17, %s6248_s17   ;;  %s3842_s16 = sphi %s3940_s16, %s6247_s16   ;;  %s3838_s15 = sphi %s3938_s15, %s6246_s15  }
   0x7   : > { %p41_p0 = scmp.ne.s32.totalorder %s3842_s16, %s3838_s15  ;;  %p5956_p1 = scmp.eq.s32.totalorder %s3959_s19, 0 }
   0x8   : > { %p134_p3 = scmp.eq.s32.totalorder %s3490_s20, 1  ;;  %p3491_p5 = scmp.ge.s32.totalorder %s3850_s18, 1 }
   0x9   : > { %p3968_p4 = por %p5956_p1, %p41_p0  ;;  %p141_p7 = scmp.lt.s32.totalorder %s3850_s18, 3 }
   0xa   : > { %p3973_p6 = por %p134_p3, %p41_p0  ;;  %s3852_s24 = smov [#allocation5]  }
   0xb   : > { %s5979_s21 = scalar_select %p3968_p4, 1, 0 }
   0xc   : > { %s5980_s22 = scalar_select %p3973_p6, 1, 0 }
   0xd   : > { %p3978_p8 = pnand %p3491_p5, %p141_p7  ;;  %s159_s25 = sshll.u32 %s3852_s24, 4  ;;  %s3982_s25 = int_to_ptr.vmem [resolvable:$true] %s159_s25 }
   0xe   : > { %s3994_s27 = sadd.s32 1, %s3850_s18   ;;  %s28_s28 = sadd.s32 1, %s3846_s17 }
   0xf   : > { %s5981_s23 = scalar_select %p3978_p8, 1, 0 }
  0x10   : > { %p3583_p9 = pneg %p3978_p8  ;;  %s25_s29 = ssub.s32 %s3850_s18, %s3994_s27 }
  0x11   : > { %s3722_s6 = scalar_lea.hbm %s5954_s3, 3136 }
  0x12   : > { %p3989_p11 = pnand %p3583_p9, %p5956_p1  ;;  %p3723_p12 = scmp.ne.s32.totalorder %s5954_s3, %s3722_s6 }
  0x13   : > { %p3729_p5 = scmp.lt.u32.totalorder %s3722_s6, %s5954_s3 }
  0x14   : > { %p3724_p13 = pneg %p3989_p11 }
  0x16   : > { %p3725_p0 = pnand %p3724_p13, %p3723_p12 }
  0x18   : > { %p3726_p3 = pneg %p3725_p0 }
  0x1a   : > { %p3731_p7 = pnand %p3729_p5, %p3726_p3 }
  0x1c   : > { %3734 = shalt.err (!%p3731_p7)
}
  0x1d   : > { %s3735_s11 = scalar_lea.vmem %s3982_s25, 3136  ;;  %p3743_p2 = scmp.lt.s32.totalorder %s3982_s25, %s3982_s25 }
  0x1e   : > { %p3736_p9 = scmp.ne.s32.totalorder %s3982_s25, %s3735_s11  ;;  %p3744_p6 = scmp.lt.s32.totalorder %s3735_s11, %s3735_s11 }
  0x20   : > { %p3738_p10 = pnand %p3736_p9, %p3724_p13  ;;  %p3745_p4 = por %p3744_p6, %p3743_p2 }
  0x22   : > { %p3739_p1 = pneg %p3738_p10 }
  0x24   : > { %p3746_p8 = pnand %p3745_p4, %p3739_p1 }
  0x26   : > { %3749 = shalt.err (!%p3746_p8)
}
  0x27   : > { %s3853_s12 = smov 64   ;;  %s3854_s13 = smov 4  }
  0x28   : > { %3586 = dma.hbm_to_vmem [thread:$0]  (!%p3989_p11), %s5954_s3, 3136, %s3982_s25, [#allocation6], %s3853_s12, %s3853_s12, %s3854_s13  }
  0x29   : > { %p26_p2 = scmp.eq.s32.totalorder %s25_s29, 0  ;;  %p35_p1 = scmp.ne.s32.totalorder %s3846_s17, %s3842_s16 }
  0x2a   : > { %p36_p4 = scmp.eq.s32.totalorder %s3850_s18, 0  ;;  %p3596_p6 = scmp.lt.s32.totalorder %s3850_s18, 2 }
  0x2b   : > { %s4025_s24 = scalar_select %p26_p2, %s3846_s17, %s28_s28  }
  0x2c   : > { %p37_p8 = por %p36_p4, %p35_p1  ;;  %p5983_p10 = scmp.eq.s32.totalorder %s3959_s19, 1 }
  0x2d   : > { %s173_s5 = sand.u32 1, %s3846_s17   ;;  %s3537_s6 = sshll.u32 %s3850_s18, 11 }
  0x2e   : > { %p4029_p12 = por %p5983_p10, %p35_p1  ;;  %s3494_s7 = sshll.u32 %s173_s5, 7 }
  0x2f   : > { %s4038_s9 = scalar_lea.hbm %s5951_s0, %s3537_s6  ;;  %s177_s25 = scalar_lea.vmem [#allocation2], %s3494_s7 }
  0x30   : > { %s185_s28 = sshll.u32 %s177_s25, 4  ;;  %p4040_p11 = pnand %p3596_p6, %p37_p8  ;;  %s4044_s28 = int_to_ptr.vmem [resolvable:$true] %s185_s28 }
  0x31   : > { %s4046_s10 = scalar_lea.sflag [#allocation3], %s173_s5  ;;  %s3750_s11 = scalar_lea.hbm %s4038_s9, 2048 }
  0x32   : > { %p3751_p13 = scmp.ne.s32.totalorder %s4038_s9, %s3750_s11  ;;  %p3752_p0 = pneg %p4040_p11 }
  0x33   : > { %s3755_s14 = scalar_lea.hbm %s5951_s0, 4096  ;;  %p3756_p7 = scmp.lt.u32.totalorder %s4038_s9, %s5951_s0 }
  0x34   : > { %p3753_p3 = pnand %p3752_p0, %p3751_p13  ;;  %p3757_p9 = scmp.lt.u32.totalorder %s3755_s14, %s3750_s11 }
  0x35   : > { %p3759_p1 = scmp.lt.u32.totalorder %s3750_s11, %s4038_s9 }
  0x36   : > { %p3754_p5 = pneg %p3753_p3  ;;  %p3758_p2 = por %p3757_p9, %p3756_p7 }
  0x38   : > { %p3760_p4 = por %p3759_p1, %p3758_p2 }
  0x3a   : > { %p3761_p6 = pnand %p3760_p4, %p3754_p5 }
  0x3c   : > { %3764 = shalt.err (!%p3761_p6)
}
  0x3d   : > { %s3765_s5 = scalar_lea.vmem %s4044_s28, 2048  ;;  %s3855_s7 = smov [#allocation2]  }
  0x3e   : > { %p3766_p8 = scmp.ne.s32.totalorder %s4044_s28, %s3765_s5  ;;  %s3770_s26 = sshll.u32 %s3855_s7, 4  ;;  %s3771_s26 = int_to_ptr.vmem [resolvable:$false] %s3770_s26 }
  0x3f   : > { %s3772_s8 = scalar_lea.vmem %s3771_s26, 4096  ;;  %p3773_p3 = scmp.lt.s32.totalorder %s4044_s28, %s3771_s26 }
  0x40   : > { %p3768_p10 = pnand %p3766_p8, %p3752_p0  ;;  %p3774_p7 = scmp.lt.s32.totalorder %s3772_s8, %s3765_s5 }
  0x42   : > { %p3769_p13 = pneg %p3768_p10  ;;  %p3775_p9 = por %p3774_p7, %p3773_p3 }
  0x44   : > { %p3776_p2 = pnand %p3775_p9, %p3769_p13 }
  0x46   : > { %3779 = shalt.err (!%p3776_p2)
}
  0x47   : > { %s3856_s25 = smov 256   ;;  %s3857_s11 = smov 16  }
  0x48   : > { %3590 = dma.hbm_to_vmem [thread:$0]  (!%p4040_p11), %s4038_s9, 2048, %s4044_s28, %s4046_s10, %s3856_s25, %s3856_s25, %s3857_s11  }
  0x49   : > { %p5986_p0 = scmp.ne.s32.totalorder %s5981_s23, 0 }
  0x4b   : > { %197 = sbr.rel (%p5986_p0) target bundleno = 1390 (0x56e), region = 36 }
  0x52   : > { %s4077_s12 = sand.u32 1, %s3842_s16   ;;  %p5987_p5 = scmp.ne.s32.totalorder %s5979_s21, 0 }
  0x53   : > { %s3499_s13 = sshll.u32 %s4077_s12, 7  ;;  %s200_s14 = scalar_lea.sflag [#allocation3], %s4077_s12 }
  0x54   : > { %s4083_s20 = scalar_lea.vmem [#allocation2], %s3499_s13 }
  0x55   : > { %3825 = dma.done.wait (%p5987_p5), %s200_s14, 2048  }
  0x56   : > { %3827 = vsyncadd (%p5987_p5), %s200_s14, 4294965248  ;;  %p5988_p11 = scmp.eq.s32.totalorder %s3959_s19, 0 }
  0x58   : > { %3829 = dma.done.wait (%p5988_p11), [#allocation6], 3136   ;;  %p5989_p1 = pmov %p5988_p11 }
  0x59   : > { %v4094_v0 = vld [vmem:[%s4083_s20] sm:$0xff]  ;;  %v4097_v1 = vld [vmem:[%s4083_s20 + $0x8] sm:$0xff]  ;;  %v4100_v2 = vld [vmem:[%s4083_s20 + $0x10] sm:$0xff]  ;;  %v3858_v32 = vmov 0.0|0.0   ;;  %vm3859_vm0 = vmmov 0   ;;  %v3860_v33 = vmov 0.0  }
  0x5a   : > { %3831 = vsyncadd (%p5989_p1), [#allocation6], 4294964160  ;;  %v254_v3 = vadd.f32 %v4097_v1, %v4094_v0  ;;  %v242_v4 = vmax.f32 %v4094_v0, %v4097_v1  ;;  %v4107_v5 = vld [vmem:[%s4083_s20 + $0x18] sm:$0xff]  ;;  %v4114_v8 = vld [vmem:[%s4083_s20 + $0x40] sm:$0xff]  ;;  %3569 = vmatprep.subr.bf16.mxu0 %v3858_v32  ;;  %3558 = vmatprep.mubr.msk.f32.mxu0 %vm3859_vm0, %v3860_v33  ;;  %vm307_vm1 = vcmask 7168   ;;  %vm312_vm2 = vcmask 15360  }
  0x5b   : > { %v257_v6 = vadd.f32 %v4107_v5, %v4100_v2  ;;  %v245_v7 = vmax.f32 %v4100_v2, %v4107_v5  ;;  %v4117_v9 = vld [vmem:[%s4083_s20 + $0x48] sm:$0xff]  ;;  %v4120_v10 = vld [vmem:[%s4083_s20 + $0x50] sm:$0xff]  ;;  %v4123_v11 = vld [vmem:[%s4083_s20 + $0x58] sm:$0xff]  ;;  %vm317_vm3 = vcmask 23552   ;;  %vm323_vm4 = vcmask 261120   ;;  %s3861_s8 = smov 126  }
  0x5c   : > { %255 = vadd.xlane.f32.xlu0 %v254_v3  ;;  %243 = vmax.xlane.f32.xlu1 %v242_v4  ;;  %v279_v12 = vmax.f32 %v4114_v8, %v4117_v9  ;;  %v282_v13 = vmax.f32 %v4120_v10, %v4123_v11  ;;  %v291_v14 = vadd.f32 %v4117_v9, %v4114_v8  ;;  %v4134_v16 = vld [vmem:[%s4083_s20 + $0x20] sm:$0xff]  ;;  %v4137_v17 = vld [vmem:[%s4083_s20 + $0x28] sm:$0xff]  ;;  %v4140_v18 = vld [vmem:[%s4083_s20 + $0x30] sm:$0xff]  ;;  %vm414_vm5 = vcmask 1041408   ;;  %s3864_s25 = smov 51   ;;  %s3865_s11 = smov 50  }
  0x5d   : > { %v294_v15 = vadd.f32 %v4123_v11, %v4120_v10  ;;  %v4143_v19 = vld [vmem:[%s4083_s20 + $0x38] sm:$0xff]  ;;  %v260_v20 = vadd.f32 %v4137_v17, %v4134_v16  ;;  %v248_v22 = vmax.f32 %v4134_v16, %v4137_v17  ;;  %v4154_v24 = vld [vmem:[%s4083_s20 + $0x60] sm:$0xff]  ;;  %v4157_v25 = vld [vmem:[%s4083_s20 + $0x68] sm:$0xff]  ;;  %vm675_vm6 = vcmask 1040384   ;;  %s3866_s14 = smov 49   ;;  %s3868_s21 = smov 47  }
  0x5e   : > { %v263_v21 = vadd.f32 %v4143_v19, %v4140_v18  ;;  %v251_v23 = vmax.f32 %v4140_v18, %v4143_v19  ;;  %v4160_v26 = vld [vmem:[%s4083_s20 + $0x70] sm:$0xff]  ;;  %v4163_v27 = vld [vmem:[%s4083_s20 + $0x78] sm:$0xff]  ;;  %v285_v28 = vmax.f32 %v4154_v24, %v4157_v25  ;;  %v297_v30 = vadd.f32 %v4157_v25, %v4154_v24  ;;  %s3867_s20 = smov 48   ;;  %s3869_s23 = smov 46  }
  0x5f   : > { %v288_v29 = vmax.f32 %v4160_v26, %v4163_v27  ;;  %v300_v31 = vadd.f32 %v4163_v27, %v4160_v26  ;;  %vm680_vm7 = vcmask 1042432   ;;  %s3870_s9 = smov 45   ;;  %s3871_s28 = smov 35  }
  0x60   : > { %258 = vadd.xlane.f32.xlu0 %v257_v6  ;;  %246 = vmax.xlane.f32.xlu1 %v245_v7  ;;  %s3872_s29 = smov 34   ;;  %s3873_s10 = smov 33  }
  0x61   : > { %s3874_s6 = smov 32   ;;  %s3875_s5 = smov 31  }
  0x62   : > { %s3876_s7 = smov 30   ;;  %s3877_s26 = smov 29  }
  0x64   : > { %280 = vmax.xlane.f32.xlu0 %v279_v12  ;;  %283 = vmax.xlane.f32.xlu1 %v282_v13 }
  0x68   : > { %292 = vadd.xlane.f32.xlu0 %v291_v14  ;;  %295 = vadd.xlane.f32.xlu1 %v294_v15 }
  0x6c   : > { %261 = vadd.xlane.f32.xlu0 %v260_v20  ;;  %264 = vadd.xlane.f32.xlu1 %v263_v21  ;;  %v322_v20 = vld [vmem:[%s5952_s1] sm:$0x3] }
  0x6d   : > { %v398_v21 = vld [vmem:[%s5953_s2] sm:$0xff] }
  0x6e   : > { %3563 = vmatprep.mubr.msk.f32.mxu1 %vm312_vm2, %v398_v21 }
  0x70   : > { %249 = vmax.xlane.f32.xlu0 %v248_v22  ;;  %252 = vmax.xlane.f32.xlu1 %v251_v23 }
  0x74   : > { %286 = vmax.xlane.f32.xlu0 %v285_v28  ;;  %289 = vmax.xlane.f32.xlu1 %v288_v29  ;;  %v399_v29 = vld [vmem:[%s5953_s2 + $0x8] sm:$0xff] }
  0x78   : > { %298 = vadd.xlane.f32.xlu0 %v297_v30  ;;  %301 = vadd.xlane.f32.xlu1 %v300_v31  ;;  %v400_v30 = vld [vmem:[%s5953_s2 + $0x10] sm:$0xff]  ;;  %v401_v31 = vld [vmem:[%s5953_s2 + $0x18] sm:$0xff] }
  0xe9   : > { %v256_v34 = vpop.xlane.xlu0 %255  ;;  %v244_v35 = vpop.xlane.xlu1 %243 }
  0xea   : > { %v266_v42 = vmul.f32 0.00390625, %v256_v34 }
  0xed   : > { %v259_v36 = vpop.xlane.xlu0 %258  ;;  %v247_v37 = vpop.xlane.xlu1 %246 }
  0xee   : > { %v267_v43 = vmul.f32 0.00390625, %v259_v36  ;;  %v3862_v36 = vmov 1  }
  0xef   : > { %3691 = vset.pattern.permute.xlu0 %v3862_v36 }
  0xf1   : > { %v281_v38 = vpop.xlane.xlu0 %280  ;;  %v284_v39 = vpop.xlane.xlu1 %283 }
  0xf2   : > { %v308_v40 = vsel %vm307_vm1, %v244_v35, %v281_v38  ;;  %v309_v41 = vsel %vm307_vm1, %v247_v37, %v284_v39  ;;  %v3863_v37 = vmov 0  }
  0xf3   : > { %v313_v48 = vsel %vm312_vm2, %v308_v40, %v266_v42  ;;  %v314_v49 = vsel %vm312_vm2, %v309_v41, %v267_v43  ;;  %3690 = vset.pattern.permute.xlu1 %v3863_v37 }
  0xf5   : > { %v293_v44 = vpop.xlane.xlu0 %292  ;;  %v296_v45 = vpop.xlane.xlu1 %295 }
  0xf6   : > { %v303_v46 = vmul.f32 0.00390625, %v293_v44  ;;  %v304_v47 = vmul.f32 0.00390625, %v296_v45 }
  0xf8   : > { %v318_v50 = vsel %vm317_vm3, %v313_v48, %v303_v46  ;;  %v319_v51 = vsel %vm317_vm3, %v314_v49, %v304_v47 }
  0xf9   : > { %v262_v52 = vpop.xlane.xlu0 %261  ;;  %v265_v53 = vpop.xlane.xlu1 %264  ;;  %v3570_v54 = vpack.c.bf16 %v319_v51, %v318_v50 }
  0xfa   : > { %v268_v61 = vmul.f32 0.00390625, %v262_v52  ;;  %v269_v62 = vmul.f32 0.00390625, %v265_v53 }
  0xfb   : > { %3571 = vmatpush3.bf16.msra.mxu0 %v3570_v54 }
  0xfc   : > { %3572 = vmatprep.subr.bf16.mxu0 %v3858_v32 }
  0xfd   : > { %v250_v55 = vpop.xlane.xlu0 %249  ;;  %v253_v56 = vpop.xlane.xlu1 %252 }
 0x101   : > { %v287_v57 = vpop.xlane.xlu0 %286  ;;  %v290_v58 = vpop.xlane.xlu1 %289 }
 0x102   : > { %v310_v59 = vsel %vm307_vm1, %v250_v55, %v287_v57  ;;  %v311_v60 = vsel %vm307_vm1, %v253_v56, %v290_v58 }
 0x103   : > { %v315_v7 = vsel %vm312_vm2, %v310_v59, %v268_v61  ;;  %v316_v12 = vsel %vm312_vm2, %v311_v60, %v269_v62 }
 0x105   : > { %v299_v63 = vpop.xlane.xlu0 %298  ;;  %v302_v3 = vpop.xlane.xlu1 %301 }
 0x106   : > { %v305_v4 = vmul.f32 0.00390625, %v299_v63  ;;  %v306_v6 = vmul.f32 0.00390625, %v302_v3 }
 0x108   : > { %v320_v13 = vsel %vm317_vm3, %v315_v7, %v305_v4  ;;  %v321_v14 = vsel %vm317_vm3, %v316_v12, %v306_v6 }
 0x109   : > { %v3573_v15 = vpack.c.bf16 %v321_v14, %v320_v13 }
 0x10b   : > { %3574 = vmatpush3.bf16.msra.mxu0 %v3573_v15 }
 0x10e   : > { %3559 = vmatmul.mubr.msk.f32.vlgmr.msra.gmra.mrb[0].mxu0 %vm323_vm4, %v322_v20 }
 0x1e1   : > { %v393_v22 = vpop.f32.mrb[0].mxu0 }
 0x1e2   : > { %v397_v23 = vmax.f32 %v393_v22, 0.0  ;;  %v3560_v28 = vpop.f32.mrb[1].mxu0 }
 0x1e4   : > { %3561 = vmatprep.subr.msk.mxu1 %vm414_vm5, %v397_v23 }
 0x1e5   : > { %3562 = vmatpush3.msk.msra.mxu1 %vm414_vm5, %v397_v23 }
 0x1e6   : > { %3564 = vmatmul.mubr.msk.f32.vlgmr.msra.gmra.mrb[0].mxu1 %vm312_vm2, %v399_v29 }
 0x1e7   : > { %3566 = vmatprep.mubr.msk.f32.mxu1 %vm312_vm2, %v400_v30 }
 0x1ea   : > { %3567 = vmatmul.mubr.msk.f32.gmra.mrb[2].mxu1 %vm312_vm2, %v401_v31 }
 0x2b9   : > { %v3565_v32 = vpop.f32.mrb[0].mxu1 }
 0x2ba   : > { %509 = vrot.lane.b32.xlu1 %v3565_v32, %s3861_s8  ;;  %v484_v33 = vpop.f32.mrb[1].mxu1 }
 0x2bb   : > { %507 = vrot.lane.b32.xlu0 %v484_v33, %s3861_s8 }
 0x2bd   : > { %v3568_v34 = vpop.f32.mrb[2].mxu1 }
 0x2be   : > { %v494_v35 = vpop.f32.mrb[3].mxu1 }
 0x2bf   : > { %511 = vrot.lane.b32.xlu1 %v494_v35, %s3861_s8 }
 0x2c3   : > { %513 = vrot.lane.b32.xlu1 %v3568_v34, %s3861_s8 }
 0x32c   : > { %v510_v38 = vpop.permute.xlu1 %509 }
 0x32d   : > { %v520_v39 = vadd.f32 %v3565_v32, %v510_v38  ;;  %v508_v40 = vpop.permute.xlu0 %507 }
 0x32e   : > { %v519_v41 = vadd.f32 %v508_v40, %v484_v33 }
 0x32f   : > { %v3517_v42 = vmul.f32 -1.442695, %v520_v39 }
 0x330   : > { %v3516_v43 = vmul.f32 -1.442695, %v519_v41 }
 0x331   : > { %3698 = vpow2.f32 %v3517_v42  ;;  %v512_v44 = vpop.permute.xlu1 %511 }
 0x332   : > { %3700 = vpow2.f32 %v3516_v43  ;;  %v521_v45 = vadd.f32 %v512_v44, %v494_v35 }
 0x334   : > { %v3518_v46 = vmul.f32 -1.442695, %v521_v45 }
 0x335   : > { %v514_v47 = vpop.permute.xlu1 %513 }
 0x336   : > { %v522_v48 = vadd.f32 %v3568_v34, %v514_v47  ;;  %3702 = vpow2.f32 %v3518_v46 }
 0x338   : > { %v3519_v49 = vmul.f32 -1.442695, %v522_v48 }
 0x33a   : > { %3704 = vpow2.f32 %v3519_v49 }
 0x33b   : > { %v3699_v50 = vpop.eup %3698 }
 0x33c   : > { %v3701_v51 = vpop.eup %3700  ;;  %v536_v52 = vadd.f32 1.0, %v3699_v50 }
 0x33d   : > { %v535_v53 = vadd.f32 1.0, %v3701_v51 }
 0x33e   : > { %3706 = vrcp.f32 %v536_v52 }
 0x33f   : > { %3708 = vrcp.f32 %v535_v53 }
 0x340   : > { %v3703_v54 = vpop.eup %3702 }
 0x341   : > { %v537_v56 = vadd.f32 1.0, %v3703_v54 }
 0x344   : > { %v3705_v55 = vpop.eup %3704 }
 0x345   : > { %v538_v57 = vadd.f32 1.0, %v3705_v55 }
 0x347   : > { %3710 = vrcp.f32 %v538_v57 }
 0x348   : > { %v3707_v58 = vpop.eup %3706  ;;  %3712 = vrcp.f32 %v537_v56 }
 0x349   : > { %618 = vperm.xlu0 %3691, %v3707_v58   ;;  %554 = vperm.xlu1 %3690, %v3707_v58   ;;  %v3709_v59 = vpop.eup %3708 }
 0x34d   : > { %3692 = vset.pattern.permute.xlu0 %v3863_v37  ;;  %3693 = vset.pattern.permute.xlu1 %v3862_v36 }
 0x34e   : > { %549 = vperm.xlu0 %3692, %v3709_v59   ;;  %614 = vperm.xlu1 %3693, %v3709_v59  }
 0x351   : > { %v3711_v60 = vpop.eup %3710 }
 0x352   : > { %v3713_v61 = vpop.eup %3712  ;;  %3697 = vset.pattern.permute.xlu0 %v3862_v36  ;;  %3694 = vset.pattern.permute.xlu1 %v3863_v37 }
 0x353   : > { %622 = vperm.xlu0 %3697, %v3713_v61   ;;  %564 = vperm.xlu1 %3694, %v3711_v60  }
 0x357   : > { %3695 = vset.pattern.permute.xlu1 %v3862_v36 }
 0x358   : > { %626 = vperm.xlu1 %3695, %v3711_v60  }
 0x35c   : > { %3696 = vset.pattern.permute.xlu1 %v3863_v37 }
 0x35d   : > { %559 = vperm.xlu1 %3696, %v3713_v61  }
 0x3c8   : > { %v619_v62 = vpop.permute.xlu0 %618  ;;  %v555_v63 = vpop.permute.xlu1 %554 }
 0x3c9   : > { %v4217_v14 = vmul.f32 %v4120_v10, %v619_v62  ;;  %v4220_v15 = vmul.f32 %v4123_v11, %v619_v62  ;;  %v4233_v22 = vmul.f32 %v555_v63, %v4100_v2  ;;  %v4236_v10 = vmul.f32 %v555_v63, %v4107_v5 }
 0x3cb   : > { %5992 = vst [vmem:[#allocation13_spill] sm:$0xff] %v4217_v14  ;;  %5993 = vst [vmem:[#allocation14_spill] sm:$0xff] %v4220_v15 }
 0x3cc   : > { %5996 = vst [vmem:[#allocation17_spill] sm:$0xff] %v4233_v22  ;;  %5997 = vst [vmem:[#allocation18_spill] sm:$0xff] %v4236_v10 }
 0x3cd   : > { %v550_v3 = vpop.permute.xlu0 %549  ;;  %v615_v4 = vpop.permute.xlu1 %614 }
 0x3ce   : > { %v4211_v6 = vmul.f32 %v4114_v8, %v615_v4  ;;  %v4214_v7 = vmul.f32 %v4117_v9, %v615_v4  ;;  %v4239_v11 = vmul.f32 %v550_v3, %v4094_v0 }
 0x3d0   : > { %5990 = vst [vmem:[#allocation11_spill] sm:$0xff] %v4211_v6  ;;  %5991 = vst [vmem:[#allocation12_spill] sm:$0xff] %v4214_v7  ;;  %v655_v8 = vadd.f32 %v4217_v14, %v4211_v6  ;;  %v664_v9 = vadd.f32 %v4220_v15, %v4214_v7  ;;  %v593_v33 = vadd.f32 %v4233_v22, %v4239_v11 }
 0x3d1   : > { %5998 = vst [vmem:[#allocation19_spill] sm:$0xff] %v4239_v11 }
 0x3d2   : > { %v623_v12 = vpop.permute.xlu0 %622  ;;  %v565_v13 = vpop.permute.xlu1 %564 }
 0x3d3   : > { %v4223_v20 = vmul.f32 %v4154_v24, %v623_v12  ;;  %v4226_v21 = vmul.f32 %v4157_v25, %v623_v12  ;;  %v4242_v24 = vmul.f32 %v550_v3, %v4097_v1  ;;  %v4257_v1 = vmul.f32 %v565_v13, %v4140_v18 }
 0x3d4   : > { %v4260_v30 = vmul.f32 %v565_v13, %v4143_v19 }
 0x3d5   : > { %5994 = vst [vmem:[#allocation15_spill] sm:$0xff] %v4223_v20  ;;  %5995 = vst [vmem:[#allocation16_spill] sm:$0xff] %v4226_v21  ;;  %v656_v23 = vadd.f32 %v655_v8, %v4223_v20  ;;  %v665_v28 = vadd.f32 %v664_v9, %v4226_v21  ;;  %v637_v5 = vmax.f32 %v4211_v6, %v4223_v20  ;;  %v1232_v6 = vld [vmem:[#allocation5 + $0x28] sm:$0xf] }
 0x3d6   : > { %5999 = vst [vmem:[#allocation20_spill] sm:$0xff] %v4242_v24  ;;  %v646_v0 = vmax.f32 %v4214_v7, %v4226_v21  ;;  %6002 = vst [vmem:[#allocation23_spill] sm:$0xff] %v4257_v1  ;;  %v602_v18 = vadd.f32 %v4236_v10, %v4242_v24  ;;  %v576_v38 = vmax.f32 %v4233_v22, %v4257_v1 }
 0x3d7   : > { %v627_v25 = vpop.permute.xlu1 %626  ;;  %6003 = vst [vmem:[#allocation24_spill] sm:$0xff] %v4260_v30  ;;  %v585_v39 = vmax.f32 %v4236_v10, %v4260_v30 }
 0x3d8   : > { %v4247_v29 = vmul.f32 %v4160_v26, %v627_v25  ;;  %v4250_v2 = vmul.f32 %v4163_v27, %v627_v25 }
 0x3da   : > { %6000 = vst [vmem:[#allocation21_spill] sm:$0xff] %v4247_v29  ;;  %6001 = vst [vmem:[#allocation22_spill] sm:$0xff] %v4250_v2  ;;  %v638_v31 = vmax.f32 %v4217_v14, %v4247_v29  ;;  %v647_v26 = vmax.f32 %v4220_v15, %v4250_v2  ;;  %v657_v27 = vadd.f32 %v656_v23, %v4247_v29 }
 0x3db   : > { %v666_v32 = vadd.f32 %v665_v28, %v4250_v2 }
 0x3dc   : > { %v639_v34 = vmax.f32 %v637_v5, %v638_v31  ;;  %v648_v35 = vmax.f32 %v646_v0, %v647_v26  ;;  %v658_v19 = vrot.slane %v657_v27, 4  ;;  %v560_v37 = vpop.permute.xlu1 %559 }
 0x3dd   : > { %v667_v36 = vrot.slane %v666_v32, 4  ;;  %v4277_v40 = vmul.f32 %v560_v37, %v4134_v16  ;;  %v4280_v41 = vmul.f32 %v560_v37, %v4137_v17 }
 0x3de   : > { %v640_v42 = vrot.slane %v639_v34, 4  ;;  %v649_v43 = vrot.slane %v648_v35, 4  ;;  %v659_v44 = vadd.f32 %v658_v19, %v657_v27 }
 0x3df   : > { %6004 = vst [vmem:[#allocation25_spill] sm:$0xff] %v4277_v40  ;;  %6005 = vst [vmem:[#allocation26_spill] sm:$0xff] %v4280_v41  ;;  %v668_v45 = vadd.f32 %v667_v36, %v666_v32  ;;  %v575_v46 = vmax.f32 %v4239_v11, %v4277_v40  ;;  %v584_v47 = vmax.f32 %v4242_v24, %v4280_v41  ;;  %v1340_v24 = vld [vmem:[#allocation5 + $0x30] sm:$0xf] }
 0x3e0   : > { %v594_v48 = vadd.f32 %v593_v33, %v4277_v40  ;;  %v603_v49 = vadd.f32 %v602_v18, %v4280_v41  ;;  %v641_v50 = vmax.f32 %v639_v34, %v640_v42  ;;  %v650_v16 = vmax.f32 %v648_v35, %v649_v43 }
 0x3e1   : > { %v660_v51 = vrot.slane %v659_v44, 2  ;;  %v669_v52 = vrot.slane %v668_v45, 2  ;;  %v577_v17 = vmax.f32 %v575_v46, %v576_v38  ;;  %v586_v53 = vmax.f32 %v584_v47, %v585_v39 }
 0x3e2   : > { %v595_v54 = vadd.f32 %v594_v48, %v4257_v1  ;;  %v604_v55 = vadd.f32 %v603_v49, %v4260_v30  ;;  %v642_v56 = vrot.slane %v641_v50, 2  ;;  %v651_v57 = vrot.slane %v650_v16, 2 }
 0x3e3   : > { %v578_v58 = vrot.slane %v577_v17, 4  ;;  %v587_v59 = vrot.slane %v586_v53, 4  ;;  %v661_v3 = vadd.f32 %v660_v51, %v659_v44  ;;  %v670_v4 = vadd.f32 %v669_v52, %v668_v45 }
 0x3e4   : > { %v596_v60 = vrot.slane %v595_v54, 4  ;;  %v605_v61 = vrot.slane %v604_v55, 4  ;;  %v643_v62 = vmax.f32 %v641_v50, %v642_v56  ;;  %v652_v63 = vmax.f32 %v650_v16, %v651_v57 }
 0x3e5   : > { %v579_v12 = vmax.f32 %v577_v17, %v578_v58  ;;  %v588_v13 = vmax.f32 %v586_v53, %v587_v59  ;;  %v662_v26 = vrot.slane %v661_v3, 1  ;;  %v671_v27 = vrot.slane %v670_v4, 1 }
 0x3e6   : > { %v597_v8 = vadd.f32 %v596_v60, %v595_v54  ;;  %v606_v9 = vadd.f32 %v605_v61, %v604_v55  ;;  %v644_v0 = vrot.slane %v643_v62, 1  ;;  %v653_v31 = vrot.slane %v652_v63, 1 }
 0x3e7   : > { %v580_v25 = vrot.slane %v579_v12, 2  ;;  %v589_v23 = vrot.slane %v588_v13, 2  ;;  %v663_v42 = vadd.f32 %v662_v26, %v661_v3  ;;  %v672_v43 = vadd.f32 %v671_v27, %v670_v4  ;;  %v746_v3 = vld [vmem:[#allocation5 + $0x4] sm:$0xf] }
 0x3e8   : > { %v598_v28 = vrot.slane %v597_v8, 2  ;;  %v607_v5 = vrot.slane %v606_v9, 2  ;;  %v645_v38 = vmax.f32 %v643_v62, %v644_v0  ;;  %v654_v39 = vmax.f32 %v652_v63, %v653_v31  ;;  %v1981_v62 = vld [vmem:[#allocation5 + $0x60] sm:$0xf] }
 0x3e9   : > { %v581_v32 = vmax.f32 %v579_v12, %v580_v25  ;;  %v590_v33 = vmax.f32 %v588_v13, %v589_v23  ;;  %v673_v51 = vmul.f32 0.03125, %v663_v42  ;;  %v674_v52 = vmul.f32 0.03125, %v672_v43  ;;  %v692_v63 = vld [vmem:[#allocation5] sm:$0xf] }
 0x3ea   : > { %v599_v18 = vadd.f32 %v598_v28, %v597_v8  ;;  %v608_v34 = vadd.f32 %v607_v5, %v606_v9  ;;  %v687_v56 = vlaneseq  ;;  %v800_v5 = vld [vmem:[#allocation5 + $0x8] sm:$0xf] }
 0x3eb   : > { %v582_v35 = vrot.slane %v581_v32, 1  ;;  %v591_v19 = vrot.slane %v590_v33, 1 }
 0x3ec   : > { %v600_v36 = vrot.slane %v599_v18, 1  ;;  %v609_v37 = vrot.slane %v608_v34, 1  ;;  %v695_v57 = vshrl.u32 %v687_v56, 7 }
 0x3ed   : > { %v583_v44 = vmax.f32 %v581_v32, %v582_v35  ;;  %v592_v45 = vmax.f32 %v590_v33, %v591_v19  ;;  %v854_v35 = vld [vmem:[#allocation5 + $0xc] sm:$0xf] }
 0x3ee   : > { %v601_v46 = vadd.f32 %v600_v36, %v599_v18  ;;  %v610_v47 = vadd.f32 %v609_v37, %v608_v34  ;;  %v4343_v58 = vsub.s32 0, %v695_v57  ;;  %v4345_v59 = vsub.s32 2, %v695_v57 }
 0x3ef   : > { %v676_v50 = vsel %vm675_vm6, %v583_v44, %v645_v38  ;;  %v677_v16 = vsel %vm675_vm6, %v592_v45, %v654_v39  ;;  %v4347_v60 = vsub.s32 1, %v695_v57  ;;  %v4349_v61 = vsub.s32 3, %v695_v57 }
 0x3f0   : > { %v611_v48 = vmul.f32 0.03125, %v601_v46  ;;  %v612_v49 = vmul.f32 0.03125, %v610_v47  ;;  %v1986_v4 = vrot.slane %v1981_v62, %v4343_v58  ;;  %v1990_v12 = vrot.slane %v1981_v62, %v4345_v59  ;;  %v908_v46 = vld [vmem:[#allocation5 + $0x10] sm:$0xf] }
 0x3f1   : > { %v697_v13 = vrot.slane %v692_v63, %v4343_v58  ;;  %v2008_v8 = vrot.slane %v1981_v62, %v4347_v60  ;;  %v2012_v9 = vrot.slane %v1981_v62, %v4349_v61  ;;  %v701_v25 = vrot.slane %v692_v63, %v4345_v59 }
 0x3f2   : > { %v678_v17 = vsel %vm414_vm5, %v676_v50, %v611_v48  ;;  %v679_v53 = vsel %vm414_vm5, %v677_v16, %v612_v49  ;;  %v719_v23 = vrot.slane %v692_v63, %v4347_v60  ;;  %v723_v28 = vrot.slane %v692_v63, %v4349_v61  ;;  %v962_v16 = vld [vmem:[#allocation5 + $0x14] sm:$0xf] }
 0x3f3   : > { %v4294_v54 = vsel %vm680_vm7, %v678_v17, %v673_v51  ;;  %v4296_v55 = vsel %vm680_vm7, %v679_v53, %v674_v52  ;;  %v751_v0 = vrot.slane %v746_v3, %v4343_v58  ;;  %v755_v31 = vrot.slane %v746_v3, %v4345_v59 }
 0x3f4   : > { %685 = vrot.lane.b32.xlu1 %v4296_v55, %s3864_s25  ;;  %683 = vrot.lane.b32.xlu0 %v4294_v54, %s3864_s25  ;;  %s3878_s25 = smov 19   ;;  %v773_v26 = vrot.slane %v746_v3, %v4347_v60  ;;  %v777_v27 = vrot.slane %v746_v3, %v4349_v61  ;;  %v4368_v32 = vrot.slane %v1986_v4, %v4343_v58 }
 0x3f5   : > { %v4371_v33 = vrot.slane %v1990_v12, %v4343_v58  ;;  %v4374_v18 = vrot.slane %v697_v13, %v4343_v58  ;;  %v805_v34 = vrot.slane %v800_v5, %v4343_v58  ;;  %v4378_v19 = vrot.slane %v2008_v8, %v4347_v60  ;;  %v1016_v8 = vld [vmem:[#allocation5 + $0x18] sm:$0xf] }
 0x3f6   : > { %v2022_v36 = vrot.slane %v2012_v9, %v4347_v60  ;;  %v4382_v37 = vrot.slane %v701_v25, %v4343_v58  ;;  %v4385_v38 = vrot.slane %v719_v23, %v4347_v60  ;;  %v4388_v39 = vrot.slane %v723_v28, %v4347_v60 }
 0x3f7   : > { %v809_v42 = vrot.slane %v800_v5, %v4345_v59  ;;  %v4394_v43 = vrot.slane %v751_v0, %v4343_v58  ;;  %v4397_v44 = vrot.slane %v755_v31, %v4343_v58  ;;  %v4400_v45 = vrot.slane %v773_v26, %v4347_v60 }
 0x3f8   : > { %740 = vrot.lane.b32.xlu1 %v4296_v55, %s3865_s11  ;;  %738 = vrot.lane.b32.xlu0 %v4294_v54, %s3865_s11  ;;  %s3879_s11 = smov 18   ;;  %v4403_v47 = vrot.slane %v777_v27, %v4347_v60  ;;  %v827_v48 = vrot.slane %v800_v5, %v4347_v60  ;;  %v831_v49 = vrot.slane %v800_v5, %v4349_v61 }
 0x3f9   : > { %v859_v50 = vrot.slane %v854_v35, %v4343_v58  ;;  %v4409_v51 = vrot.slane %v805_v34, %v4343_v58  ;;  %v863_v52 = vrot.slane %v854_v35, %v4345_v59  ;;  %v881_v17 = vrot.slane %v854_v35, %v4347_v60 }
 0x3fa   : > { %v885_v53 = vrot.slane %v854_v35, %v4349_v61  ;;  %v4415_v57 = vrot.slane %v809_v42, %v4343_v58  ;;  %v913_v62 = vrot.slane %v908_v46, %v4343_v58  ;;  %v917_v63 = vrot.slane %v908_v46, %v4345_v59 }
 0x3fb   : > { %v935_v3 = vrot.slane %v908_v46, %v4347_v60  ;;  %v939_v4 = vrot.slane %v908_v46, %v4349_v61  ;;  %v967_v12 = vrot.slane %v962_v16, %v4343_v58  ;;  %v971_v13 = vrot.slane %v962_v16, %v4345_v59  ;;  %v1070_v46 = vld [vmem:[#allocation5 + $0x1c] sm:$0xf] }
 0x3fc   : > { %794 = vrot.lane.b32.xlu1 %v4296_v55, %s3866_s14  ;;  %792 = vrot.lane.b32.xlu0 %v4294_v54, %s3866_s14  ;;  %s3880_s14 = smov 17   ;;  %v4426_v9 = vrot.slane %v827_v48, %v4347_v60  ;;  %v4429_v25 = vrot.slane %v831_v49, %v4347_v60  ;;  %v4432_v23 = vrot.slane %v859_v50, %v4343_v58  ;;  %v4460_v48 = vand.u32 127, %v687_v56  ;;  %v1124_v56 = vld [vmem:[#allocation5 + $0x20] sm:$0xf] }
 0x3fd   : > { %v989_v28 = vrot.slane %v962_v16, %v4347_v60  ;;  %v4436_v5 = vrot.slane %v863_v52, %v4343_v58  ;;  %v4439_v0 = vrot.slane %v881_v17, %v4347_v60  ;;  %v4442_v31 = vrot.slane %v885_v53, %v4347_v60 }
 0x3fe   : > { %v993_v26 = vrot.slane %v962_v16, %v4349_v61  ;;  %v4446_v27 = vrot.slane %v913_v62, %v4343_v58  ;;  %v4449_v34 = vrot.slane %v917_v63, %v4343_v58  ;;  %v4452_v35 = vrot.slane %v935_v3, %v4347_v60 }
 0x3ff   : > { %v1021_v42 = vrot.slane %v1016_v8, %v4343_v58  ;;  %v4463_v49 = vrot.slane %v939_v4, %v4347_v60  ;;  %v4466_v50 = vrot.slane %v967_v12, %v4343_v58  ;;  %v4469_v16 = vrot.slane %v971_v13, %v4343_v58  ;;  %v1178_v4 = vld [vmem:[#allocation5 + $0x24] sm:$0xf] }
 0x400   : > { %848 = vrot.lane.b32.xlu1 %v4296_v55, %s3867_s20  ;;  %846 = vrot.lane.b32.xlu0 %v4294_v54, %s3867_s20  ;;  %s3881_s20 = smov 16   ;;  %v4472_v52 = vrot.slane %v989_v28, %v4347_v60  ;;  %v1025_v17 = vrot.slane %v1016_v8, %v4345_v59  ;;  %v1043_v53 = vrot.slane %v1016_v8, %v4347_v60  ;;  %vm689_vm8 = vcmp.lt.s32.totalorder %v4460_v48, 51 }
 0x401   : > { %v1047_v62 = vrot.slane %v1016_v8, %v4349_v61  ;;  %v4478_v63 = vrot.slane %v993_v26, %v4347_v60  ;;  %v1075_v3 = vrot.slane %v1070_v46, %v4343_v58  ;;  %v4483_v12 = vmul.f32 %v4371_v33, %v4296_v55 }
 0x402   : > { %v4486_v13 = vmul.f32 %v2022_v36, %v4296_v55  ;;  %v4489_v28 = vrot.slane %v1021_v42, %v4343_v58  ;;  %v1079_v2 = vrot.slane %v1070_v46, %v4345_v59  ;;  %v1097_v8 = vrot.slane %v1070_v46, %v4347_v60 }
 0x403   : > { %6006 = vst [vmem:[#allocation27_spill] sm:$0xff] %v4483_v12  ;;  %v1101_v26 = vrot.slane %v1070_v46, %v4349_v61  ;;  %v1129_v33 = vrot.slane %v1124_v56, %v4343_v58  ;;  %v1133_v36 = vrot.slane %v1124_v56, %v4345_v59  ;;  %v1151_v42 = vrot.slane %v1124_v56, %v4347_v60 }
 0x404   : > { %902 = vrot.lane.b32.xlu1 %v4296_v55, %s3868_s21  ;;  %900 = vrot.lane.b32.xlu0 %v4294_v54, %s3868_s21  ;;  %s3882_s21 = smov 15   ;;  %6007 = vst [vmem:[#allocation28_spill] sm:$0xff] %v4486_v13  ;;  %v4501_v29 = vrot.slane %v1025_v17, %v4343_v58  ;;  %v4504_v21 = vrot.slane %v1043_v53, %v4347_v60  ;;  %vm742_vm9 = vcmp.lt.s32.totalorder %v4460_v48, 50  ;;  %vm796_vm10 = vcmp.lt.s32.totalorder %v4460_v48, 49 }
 0x405   : > { %v1155_v46 = vrot.slane %v1124_v56, %v4349_v61  ;;  %v1183_v20 = vrot.slane %v1178_v4, %v4343_v58  ;;  %v4509_v15 = vrot.slane %v1047_v62, %v4347_v60  ;;  %v4512_v14 = vrot.slane %v1075_v3, %v4343_v58 }
 0x406   : > { %v4516_v7 = vmul.f32 %v4368_v32, %v4294_v54  ;;  %v4520_v17 = vmul.f32 %v4378_v19, %v4294_v54  ;;  %v4523_v53 = vrot.slane %v1079_v2, %v4343_v58  ;;  %v4526_v56 = vrot.slane %v1097_v8, %v4347_v60  ;;  %v1286_v8 = vld [vmem:[#allocation5 + $0x2c] sm:$0xf] }
 0x407   : > { %v4529_v62 = vrot.slane %v1101_v26, %v4347_v60  ;;  %v1187_v3 = vrot.slane %v1178_v4, %v4345_v59  ;;  %v4536_v32 = vrot.slane %v1129_v33, %v4343_v58  ;;  %v4539_v2 = vrot.slane %v1133_v36, %v4343_v58 }
 0x408   : > { %956 = vrot.lane.b32.xlu1 %v4296_v55, %s3869_s23  ;;  %954 = vrot.lane.b32.xlu0 %v4294_v54, %s3869_s23  ;;  %s3883_s23 = smov 14   ;;  %6008 = vst [vmem:[#allocation29_spill] sm:$0xff] %v4516_v7  ;;  %6009 = vst [vmem:[#allocation30_spill] sm:$0xff] %v4520_v17  ;;  %v4542_v19 = vrot.slane %v1151_v42, %v4347_v60  ;;  %v4545_v26 = vrot.slane %v1155_v46, %v4347_v60  ;;  %vm850_vm11 = vcmp.lt.s32.totalorder %v4460_v48, 48 }
 0x409   : > { %v4548_v30 = vrot.slane %v1183_v20, %v4343_v58  ;;  %v1205_v41 = vrot.slane %v1178_v4, %v4347_v60  ;;  %v1209_v10 = vrot.slane %v1178_v4, %v4349_v61  ;;  %v1237_v33 = vrot.slane %v1232_v6, %v4343_v58 }
 0x40a   : > { %6010 = vst [vmem:[#allocation31_spill] sm:$0xff] %v4545_v26  ;;  %v1241_v36 = vrot.slane %v1232_v6, %v4345_v59  ;;  %v1259_v1 = vrot.slane %v1232_v6, %v4347_v60  ;;  %v1263_v42 = vrot.slane %v1232_v6, %v4349_v61  ;;  %v4557_v40 = vrot.slane %v1187_v3, %v4343_v58 }
 0x40b   : > { %6011 = vst [vmem:[#allocation32_spill] sm:$0xff] %v4548_v30  ;;  %v1291_v46 = vrot.slane %v1286_v8, %v4343_v58  ;;  %v1295_v20 = vrot.slane %v1286_v8, %v4345_v59  ;;  %v1313_v22 = vrot.slane %v1286_v8, %v4347_v60  ;;  %v1317_v4 = vrot.slane %v1286_v8, %v4349_v61 }
 0x40c   : > { %1010 = vrot.lane.b32.xlu1 %v4296_v55, %s3870_s9  ;;  %1008 = vrot.lane.b32.xlu0 %v4294_v54, %s3870_s9  ;;  %s3884_s9 = smov 13   ;;  %6012 = vst [vmem:[#allocation33_spill] sm:$0xff] %v4557_v40  ;;  %v1345_v6 = vrot.slane %v1340_v24, %v4343_v58  ;;  %v1349_v3 = vrot.slane %v1340_v24, %v4345_v59  ;;  %vm904_vm12 = vcmp.lt.s32.totalorder %v4460_v48, 47  ;;  %vm958_vm13 = vcmp.lt.s32.totalorder %v4460_v48, 46 }
 0x40d   : > { %v4569_v11 = vrot.slane %v1205_v41, %v4347_v60  ;;  %v4572_v7 = vrot.slane %v1209_v10, %v4347_v60  ;;  %v1367_v12 = vrot.slane %v1340_v24, %v4347_v60  ;;  %v1371_v17 = vrot.slane %v1340_v24, %v4349_v61  ;;  %v1394_v10 = vld [vmem:[#allocation5 + $0x34] sm:$0xf] }
 0x40e   : > { %v4577_v30 = vrot.slane %v1237_v33, %v4343_v58  ;;  %v4580_v8 = vrot.slane %v1241_v36, %v4343_v58  ;;  %v4583_v26 = vrot.slane %v1259_v1, %v4347_v60  ;;  %v4586_v41 = vrot.slane %v1263_v42, %v4347_v60 }
 0x40f   : > { %6013 = vst [vmem:[#allocation34_spill] sm:$0xff] %v4569_v11  ;;  %6014 = vst [vmem:[#allocation35_spill] sm:$0xff] %v4572_v7  ;;  %v4593_v11 = vrot.slane %v1291_v46, %v4343_v58  ;;  %v4596_v33 = vrot.slane %v1295_v20, %v4343_v58  ;;  %v4601_v1 = vrot.slane %v1313_v22, %v4347_v60  ;;  %vm1012_vm14 = vcmp.lt.s32.totalorder %v4460_v48, 45 }
 0x410   : > { %1064 = vrot.lane.b32.xlu1 %v4296_v55, %s3871_s28  ;;  %1062 = vrot.lane.b32.xlu0 %v4294_v54, %s3871_s28  ;;  %s3885_s28 = smov 3   ;;  %v4604_v36 = vrot.slane %v1317_v4, %v4347_v60  ;;  %v4607_v42 = vrot.slane %v1345_v6, %v4343_v58  ;;  %v4617_v46 = vrot.slane %v1371_v17, %v4347_v60  ;;  %vm1066_vm15 = vcmp.lt.s32.totalorder %v4460_v48, 35 }
 0x411   : > { %6015 = vst [vmem:[#allocation36_spill] sm:$0xff] %v4593_v11  ;;  %6016 = vst [vmem:[#allocation37_spill] sm:$0xff] %v4596_v33  ;;  %v1399_v22 = vrot.slane %v1394_v10, %v4343_v58  ;;  %v1403_v20 = vrot.slane %v1394_v10, %v4345_v59  ;;  %vm1120_vm0 = vcmp.lt.s32.totalorder %v4460_v48, 34  ;;  %vm1174_vm1 = vcmp.lt.s32.totalorder %v4460_v48, 33 }
 0x412   : > { %6017 = vst [vmem:[#allocation38_spill] sm:$0xff] %v4601_v1  ;;  %6018 = vst [vmem:[#allocation39_spill] sm:$0xff] %v4604_v36  ;;  %v1448_v1 = vld [vmem:[#allocation5 + $0x38] sm:$0xf]  ;;  %vm1228_vm2 = vcmp.lt.s32.totalorder %v4460_v48, 32  ;;  %vm1282_vm3 = vcmp.lt.s32.totalorder %v4460_v48, 31 }
 0x413   : > { %6019 = vst [vmem:[#allocation40_spill] sm:$0xff] %v4607_v42  ;;  %6022 = vst [vmem:[#allocation43_spill] sm:$0xff] %v4617_v46  ;;  %vm1336_vm4 = vcmp.lt.s32.totalorder %v4460_v48, 30  ;;  %vm1390_vm5 = vcmp.lt.s32.totalorder %v4460_v48, 29  ;;  %vm1444_vm6 = vcmp.lt.s32.totalorder %v4460_v48, 19  ;;  %vm1498_vm7 = vcmp.lt.s32.totalorder %v4460_v48, 18 }
 0x414   : > { %1118 = vrot.lane.b32.xlu1 %v4296_v55, %s3872_s29  ;;  %1116 = vrot.lane.b32.xlu0 %v4294_v54, %s3872_s29  ;;  %s3886_s29 = smov 2  }
 0x418   : > { %1172 = vrot.lane.b32.xlu1 %v4296_v55, %s3873_s10  ;;  %1170 = vrot.lane.b32.xlu0 %v4294_v54, %s3873_s10  ;;  %s3887_s10 = smov 1  }
 0x41c   : > { %1226 = vrot.lane.b32.xlu1 %v4296_v55, %s3874_s6  ;;  %1224 = vrot.lane.b32.xlu0 %v4294_v54, %s3874_s6  ;;  %s3888_s6 = smov 127  }
 0x420   : > { %1280 = vrot.lane.b32.xlu1 %v4296_v55, %s3875_s5  ;;  %1278 = vrot.lane.b32.xlu0 %v4294_v54, %s3875_s5  ;;  %s3890_s5 = smov 115  }
 0x424   : > { %1334 = vrot.lane.b32.xlu1 %v4296_v55, %s3876_s7  ;;  %1332 = vrot.lane.b32.xlu0 %v4294_v54, %s3876_s7  ;;  %s3891_s7 = smov 114  }
 0x428   : > { %1388 = vrot.lane.b32.xlu1 %v4296_v55, %s3877_s26  ;;  %1386 = vrot.lane.b32.xlu0 %v4294_v54, %s3877_s26  ;;  %s3892_s26 = smov 113  }
 0x42c   : > { %1442 = vrot.lane.b32.xlu1 %v4296_v55, %s3878_s25  ;;  %1440 = vrot.lane.b32.xlu0 %v4294_v54, %s3878_s25  ;;  %s3893_s25 = smov 112  }
 0x430   : > { %1496 = vrot.lane.b32.xlu1 %v4296_v55, %s3879_s11  ;;  %1494 = vrot.lane.b32.xlu0 %v4294_v54, %s3879_s11  ;;  %s3894_s11 = smov 111  }
 0x434   : > { %1550 = vrot.lane.b32.xlu1 %v4296_v55, %s3880_s14  ;;  %1548 = vrot.lane.b32.xlu0 %v4294_v54, %s3880_s14  ;;  %s3895_s14 = smov 110  }
 0x438   : > { %1604 = vrot.lane.b32.xlu1 %v4296_v55, %s3881_s20  ;;  %1602 = vrot.lane.b32.xlu0 %v4294_v54, %s3881_s20 }
 0x43c   : > { %1658 = vrot.lane.b32.xlu1 %v4296_v55, %s3882_s21  ;;  %1656 = vrot.lane.b32.xlu0 %v4294_v54, %s3882_s21  ;;  %s3896_s21 = smov 109  }
 0x440   : > { %1712 = vrot.lane.b32.xlu1 %v4296_v55, %s3883_s23  ;;  %1710 = vrot.lane.b32.xlu0 %v4294_v54, %s3883_s23  ;;  %s3897_s23 = smov 99  }
 0x444   : > { %1766 = vrot.lane.b32.xlu1 %v4296_v55, %s3884_s9  ;;  %1764 = vrot.lane.b32.xlu0 %v4294_v54, %s3884_s9  ;;  %s3898_s9 = smov 98  }
 0x448   : > { %1820 = vrot.lane.b32.xlu1 %v4296_v55, %s3885_s28  ;;  %1818 = vrot.lane.b32.xlu0 %v4294_v54, %s3885_s28  ;;  %s3899_s28 = smov 97  }
 0x44c   : > { %1874 = vrot.lane.b32.xlu1 %v4296_v55, %s3886_s29  ;;  %1872 = vrot.lane.b32.xlu0 %v4294_v54, %s3886_s29  ;;  %s3900_s29 = smov 96  }
 0x450   : > { %1928 = vrot.lane.b32.xlu1 %v4296_v55, %s3887_s10  ;;  %1926 = vrot.lane.b32.xlu0 %v4294_v54, %s3887_s10  ;;  %s3901_s10 = smov 95  }
 0x454   : > { %2029 = vrot.lane.b32.xlu1 %v4296_v55, %s3888_s6  ;;  %2027 = vrot.lane.b32.xlu0 %v4294_v54, %s3888_s6  ;;  %s3902_s6 = smov 94  }
 0x458   : > { %2083 = vrot.lane.b32.xlu1 %v4296_v55, %s3861_s8  ;;  %2081 = vrot.lane.b32.xlu0 %v4294_v54, %s3861_s8  ;;  %s3889_s8 = smov 125  }
 0x45c   : > { %2137 = vrot.lane.b32.xlu1 %v4296_v55, %s3889_s8  ;;  %2135 = vrot.lane.b32.xlu0 %v4294_v54, %s3889_s8  ;;  %s3903_s8 = smov 93  }
 0x460   : > { %2191 = vrot.lane.b32.xlu1 %v4296_v55, %s3890_s5  ;;  %2189 = vrot.lane.b32.xlu0 %v4294_v54, %s3890_s5  ;;  %s3904_s5 = smov 83  }
 0x464   : > { %2245 = vrot.lane.b32.xlu1 %v4296_v55, %s3891_s7  ;;  %2243 = vrot.lane.b32.xlu0 %v4294_v54, %s3891_s7  ;;  %s3905_s7 = smov 82  }
 0x466   : > { %v686_v13 = vpop.permute.xlu1 %685  ;;  %v684_v40 = vpop.permute.xlu0 %683 }
 0x467   : > { %v690_v7 = vsel %vm689_vm8, %v684_v40, %v686_v13  ;;  %v691_v24 = vsel %vm689_vm8, %v686_v13, %v684_v40  ;;  %v4610_v40 = vrot.slane %v1349_v3, %v4343_v58  ;;  %v4614_v13 = vrot.slane %v1367_v12, %v4347_v60 }
 0x468   : > { %2299 = vrot.lane.b32.xlu1 %v4296_v55, %s3892_s26  ;;  %2297 = vrot.lane.b32.xlu0 %v4294_v54, %s3892_s26  ;;  %v712_v4 = vmul.f32 %v4374_v18, %v691_v24  ;;  %v713_v6 = vmul.f32 %v4382_v37, %v690_v7  ;;  %v1421_v3 = vrot.slane %v1394_v10, %v4347_v60  ;;  %s3906_s26 = smov 81   ;;  %vm1552_vm8 = vcmp.lt.s32.totalorder %v4460_v48, 17 }
 0x469   : > { %6020 = vst [vmem:[#allocation41_spill] sm:$0xff] %v4610_v40  ;;  %6021 = vst [vmem:[#allocation42_spill] sm:$0xff] %v4614_v13  ;;  %v1425_v40 = vrot.slane %v1394_v10, %v4349_v61  ;;  %v734_v12 = vmul.f32 %v4385_v38, %v691_v24  ;;  %v735_v17 = vmul.f32 %v4388_v39, %v690_v7 }
 0x46a   : > { %v741_v42 = vpop.permute.xlu1 %740  ;;  %v739_v36 = vpop.permute.xlu0 %738  ;;  %v4639_v7 = vrot.slane %v1399_v22, %v4343_v58  ;;  %v4642_v38 = vrot.slane %v1403_v20, %v4343_v58  ;;  %v1453_v39 = vrot.slane %v1448_v1, %v4343_v58 }
 0x46b   : > { %v743_v46 = vsel %vm742_vm9, %v739_v36, %v741_v42  ;;  %v744_v13 = vsel %vm742_vm9, %v741_v42, %v739_v36  ;;  %v4654_v22 = vrot.slane %v1425_v40, %v4347_v60  ;;  %vm1606_vm9 = vcmp.lt.s32.totalorder %v4460_v48, 16 }
 0x46c   : > { %v766_v18 = vmul.f32 %v4394_v43, %v744_v13  ;;  %v767_v37 = vmul.f32 %v4397_v44, %v743_v46  ;;  %v788_v33 = vmul.f32 %v4400_v45, %v744_v13  ;;  %v789_v11 = vmul.f32 %v4403_v47, %v743_v46  ;;  %2353 = vrot.lane.b32.xlu1 %v4296_v55, %s3893_s25 }
 0x46d   : > { %2351 = vrot.lane.b32.xlu0 %v4294_v54, %s3893_s25  ;;  %v1457_v43 = vrot.slane %v1448_v1, %v4345_v59  ;;  %v4651_v46 = vrot.slane %v1421_v3, %v4347_v60  ;;  %v4664_v3 = vrot.slane %v1453_v39, %v4343_v58  ;;  %s3907_s25 = smov 80  }
 0x46e   : > { %v768_v44 = vadd.f32 %v766_v18, %v712_v4  ;;  %v769_v45 = vadd.f32 %v767_v37, %v713_v6  ;;  %v790_v47 = vadd.f32 %v788_v33, %v734_v12  ;;  %v791_v10 = vadd.f32 %v789_v11, %v735_v17  ;;  %v795_v24 = vpop.permute.xlu1 %794  ;;  %v793_v36 = vpop.permute.xlu0 %792  ;;  %v1502_v6 = vld [vmem:[#allocation5 + $0x3c] sm:$0xf] }
 0x46f   : > { %v797_v42 = vsel %vm796_vm10, %v793_v36, %v795_v24  ;;  %v798_v13 = vsel %vm796_vm10, %v795_v24, %v793_v36  ;;  %v4667_v40 = vrot.slane %v1457_v43, %v4343_v58  ;;  %v1507_v36 = vrot.slane %v1502_v6, %v4343_v58 }
 0x470   : > { %v820_v20 = vmul.f32 %v4409_v51, %v798_v13  ;;  %v821_v4 = vmul.f32 %v4415_v57, %v797_v42  ;;  %v842_v11 = vmul.f32 %v4426_v9, %v798_v13  ;;  %v843_v33 = vmul.f32 %v4429_v25, %v797_v42  ;;  %2407 = vrot.lane.b32.xlu1 %v4296_v55, %s3894_s11 }
 0x471   : > { %2405 = vrot.lane.b32.xlu0 %v4294_v54, %s3894_s11  ;;  %v1475_v51 = vrot.slane %v1448_v1, %v4347_v60  ;;  %v1479_v57 = vrot.slane %v1448_v1, %v4349_v61  ;;  %v1511_v43 = vrot.slane %v1502_v6, %v4345_v59  ;;  %s3908_s11 = smov 79   ;;  %vm1660_vm10 = vcmp.lt.s32.totalorder %v4460_v48, 15 }
 0x472   : > { %v822_v9 = vadd.f32 %v820_v20, %v768_v44  ;;  %v823_v25 = vadd.f32 %v821_v4, %v769_v45  ;;  %v844_v12 = vadd.f32 %v842_v11, %v790_v47  ;;  %v845_v17 = vadd.f32 %v843_v33, %v791_v10  ;;  %v849_v18 = vpop.permute.xlu1 %848  ;;  %v847_v37 = vpop.permute.xlu0 %846  ;;  %v1556_v33 = vld [vmem:[#allocation5 + $0x40] sm:$0xf] }
 0x473   : > { %v851_v24 = vsel %vm850_vm11, %v847_v37, %v849_v18  ;;  %v852_v39 = vsel %vm850_vm11, %v849_v18, %v847_v37  ;;  %v4685_v47 = vrot.slane %v1475_v51, %v4347_v60  ;;  %v4688_v10 = vrot.slane %v1479_v57, %v4347_v60 }
 0x474   : > { %v874_v42 = vmul.f32 %v4432_v23, %v852_v39  ;;  %v875_v1 = vmul.f32 %v4436_v5, %v851_v24  ;;  %v896_v44 = vmul.f32 %v4439_v0, %v852_v39  ;;  %v897_v45 = vmul.f32 %v4442_v31, %v851_v24  ;;  %2461 = vrot.lane.b32.xlu1 %v4296_v55, %s3895_s14 }
 0x475   : > { %2459 = vrot.lane.b32.xlu0 %v4294_v54, %s3895_s14  ;;  %v1529_v23 = vrot.slane %v1502_v6, %v4347_v60  ;;  %v1533_v5 = vrot.slane %v1502_v6, %v4349_v61  ;;  %v4697_v57 = vrot.slane %v1507_v36, %v4343_v58  ;;  %v4700_v37 = vrot.slane %v1511_v43, %v4343_v58  ;;  %s3909_s14 = smov 78  }
 0x476   : > { %v876_v0 = vadd.f32 %v874_v42, %v822_v9  ;;  %v877_v13 = vadd.f32 %v875_v1, %v823_v25  ;;  %v898_v31 = vadd.f32 %v896_v44, %v844_v12  ;;  %v899_v20 = vadd.f32 %v897_v45, %v845_v17  ;;  %v903_v4 = vpop.permute.xlu1 %902  ;;  %v901_v11 = vpop.permute.xlu0 %900  ;;  %v1610_v1 = vld [vmem:[#allocation5 + $0x44] sm:$0xf] }
 0x477   : > { %v905_v18 = vsel %vm904_vm12, %v901_v11, %v903_v4  ;;  %v906_v51 = vsel %vm904_vm12, %v903_v4, %v901_v11  ;;  %v4710_v17 = vrot.slane %v1529_v23, %v4347_v60  ;;  %v4713_v24 = vrot.slane %v1533_v5, %v4347_v60 }
 0x478   : > { %v928_v6 = vmul.f32 %v4446_v27, %v906_v51  ;;  %v929_v9 = vmul.f32 %v4449_v34, %v905_v18  ;;  %v950_v25 = vmul.f32 %v4452_v35, %v906_v51  ;;  %v951_v12 = vmul.f32 %v4463_v49, %v905_v18  ;;  %2515 = vrot.lane.b32.xlu1 %v4296_v55, %s3896_s21 }
 0x479   : > { %2513 = vrot.lane.b32.xlu0 %v4294_v54, %s3896_s21  ;;  %v1561_v27 = vrot.slane %v1556_v33, %v4343_v58  ;;  %v1565_v34 = vrot.slane %v1556_v33, %v4345_v59  ;;  %v1583_v23 = vrot.slane %v1556_v33, %v4347_v60  ;;  %v1587_v5 = vrot.slane %v1556_v33, %v4349_v61  ;;  %s3910_s21 = smov 77  }
 0x47a   : > { %v930_v35 = vadd.f32 %v928_v6, %v876_v0  ;;  %v931_v39 = vadd.f32 %v929_v9, %v877_v13  ;;  %v952_v49 = vadd.f32 %v950_v25, %v898_v31  ;;  %v953_v36 = vadd.f32 %v951_v12, %v899_v20  ;;  %v957_v43 = vpop.permute.xlu1 %956  ;;  %v955_v42 = vpop.permute.xlu0 %954 }
 0x47b   : > { %v959_v44 = vsel %vm958_vm13, %v955_v42, %v957_v43  ;;  %v960_v45 = vsel %vm958_vm13, %v957_v43, %v955_v42  ;;  %v4731_v20 = vrot.slane %v1561_v27, %v4343_v58  ;;  %v4734_v11 = vrot.slane %v1565_v34, %v4343_v58 }
 0x47c   : > { %v982_v4 = vmul.f32 %v4466_v50, %v960_v45  ;;  %v983_v0 = vmul.f32 %v4469_v16, %v959_v44  ;;  %v1004_v13 = vmul.f32 %v4472_v52, %v960_v45  ;;  %v1005_v31 = vmul.f32 %v4478_v63, %v959_v44  ;;  %2569 = vrot.lane.b32.xlu1 %v4296_v55, %s3897_s23 }
 0x47d   : > { %2567 = vrot.lane.b32.xlu0 %v4294_v54, %s3897_s23  ;;  %v1615_v50 = vrot.slane %v1610_v1, %v4343_v58  ;;  %v1619_v16 = vrot.slane %v1610_v1, %v4345_v59  ;;  %v4743_v12 = vrot.slane %v1583_v23, %v4347_v60  ;;  %v4746_v27 = vrot.slane %v1587_v5, %v4347_v60  ;;  %s3539_s23 = sshll.u32 %s3959_s19, 11 }
 0x47e   : > { %v984_v52 = vadd.f32 %v982_v4, %v930_v35  ;;  %v985_v33 = vadd.f32 %v983_v0, %v931_v39  ;;  %v1006_v63 = vadd.f32 %v1004_v13, %v952_v49  ;;  %v1007_v18 = vadd.f32 %v1005_v31, %v953_v36  ;;  %v1011_v51 = vpop.permute.xlu1 %1010  ;;  %v1009_v6 = vpop.permute.xlu0 %1008  ;;  %v1664_v36 = vld [vmem:[#allocation5 + $0x48] sm:$0xf] }
 0x47f   : > { %v1013_v9 = vsel %vm1012_vm14, %v1009_v6, %v1011_v51  ;;  %v1014_v25 = vsel %vm1012_vm14, %v1011_v51, %v1009_v6  ;;  %v4756_v43 = vrot.slane %v1615_v50, %v4343_v58  ;;  %v4759_v42 = vrot.slane %v1619_v16, %v4343_v58 }
 0x480   : > { %v1036_v34 = vmul.f32 %v4489_v28, %v1014_v25  ;;  %v1037_v35 = vmul.f32 %v4501_v29, %v1013_v9  ;;  %v1058_v39 = vmul.f32 %v4504_v21, %v1014_v25  ;;  %v1059_v49 = vmul.f32 %v4509_v15, %v1013_v9  ;;  %2623 = vrot.lane.b32.xlu1 %v4296_v55, %s3898_s9  ;;  %v1718_v25 = vld [vmem:[#allocation5 + $0x4c] sm:$0xf] }
 0x481   : > { %2621 = vrot.lane.b32.xlu0 %v4294_v54, %s3898_s9  ;;  %v1637_v29 = vrot.slane %v1610_v1, %v4347_v60  ;;  %v1641_v21 = vrot.slane %v1610_v1, %v4349_v61  ;;  %v1669_v13 = vrot.slane %v1664_v36, %v4343_v58  ;;  %v1673_v31 = vrot.slane %v1664_v36, %v4345_v59  ;;  %s5870_s9 = scalar_lea.vmem [#allocation7], %s3499_s13 }
 0x482   : > { %v1038_v28 = vadd.f32 %v1036_v34, %v984_v52  ;;  %v1039_v15 = vadd.f32 %v1037_v35, %v985_v33  ;;  %v1060_v44 = vadd.f32 %v1058_v39, %v1006_v63  ;;  %v1061_v45 = vadd.f32 %v1059_v49, %v1007_v18  ;;  %v1065_v23 = vpop.permute.xlu1 %1064  ;;  %v1063_v5 = vpop.permute.xlu0 %1062 }
 0x483   : > { %v1067_v4 = vsel %vm1066_vm15, %v1063_v5, %v1065_v23  ;;  %v1068_v0 = vsel %vm1066_vm15, %v1065_v23, %v1063_v5  ;;  %v4777_v33 = vrot.slane %v1637_v29, %v4347_v60  ;;  %v4780_v63 = vrot.slane %v1641_v21, %v4347_v60 }
 0x484   : > { %v1090_v50 = vmul.f32 %v4512_v14, %v1068_v0  ;;  %v1091_v1 = vmul.f32 %v4523_v53, %v1067_v4  ;;  %v1112_v16 = vmul.f32 %v4526_v56, %v1068_v0  ;;  %v1113_v52 = vmul.f32 %v4529_v62, %v1067_v4  ;;  %2677 = vrot.lane.b32.xlu1 %v4296_v55, %s3899_s28 }
 0x485   : > { %2675 = vrot.lane.b32.xlu0 %v4294_v54, %s3899_s28  ;;  %v1691_v14 = vrot.slane %v1664_v36, %v4347_v60  ;;  %v1695_v53 = vrot.slane %v1664_v36, %v4349_v61  ;;  %v4789_v39 = vrot.slane %v1669_v13, %v4343_v58  ;;  %v4792_v49 = vrot.slane %v1673_v31, %v4343_v58  ;;  %v1772_v31 = vld [vmem:[#allocation5 + $0x50] sm:$0xf]  ;;  %s3407_s28 = sshll.u32 %s5870_s9, 4  ;;  %s5898_s28 = int_to_ptr.vmem [resolvable:$true] %s3407_s28 }
 0x486   : > { %v1092_v56 = vadd.f32 %v1090_v50, %v1038_v28  ;;  %v1093_v18 = vadd.f32 %v1091_v1, %v1039_v15  ;;  %v1114_v62 = vadd.f32 %v1112_v16, %v1060_v44  ;;  %v1115_v51 = vadd.f32 %v1113_v52, %v1061_v45  ;;  %v1119_v6 = vpop.permute.xlu1 %1118  ;;  %v1117_v9 = vpop.permute.xlu0 %1116  ;;  %v6023_v28 = vld [vmem:[#allocation31_spill] sm:$0xff] }
 0x487   : > { %v1121_v34 = vsel %vm1120_vm0, %v1117_v9, %v1119_v6  ;;  %v1122_v35 = vsel %vm1120_vm0, %v1119_v6, %v1117_v9  ;;  %v4802_v44 = vrot.slane %v1691_v14, %v4347_v60  ;;  %v4805_v45 = vrot.slane %v1695_v53, %v4347_v60  ;;  %v6024_v14 = vld [vmem:[#allocation32_spill] sm:$0xff]  ;;  %v6025_v6 = vld [vmem:[#allocation33_spill] sm:$0xff] }
 0x488   : > { %v1144_v36 = vmul.f32 %v4536_v32, %v1122_v35  ;;  %v1145_v29 = vmul.f32 %v4539_v2, %v1121_v34  ;;  %v1166_v21 = vmul.f32 %v4542_v19, %v1122_v35  ;;  %v1167_v15 = vmul.f32 %v6023_v28, %v1121_v34  ;;  %2731 = vrot.lane.b32.xlu1 %v4296_v55, %s3900_s29 }
 0x489   : > { %2729 = vrot.lane.b32.xlu0 %v4294_v54, %s3900_s29  ;;  %v1723_v32 = vrot.slane %v1718_v25, %v4343_v58  ;;  %v1727_v2 = vrot.slane %v1718_v25, %v4345_v59  ;;  %v1745_v16 = vrot.slane %v1718_v25, %v4347_v60  ;;  %v1749_v52 = vrot.slane %v1718_v25, %v4349_v61  ;;  %s5888_s29 = scalar_lea.hbm %s5955_s4, %s3539_s23 }
 0x48a   : > { %v1146_v19 = vadd.f32 %v1144_v36, %v1092_v56  ;;  %v1147_v23 = vadd.f32 %v1145_v29, %v1093_v18  ;;  %v1168_v5 = vadd.f32 %v1166_v21, %v1114_v62  ;;  %v1169_v4 = vadd.f32 %v1167_v15, %v1115_v51  ;;  %v1173_v0 = vpop.permute.xlu1 %1172  ;;  %v1171_v13 = vpop.permute.xlu0 %1170  ;;  %v6026_v18 = vld [vmem:[#allocation34_spill] sm:$0xff]  ;;  %v6027_v51 = vld [vmem:[#allocation35_spill] sm:$0xff] }
 0x48b   : > { %v1175_v50 = vsel %vm1174_vm1, %v1171_v13, %v1173_v0  ;;  %v1176_v1 = vsel %vm1174_vm1, %v1173_v0, %v1171_v13  ;;  %v4823_v34 = vrot.slane %v1723_v32, %v4343_v58  ;;  %v4826_v25 = vrot.slane %v1727_v2, %v4343_v58 }
 0x48c   : > { %v1198_v53 = vmul.f32 %v6024_v14, %v1176_v1  ;;  %v1199_v56 = vmul.f32 %v6025_v6, %v1175_v50  ;;  %v1220_v62 = vmul.f32 %v6026_v18, %v1176_v1  ;;  %v1221_v9 = vmul.f32 %v6027_v51, %v1175_v50  ;;  %2785 = vrot.lane.b32.xlu1 %v4296_v55, %s3901_s10 }
 0x48d   : > { %2783 = vrot.lane.b32.xlu0 %v4294_v54, %s3901_s10  ;;  %v1777_v35 = vrot.slane %v1772_v31, %v4343_v58  ;;  %v1781_v36 = vrot.slane %v1772_v31, %v4345_v59  ;;  %v4835_v1 = vrot.slane %v1745_v16, %v4347_v60  ;;  %v4838_v2 = vrot.slane %v1749_v52, %v4347_v60  ;;  %s3393_s10 = scalar_lea.sflag [#allocation4], %s4077_s12 }
 0x48e   : > { %v1200_v29 = vadd.f32 %v1198_v53, %v1146_v19  ;;  %v1201_v21 = vadd.f32 %v1199_v56, %v1147_v23  ;;  %v1222_v28 = vadd.f32 %v1220_v62, %v1168_v5  ;;  %v1223_v15 = vadd.f32 %v1221_v9, %v1169_v4  ;;  %v1227_v0 = vpop.permute.xlu1 %1226  ;;  %v1225_v13 = vpop.permute.xlu0 %1224  ;;  %v1826_v4 = vld [vmem:[#allocation5 + $0x54] sm:$0xf] }
 0x48f   : > { %v1229_v50 = vsel %vm1228_vm2, %v1225_v13, %v1227_v0  ;;  %v1230_v32 = vsel %vm1228_vm2, %v1227_v0, %v1225_v13  ;;  %v4848_v16 = vrot.slane %v1777_v35, %v4343_v58  ;;  %v4851_v52 = vrot.slane %v1781_v36, %v4343_v58  ;;  %v6030_v36 = vld [vmem:[#allocation36_spill] sm:$0xff]  ;;  %v6031_v13 = vld [vmem:[#allocation37_spill] sm:$0xff] }
 0x490   : > { %v1252_v14 = vmul.f32 %v4577_v30, %v1230_v32  ;;  %v1253_v19 = vmul.f32 %v4580_v8, %v1229_v50  ;;  %v1274_v23 = vmul.f32 %v4583_v26, %v1230_v32  ;;  %v1275_v5 = vmul.f32 %v4586_v41, %v1229_v50  ;;  %2839 = vrot.lane.b32.xlu1 %v4296_v55, %s3902_s6 }
 0x491   : > { %2837 = vrot.lane.b32.xlu0 %v4294_v54, %s3902_s6  ;;  %6028 = vst [vmem:[#allocation31_spill] sm:$0xff] %v4848_v16  ;;  %6029 = vst [vmem:[#allocation32_spill] sm:$0xff] %v4851_v52  ;;  %v1799_v30 = vrot.slane %v1772_v31, %v4347_v60  ;;  %v1803_v26 = vrot.slane %v1772_v31, %v4349_v61  ;;  %v1831_v9 = vrot.slane %v1826_v4, %v4343_v58  ;;  %s3780_s6 = scalar_lea.vmem %s5898_s28, 2048 }
 0x492   : > { %v1254_v8 = vadd.f32 %v1252_v14, %v1200_v29  ;;  %v1255_v41 = vadd.f32 %v1253_v19, %v1201_v21  ;;  %v1276_v53 = vadd.f32 %v1274_v23, %v1222_v28  ;;  %v1277_v6 = vadd.f32 %v1275_v5, %v1223_v15  ;;  %v1281_v56 = vpop.permute.xlu1 %1280  ;;  %v1279_v18 = vpop.permute.xlu0 %1278  ;;  %v6032_v29 = vld [vmem:[#allocation38_spill] sm:$0xff]  ;;  %v6033_v28 = vld [vmem:[#allocation39_spill] sm:$0xff]  ;;  %p3781_p4 = scmp.ne.s32.totalorder %s5898_s28, %s3780_s6 }
 0x493   : > { %v1283_v62 = vsel %vm1282_vm3, %v1279_v18, %v1281_v56  ;;  %v1284_v51 = vsel %vm1282_vm3, %v1281_v56, %v1279_v18  ;;  %v1835_v35 = vrot.slane %v1826_v4, %v4345_v59  ;;  %v4869_v50 = vrot.slane %v1799_v30, %v4347_v60 }
 0x494   : > { %v1306_v0 = vmul.f32 %v6030_v36, %v1284_v51  ;;  %v1307_v31 = vmul.f32 %v6031_v13, %v1283_v62  ;;  %v1328_v21 = vmul.f32 %v6032_v29, %v1284_v51  ;;  %v1329_v15 = vmul.f32 %v6033_v28, %v1283_v62  ;;  %2893 = vrot.lane.b32.xlu1 %v4296_v55, %s3903_s8  ;;  %v4876_v36 = vld [vmem:[#allocation5 + $0x58] sm:$0xf]  ;;  %p3782_p6 = pnand %p3781_p4, %p4029_p12 }
 0x495   : > { %2891 = vrot.lane.b32.xlu0 %v4294_v54, %s3903_s8  ;;  %v4872_v32 = vrot.slane %v1803_v26, %v4347_v60  ;;  %v1853_v14 = vrot.slane %v1826_v4, %v4347_v60  ;;  %v1857_v19 = vrot.slane %v1826_v4, %v4349_v61  ;;  %v4883_v26 = vrot.slane %v1831_v9, %v4343_v58  ;;  %v6037_v4 = vld [vmem:[#allocation40_spill] sm:$0xff]  ;;  %s3911_s8 = smov [#allocation7]  }
 0x496   : > { %v1308_v23 = vadd.f32 %v1306_v0, %v1254_v8  ;;  %v1309_v5 = vadd.f32 %v1307_v31, %v1255_v41  ;;  %v1330_v56 = vadd.f32 %v1328_v21, %v1276_v53  ;;  %v1331_v18 = vadd.f32 %v1329_v15, %v1277_v6  ;;  %v1335_v62 = vpop.permute.xlu1 %1334  ;;  %v1333_v51 = vpop.permute.xlu0 %1332  ;;  %v6038_v41 = vld [vmem:[#allocation41_spill] sm:$0xff]  ;;  %v6039_v6 = vld [vmem:[#allocation42_spill] sm:$0xff]  ;;  %v6040_v31 = vld [vmem:[#allocation43_spill] sm:$0xff]  ;;  %p3783_p8 = pneg %p3782_p6 }
 0x497   : > { %6034 = vst [vmem:[#allocation33_spill] sm:$0xff] %v4872_v32  ;;  %v1337_v13 = vsel %vm1336_vm4, %v1333_v51, %v1335_v62  ;;  %v1338_v30 = vsel %vm1336_vm4, %v1335_v62, %v1333_v51  ;;  %6035 = vst [vmem:[#allocation34_spill] sm:$0xff] %v4883_v26  ;;  %v4886_v29 = vrot.slane %v1835_v35, %v4343_v58  ;;  %vm1714_vm11 = vcmp.lt.s32.totalorder %v4460_v48, 14 }
 0x498   : > { %v1360_v8 = vmul.f32 %v6037_v4, %v1338_v30  ;;  %v1361_v53 = vmul.f32 %v6038_v41, %v1337_v13  ;;  %v1382_v0 = vmul.f32 %v6039_v6, %v1338_v30  ;;  %v1383_v21 = vmul.f32 %v6040_v31, %v1337_v13  ;;  %2947 = vrot.lane.b32.xlu1 %v4296_v55, %s3904_s5  ;;  %v1934_v6 = vld [vmem:[#allocation5 + $0x5c] sm:$0xf] }
 0x499   : > { %6036 = vst [vmem:[#allocation35_spill] sm:$0xff] %v4886_v29  ;;  %2945 = vrot.lane.b32.xlu0 %v4294_v54, %s3904_s5  ;;  %v4895_v28 = vrot.slane %v1853_v14, %v4347_v60  ;;  %v4898_v9 = vrot.slane %v1857_v19, %v4347_v60  ;;  %v1885_v35 = vrot.slane %v4876_v36, %v4343_v58  ;;  %vm1768_vm12 = vcmp.lt.s32.totalorder %v4460_v48, 13  ;;  %s3784_s5 = sshll.u32 %s3911_s8, 4  ;;  %s3785_s5 = int_to_ptr.vmem [resolvable:$false] %s3784_s5 }
 0x49a   : > { %v1889_v15 = vrot.slane %v4876_v36, %v4345_v59  ;;  %v1362_v62 = vadd.f32 %v1360_v8, %v1308_v23  ;;  %v1363_v51 = vadd.f32 %v1361_v53, %v1309_v5  ;;  %v1384_v13 = vadd.f32 %v1382_v0, %v1330_v56  ;;  %v1389_v4 = vpop.permute.xlu1 %1388  ;;  %v1387_v41 = vpop.permute.xlu0 %1386  ;;  %p3787_p10 = scmp.lt.s32.totalorder %s5898_s28, %s3785_s5 }
 0x49b   : > { %6041 = vst [vmem:[#allocation36_spill] sm:$0xff] %v4895_v28  ;;  %6042 = vst [vmem:[#allocation37_spill] sm:$0xff] %v4898_v9  ;;  %v1385_v30 = vadd.f32 %v1383_v21, %v1331_v18  ;;  %v1391_v14 = vsel %vm1390_vm5, %v1387_v41, %v1389_v4  ;;  %v1392_v19 = vsel %vm1390_vm5, %v1389_v4, %v1387_v41  ;;  %v2035_v41 = vld [vmem:[#allocation5 + $0x64] sm:$0xf]  ;;  %vm1822_vm13 = vcmp.lt.s32.totalorder %v4460_v48, 3 }
 0x49c   : > { %v1907_v31 = vrot.slane %v4876_v36, %v4347_v60  ;;  %v1911_v29 = vrot.slane %v4876_v36, %v4349_v61  ;;  %v1414_v23 = vmul.f32 %v4639_v7, %v1392_v19  ;;  %v1415_v5 = vmul.f32 %v4642_v38, %v1391_v14  ;;  %3001 = vrot.lane.b32.xlu1 %v4296_v55, %s3905_s7 }
 0x49d   : > { %v1436_v56 = vmul.f32 %v4651_v46, %v1392_v19  ;;  %v1437_v18 = vmul.f32 %v4654_v22, %v1391_v14  ;;  %2999 = vrot.lane.b32.xlu0 %v4294_v54, %s3905_s7  ;;  %v4919_v8 = vrot.slane %v1885_v35, %v4343_v58  ;;  %v4922_v53 = vrot.slane %v1889_v15, %v4343_v58  ;;  %s3786_s7 = scalar_lea.vmem %s3785_s5, 4096 }
 0x49e   : > { %v1939_v36 = vrot.slane %v1934_v6, %v4343_v58  ;;  %v1943_v7 = vrot.slane %v1934_v6, %v4345_v59  ;;  %v1416_v38 = vadd.f32 %v1414_v23, %v1362_v62  ;;  %v1417_v0 = vadd.f32 %v1415_v5, %v1363_v51  ;;  %v1443_v22 = vpop.permute.xlu1 %1442  ;;  %v1441_v4 = vpop.permute.xlu0 %1440  ;;  %p3788_p13 = scmp.lt.s32.totalorder %s3786_s7, %s3780_s6 }
 0x49f   : > { %6043 = vst [vmem:[#allocation38_spill] sm:$0xff] %v4919_v8  ;;  %6044 = vst [vmem:[#allocation39_spill] sm:$0xff] %v4922_v53  ;;  %v1438_v46 = vadd.f32 %v1436_v56, %v1384_v13  ;;  %v1439_v21 = vadd.f32 %v1437_v18, %v1385_v30  ;;  %v1445_v14 = vsel %vm1444_vm6, %v1441_v4, %v1443_v22  ;;  %v2089_v30 = vld [vmem:[#allocation5 + $0x68] sm:$0xf]  ;;  %vm1876_vm14 = vcmp.lt.s32.totalorder %v4460_v48, 2 }
 0x4a0   : > { %v1446_v35 = vsel %vm1444_vm6, %v1443_v22, %v1441_v4  ;;  %v1961_v15 = vrot.slane %v1934_v6, %v4347_v60  ;;  %v1965_v19 = vrot.slane %v1934_v6, %v4349_v61  ;;  %v1469_v62 = vmul.f32 %v4667_v40, %v1445_v14  ;;  %3055 = vrot.lane.b32.xlu1 %v4296_v55, %s3906_s26  ;;  %v2143_v4 = vld [vmem:[#allocation5 + $0x6c] sm:$0xf]  ;;  %p3789_p3 = por %p3788_p13, %p3787_p10 }
 0x4a1   : > { %v1468_v53 = vmul.f32 %v4664_v3, %v1446_v35  ;;  %v1490_v51 = vmul.f32 %v4685_v47, %v1446_v35  ;;  %v1491_v13 = vmul.f32 %v4688_v10, %v1445_v14  ;;  %3053 = vrot.lane.b32.xlu0 %v4294_v54, %s3906_s26  ;;  %v2040_v23 = vrot.slane %v2035_v41, %v4343_v58 }
 0x4a2   : > { %v2044_v5 = vrot.slane %v2035_v41, %v4345_v59  ;;  %v2062_v6 = vrot.slane %v2035_v41, %v4347_v60  ;;  %v2066_v3 = vrot.slane %v2035_v41, %v4349_v61  ;;  %v4944_v40 = vadd.f32 %v1469_v62, %v1417_v0  ;;  %v4950_v18 = vpop.permute.xlu1 %1496  ;;  %v4952_v22 = vpop.permute.xlu0 %1494  ;;  %p3790_p7 = pnand %p3789_p3, %p3783_p8 }
 0x4a3   : > { %v4942_v56 = vadd.f32 %v1468_v53, %v1416_v38  ;;  %v4946_v47 = vadd.f32 %v1490_v51, %v1438_v46  ;;  %v4948_v10 = vadd.f32 %v1491_v13, %v1439_v21  ;;  %v2094_v14 = vrot.slane %v2089_v30, %v4343_v58 }
 0x4a4   : > { %v2098_v35 = vrot.slane %v2089_v30, %v4345_v59  ;;  %v2116_v8 = vrot.slane %v2089_v30, %v4347_v60  ;;  %v2120_v53 = vrot.slane %v2089_v30, %v4349_v61  ;;  %3109 = vrot.lane.b32.xlu1 %v4296_v55, %s3907_s25  ;;  %v4960_v38 = vrot.slane %v1907_v31, %v4347_v60 }
 0x4a5   : > { %v4963_v0 = vrot.slane %v1911_v29, %v4347_v60  ;;  %v4966_v46 = vrot.slane %v1939_v36, %v4343_v58  ;;  %v4969_v21 = vrot.slane %v1943_v7, %v4343_v58  ;;  %3107 = vrot.lane.b32.xlu0 %v4294_v54, %s3907_s25  ;;  %v4973_v41 = vrot.slane %v1961_v15, %v4347_v60  ;;  %v2197_v29 = vld [vmem:[#allocation5 + $0x70] sm:$0xf] }
 0x4a6   : > { %6045 = vst [vmem:[#allocation40_spill] sm:$0xff] %v4960_v38  ;;  %v4976_v62 = vrot.slane %v1965_v19, %v4347_v60  ;;  %v2148_v31 = vrot.slane %v2143_v4, %v4343_v58  ;;  %v2152_v51 = vrot.slane %v2143_v4, %v4345_v59  ;;  %v4980_v13 = vpop.permute.xlu1 %1550  ;;  %v4982_v36 = vpop.permute.xlu0 %1548  ;;  %v4985_v7 = vrot.slane %v2040_v23, %v4343_v58 }
 0x4a7   : > { %6046 = vst [vmem:[#allocation41_spill] sm:$0xff] %v4963_v0  ;;  %6047 = vst [vmem:[#allocation42_spill] sm:$0xff] %v4966_v46  ;;  %v4988_v30 = vrot.slane %v2044_v5, %v4343_v58  ;;  %v4991_v15 = vrot.slane %v2062_v6, %v4347_v60  ;;  %v4994_v19 = vrot.slane %v2066_v3, %v4347_v60  ;;  %v2251_v5 = vld [vmem:[#allocation5 + $0x74] sm:$0xf]  ;;  %vm1930_vm15 = vcmp.lt.s32.totalorder %v4460_v48, 1 }
 0x4a8   : > { %6048 = vst [vmem:[#allocation43_spill] sm:$0xff] %v4969_v21  ;;  %6049 = vst [vmem:[#allocation44_spill] sm:$0xff] %v4973_v41  ;;  %v4997_v21 = vrot.slane %v2094_v14, %v4343_v58  ;;  %v5000_v46 = vrot.slane %v2098_v35, %v4343_v58  ;;  %v5006_v23 = vrot.slane %v2120_v53, %v4347_v60  ;;  %3163 = vrot.lane.b32.xlu1 %v4296_v55, %s3908_s11  ;;  %v2305_v35 = vld [vmem:[#allocation5 + $0x78] sm:$0xf] }
 0x4a9   : > { %6050 = vst [vmem:[#allocation45_spill] sm:$0xff] %v4976_v62  ;;  %6051 = vst [vmem:[#allocation46_spill] sm:$0xff] %v4985_v7  ;;  %v5003_v62 = vrot.slane %v2116_v8, %v4347_v60  ;;  %v2170_v6 = vrot.slane %v2143_v4, %v4347_v60  ;;  %v2174_v3 = vrot.slane %v2143_v4, %v4349_v61  ;;  %3161 = vrot.lane.b32.xlu0 %v4294_v54, %s3908_s11 }
 0x4aa   : > { %6052 = vst [vmem:[#allocation47_spill] sm:$0xff] %v4988_v30  ;;  %6053 = vst [vmem:[#allocation48_spill] sm:$0xff] %v4991_v15  ;;  %v2202_v14 = vrot.slane %v2197_v29, %v4343_v58  ;;  %v5015_v8 = vrot.slane %v2148_v31, %v4343_v58  ;;  %v5018_v53 = vrot.slane %v2152_v51, %v4343_v58  ;;  %v5024_v4 = vpop.permute.xlu0 %1602  ;;  %vm2031_vm0 = vcmp.lt.s32.totalorder %v4460_v48, 127 }
 0x4ab   : > { %6054 = vst [vmem:[#allocation49_spill] sm:$0xff] %v4994_v19  ;;  %6055 = vst [vmem:[#allocation50_spill] sm:$0xff] %v4997_v21  ;;  %v2206_v21 = vrot.slane %v2197_v29, %v4345_v59  ;;  %v2256_v30 = vrot.slane %v2251_v5, %v4343_v58  ;;  %v2260_v7 = vrot.slane %v2251_v5, %v4345_v59  ;;  %vm2085_vm1 = vcmp.lt.s32.totalorder %v4460_v48, 126 }
 0x4ac   : > { %6056 = vst [vmem:[#allocation51_spill] sm:$0xff] %v5000_v46  ;;  %6057 = vst [vmem:[#allocation52_spill] sm:$0xff] %v5003_v62  ;;  %v2224_v46 = vrot.slane %v2197_v29, %v4347_v60  ;;  %v5022_v62 = vpop.permute.xlu1 %1604  ;;  %v2278_v19 = vrot.slane %v2251_v5, %v4347_v60  ;;  %v2282_v31 = vrot.slane %v2251_v5, %v4349_v61  ;;  %3217 = vrot.lane.b32.xlu1 %v4296_v55, %s3909_s14 }
 0x4ad   : > { %6058 = vst [vmem:[#allocation53_spill] sm:$0xff] %v5006_v23  ;;  %6059 = vst [vmem:[#allocation54_spill] sm:$0xff] %v5015_v8  ;;  %v2228_v23 = vrot.slane %v2197_v29, %v4349_v61  ;;  %v2359_v8 = vld [vmem:[#allocation5 + $0x7c] sm:$0xf]  ;;  %v2310_v51 = vrot.slane %v2305_v35, %v4343_v58  ;;  %v2332_v15 = vrot.slane %v2305_v35, %v4347_v60  ;;  %3215 = vrot.lane.b32.xlu0 %v4294_v54, %s3909_s14 }
 0x4ae   : > { %6060 = vst [vmem:[#allocation55_spill] sm:$0xff] %v5018_v53  ;;  %v2314_v53 = vrot.slane %v2305_v35, %v4345_v59  ;;  %v2336_v29 = vrot.slane %v2305_v35, %v4349_v61  ;;  %v5036_v41 = vrot.slane %v2170_v6, %v4347_v60  ;;  %v5039_v0 = vrot.slane %v2174_v3, %v4347_v60  ;;  %v2413_v3 = vld [vmem:[#allocation5 + $0x80] sm:$0xf] }
 0x4af   : > { %v5042_v5 = vrot.slane %v2202_v14, %v4343_v58  ;;  %v5045_v38 = vrot.slane %v2206_v21, %v4343_v58  ;;  %v5049_v26 = vrot.slane %v2224_v46, %v4347_v60  ;;  %v5052_v35 = vrot.slane %v2228_v23, %v4347_v60  ;;  %v5058_v14 = vpop.permute.xlu0 %1656 }
 0x4b0   : > { %6061 = vst [vmem:[#allocation56_spill] sm:$0xff] %v5036_v41  ;;  %6062 = vst [vmem:[#allocation57_spill] sm:$0xff] %v5039_v0  ;;  %v2364_v6 = vrot.slane %v2359_v8, %v4343_v58  ;;  %v2368_v41 = vrot.slane %v2359_v8, %v4345_v59  ;;  %v5056_v0 = vpop.permute.xlu1 %1658  ;;  %v5061_v21 = vrot.slane %v2256_v30, %v4343_v58  ;;  %3271 = vrot.lane.b32.xlu1 %v4296_v55, %s3910_s21 }
 0x4b1   : > { %6063 = vst [vmem:[#allocation58_spill] sm:$0xff] %v5042_v5  ;;  %6064 = vst [vmem:[#allocation59_spill] sm:$0xff] %v5045_v38  ;;  %v5064_v38 = vrot.slane %v2260_v7, %v4343_v58  ;;  %v5067_v46 = vrot.slane %v2278_v19, %v4347_v60  ;;  %v5070_v23 = vrot.slane %v2282_v31, %v4347_v60  ;;  %v2467_v7 = vld [vmem:[#allocation5 + $0x84] sm:$0xf]  ;;  %3269 = vrot.lane.b32.xlu0 %v4294_v54, %s3910_s21 }
 0x4b2   : > { %6065 = vst [vmem:[#allocation60_spill] sm:$0xff] %v5049_v26  ;;  %6066 = vst [vmem:[#allocation61_spill] sm:$0xff] %v5052_v35  ;;  %v5073_v5 = vrot.slane %v2310_v51, %v4343_v58  ;;  %v5076_v35 = vrot.slane %v2314_v53, %v4343_v58  ;;  %v5079_v26 = vrot.slane %v2332_v15, %v4347_v60  ;;  %v2521_v53 = vld [vmem:[#allocation5 + $0x88] sm:$0xf]  ;;  %vm2139_vm2 = vcmp.lt.s32.totalorder %v4460_v48, 125 }
 0x4b3   : > { %6067 = vst [vmem:[#allocation62_spill] sm:$0xff] %v5061_v21  ;;  %6068 = vst [vmem:[#allocation63_spill] sm:$0xff] %v5064_v38  ;;  %v5082_v30 = vrot.slane %v2336_v29, %v4347_v60  ;;  %v2386_v19 = vrot.slane %v2359_v8, %v4347_v60  ;;  %v2390_v31 = vrot.slane %v2359_v8, %v4349_v61  ;;  %v5100_v8 = vpop.permute.xlu0 %1710  ;;  %vm2193_vm3 = vcmp.lt.s32.totalorder %v4460_v48, 115 }
 0x4b4   : > { %6069 = vst [vmem:[#allocation64_spill] sm:$0xff] %v5067_v46  ;;  %6070 = vst [vmem:[#allocation65_spill] sm:$0xff] %v5070_v23  ;;  %v2418_v51 = vrot.slane %v2413_v3, %v4343_v58  ;;  %v5091_v15 = vrot.slane %v2364_v6, %v4343_v58  ;;  %v5094_v29 = vrot.slane %v2368_v41, %v4343_v58  ;;  %vm2247_vm4 = vcmp.lt.s32.totalorder %v4460_v48, 114 }
 0x4b5   : > { %6071 = vst [vmem:[#allocation66_spill] sm:$0xff] %v5073_v5  ;;  %6072 = vst [vmem:[#allocation67_spill] sm:$0xff] %v5076_v35  ;;  %v2422_v5 = vrot.slane %v2413_v3, %v4345_v59  ;;  %v2440_v35 = vrot.slane %v2413_v3, %v4347_v60  ;;  %v2444_v55 = vrot.slane %v2413_v3, %v4349_v61  ;;  %vm2301_vm5 = vcmp.lt.s32.totalorder %v4460_v48, 113 }
 0x4b6   : > { %6073 = vst [vmem:[#allocation68_spill] sm:$0xff] %v5079_v26  ;;  %6074 = vst [vmem:[#allocation69_spill] sm:$0xff] %v5082_v30  ;;  %v5098_v30 = vpop.permute.xlu1 %1712  ;;  %v2472_v26 = vrot.slane %v2467_v7, %v4343_v58  ;;  %v2476_v38 = vrot.slane %v2467_v7, %v4345_v59  ;;  %v2494_v54 = vrot.slane %v2467_v7, %v4347_v60  ;;  %vm2355_vm6 = vcmp.lt.s32.totalorder %v4460_v48, 112 }
 0x4b7   : > { %6075 = vst [vmem:[#allocation70_spill] sm:$0xff] %v5091_v15  ;;  %6076 = vst [vmem:[#allocation71_spill] sm:$0xff] %v5094_v29  ;;  %v2498_v6 = vrot.slane %v2467_v7, %v4349_v61  ;;  %v2575_v15 = vld [vmem:[#allocation5 + $0x8c] sm:$0xf]  ;;  %v2526_v41 = vrot.slane %v2521_v53, %v4343_v58  ;;  %v2530_v29 = vrot.slane %v2521_v53, %v4345_v59 }
 0x4b8   : > { %v2548_v21 = vrot.slane %v2521_v53, %v4347_v60  ;;  %v2552_v3 = vrot.slane %v2521_v53, %v4349_v61  ;;  %v5111_v23 = vrot.slane %v2386_v19, %v4347_v60  ;;  %v5114_v46 = vrot.slane %v2390_v31, %v4347_v60  ;;  %v5132_v31 = vpop.permute.xlu0 %1764 }
 0x4b9   : > { %v5117_v9 = vrot.slane %v2418_v51, %v4343_v58  ;;  %v5120_v7 = vrot.slane %v2422_v5, %v4343_v58  ;;  %v5123_v28 = vrot.slane %v2440_v35, %v4347_v60  ;;  %v5126_v52 = vrot.slane %v2444_v55, %v4347_v60 }
 0x4ba   : > { %6077 = vst [vmem:[#allocation72_spill] sm:$0xff] %v5111_v23  ;;  %6078 = vst [vmem:[#allocation73_spill] sm:$0xff] %v5114_v46  ;;  %v2580_v53 = vrot.slane %v2575_v15, %v4343_v58  ;;  %v2584_v19 = vrot.slane %v2575_v15, %v4345_v59  ;;  %v2629_v23 = vld [vmem:[#allocation5 + $0x90] sm:$0xf]  ;;  %v5130_v16 = vpop.permute.xlu1 %1766  ;;  %v5135_v51 = vrot.slane %v2472_v26, %v4343_v58 }
 0x4bb   : > { %6079 = vst [vmem:[#allocation74_spill] sm:$0xff] %v5117_v9  ;;  %6080 = vst [vmem:[#allocation75_spill] sm:$0xff] %v5120_v7  ;;  %v5138_v5 = vrot.slane %v2476_v38, %v4343_v58  ;;  %v5141_v35 = vrot.slane %v2494_v54, %v4347_v60  ;;  %v5144_v55 = vrot.slane %v2498_v6, %v4347_v60  ;;  %v2683_v38 = vld [vmem:[#allocation5 + $0x94] sm:$0xf] }
 0x4bc   : > { %6081 = vst [vmem:[#allocation76_spill] sm:$0xff] %v5123_v28  ;;  %6082 = vst [vmem:[#allocation77_spill] sm:$0xff] %v5126_v52  ;;  %v5147_v7 = vrot.slane %v2526_v41, %v4343_v58  ;;  %v5150_v9 = vrot.slane %v2530_v29, %v4343_v58  ;;  %v5153_v52 = vrot.slane %v2548_v21, %v4347_v60 }
 0x4bd   : > { %6083 = vst [vmem:[#allocation78_spill] sm:$0xff] %v5135_v51  ;;  %6084 = vst [vmem:[#allocation79_spill] sm:$0xff] %v5138_v5  ;;  %v5156_v26 = vrot.slane %v2552_v3, %v4347_v60  ;;  %v2602_v54 = vrot.slane %v2575_v15, %v4347_v60  ;;  %v2606_v6 = vrot.slane %v2575_v15, %v4349_v61 }
 0x4be   : > { %6085 = vst [vmem:[#allocation80_spill] sm:$0xff] %v5141_v35  ;;  %6086 = vst [vmem:[#allocation81_spill] sm:$0xff] %v5144_v55  ;;  %v2634_v5 = vrot.slane %v2629_v23, %v4343_v58  ;;  %v2638_v41 = vrot.slane %v2629_v23, %v4345_v59  ;;  %v5164_v29 = vrot.slane %v2580_v53, %v4343_v58 }
 0x4bf   : > { %6087 = vst [vmem:[#allocation82_spill] sm:$0xff] %v5147_v7  ;;  %6088 = vst [vmem:[#allocation83_spill] sm:$0xff] %v5150_v9  ;;  %v2737_v7 = vld [vmem:[#allocation5 + $0x98] sm:$0xf]  ;;  %v5167_v21 = vrot.slane %v2584_v19, %v4343_v58  ;;  %v2656_v3 = vrot.slane %v2629_v23, %v4347_v60  ;;  %v2660_v9 = vrot.slane %v2629_v23, %v4349_v61 }
 0x4c0   : > { %6089 = vst [vmem:[#allocation84_spill] sm:$0xff] %v5153_v52  ;;  %6090 = vst [vmem:[#allocation85_spill] sm:$0xff] %v5156_v26  ;;  %v5171_v26 = vpop.permute.xlu1 %1820  ;;  %v5173_v52 = vpop.permute.xlu0 %1818  ;;  %v2688_v15 = vrot.slane %v2683_v38, %v4343_v58  ;;  %v2692_v51 = vrot.slane %v2683_v38, %v4345_v59  ;;  %v2710_v55 = vrot.slane %v2683_v38, %v4347_v60 }
 0x4c1   : > { %6091 = vst [vmem:[#allocation86_spill] sm:$0xff] %v5164_v29  ;;  %6092 = vst [vmem:[#allocation87_spill] sm:$0xff] %v5167_v21  ;;  %v2714_v53 = vrot.slane %v2683_v38, %v4349_v61  ;;  %v2791_v29 = vld [vmem:[#allocation5 + $0x9c] sm:$0xf]  ;;  %v2742_v19 = vrot.slane %v2737_v7, %v4343_v58  ;;  %v2746_v21 = vrot.slane %v2737_v7, %v4345_v59 }
 0x4c2   : > { %6093 = vst [vmem:[#allocation88_spill] sm:$0xff] %v5171_v26  ;;  %6094 = vst [vmem:[#allocation89_spill] sm:$0xff] %v5173_v52  ;;  %v2764_v35 = vrot.slane %v2737_v7, %v4347_v60  ;;  %v2768_v23 = vrot.slane %v2737_v7, %v4349_v61  ;;  %v5184_v28 = vrot.slane %v2602_v54, %v4347_v60 }
 0x4c3   : > { %v5187_v46 = vrot.slane %v2606_v6, %v4347_v60  ;;  %v5190_v52 = vrot.slane %v2634_v5, %v4343_v58  ;;  %v5193_v38 = vrot.slane %v2638_v41, %v4343_v58  ;;  %v5197_v26 = vrot.slane %v2656_v3, %v4347_v60  ;;  %v2845_v6 = vld [vmem:[#allocation5 + $0xa0] sm:$0xf] }
 0x4c4   : > { %6095 = vst [vmem:[#allocation90_spill] sm:$0xff] %v5184_v28  ;;  %v5200_v32 = vrot.slane %v2660_v9, %v4347_v60  ;;  %v2796_v7 = vrot.slane %v2791_v29, %v4343_v58  ;;  %v2800_v54 = vrot.slane %v2791_v29, %v4345_v59  ;;  %v5206_v5 = vpop.permute.xlu0 %1872  ;;  %v5209_v41 = vrot.slane %v2688_v15, %v4343_v58 }
 0x4c5   : > { %6096 = vst [vmem:[#allocation91_spill] sm:$0xff] %v5187_v46  ;;  %6097 = vst [vmem:[#allocation92_spill] sm:$0xff] %v5190_v52  ;;  %v5204_v46 = vpop.permute.xlu1 %1874  ;;  %v5215_v3 = vrot.slane %v2710_v55, %v4347_v60  ;;  %v5218_v9 = vrot.slane %v2714_v53, %v4347_v60  ;;  %v5221_v52 = vrot.slane %v2742_v19, %v4343_v58 }
 0x4c6   : > { %6098 = vst [vmem:[#allocation93_spill] sm:$0xff] %v5193_v38  ;;  %6099 = vst [vmem:[#allocation94_spill] sm:$0xff] %v5197_v26  ;;  %v5212_v38 = vrot.slane %v2692_v51, %v4343_v58  ;;  %v5227_v26 = vrot.slane %v2764_v35, %v4347_v60  ;;  %v5230_v15 = vrot.slane %v2768_v23, %v4347_v60  ;;  %v2899_v51 = vld [vmem:[#allocation5 + $0xa4] sm:$0xf] }
 0x4c7   : > { %6100 = vst [vmem:[#allocation95_spill] sm:$0xff] %v5200_v32  ;;  %6101 = vst [vmem:[#allocation96_spill] sm:$0xff] %v5209_v41  ;;  %v5224_v32 = vrot.slane %v2746_v21, %v4343_v58  ;;  %v2818_v55 = vrot.slane %v2791_v29, %v4347_v60  ;;  %v2822_v53 = vrot.slane %v2791_v29, %v4349_v61 }
 0x4c8   : > { %6102 = vst [vmem:[#allocation97_spill] sm:$0xff] %v5212_v38  ;;  %6103 = vst [vmem:[#allocation98_spill] sm:$0xff] %v5215_v3  ;;  %v2850_v38 = vrot.slane %v2845_v6, %v4343_v58  ;;  %v2854_v19 = vrot.slane %v2845_v6, %v4345_v59  ;;  %v5238_v21 = vrot.slane %v2796_v7, %v4343_v58 }
 0x4c9   : > { %6104 = vst [vmem:[#allocation99_spill] sm:$0xff] %v5218_v9  ;;  %6105 = vst [vmem:[#allocation100_spill] sm:$0xff] %v5221_v52  ;;  %v2953_v52 = vld [vmem:[#allocation5 + $0xa8] sm:$0xf]  ;;  %v5241_v35 = vrot.slane %v2800_v54, %v4343_v58  ;;  %v2872_v23 = vrot.slane %v2845_v6, %v4347_v60  ;;  %v2904_v29 = vrot.slane %v2899_v51, %v4343_v58 }
 0x4ca   : > { %6106 = vst [vmem:[#allocation101_spill] sm:$0xff] %v5224_v32  ;;  %6107 = vst [vmem:[#allocation102_spill] sm:$0xff] %v5227_v26  ;;  %v2876_v32 = vrot.slane %v2845_v6, %v4349_v61  ;;  %v5247_v26 = vpop.permute.xlu0 %1926  ;;  %v2908_v41 = vrot.slane %v2899_v51, %v4345_v59  ;;  %v2926_v9 = vrot.slane %v2899_v51, %v4347_v60 }
 0x4cb   : > { %6108 = vst [vmem:[#allocation103_spill] sm:$0xff] %v5230_v15  ;;  %6109 = vst [vmem:[#allocation104_spill] sm:$0xff] %v5238_v21  ;;  %v5245_v15 = vpop.permute.xlu1 %1928  ;;  %v2930_v7 = vrot.slane %v2899_v51, %v4349_v61  ;;  %v1499_v54 = vsel %vm1498_vm7, %v4952_v22, %v4950_v18  ;;  %v1500_v6 = vsel %vm1498_vm7, %v4950_v18, %v4952_v22  ;;  %vm2409_vm7 = vcmp.lt.s32.totalorder %v4460_v48, 111 }
 0x4cc   : > { %6110 = vst [vmem:[#allocation105_spill] sm:$0xff] %v5241_v35  ;;  %6111 = vst [vmem:[#allocation106_spill] sm:$0xff] %v5245_v15  ;;  %v2958_v35 = vrot.slane %v2953_v52, %v4343_v58  ;;  %v2962_v21 = vrot.slane %v2953_v52, %v4345_v59  ;;  %v5265_v3 = vrot.slane %v2818_v55, %v4347_v60 }
 0x4cd   : > { %6112 = vst [vmem:[#allocation107_spill] sm:$0xff] %v5247_v26  ;;  %v5268_v51 = vrot.slane %v2822_v53, %v4347_v60  ;;  %v5271_v28 = vrot.slane %v2850_v38, %v4343_v58  ;;  %v5274_v26 = vrot.slane %v2854_v19, %v4343_v58  ;;  %v5277_v18 = vrot.slane %v2872_v23, %v4347_v60 }
 0x4ce   : > { %6113 = vst [vmem:[#allocation108_spill] sm:$0xff] %v5265_v3  ;;  %v5280_v22 = vrot.slane %v2876_v32, %v4347_v60  ;;  %v2980_v15 = vrot.slane %v2953_v52, %v4347_v60  ;;  %v2984_v55 = vrot.slane %v2953_v52, %v4349_v61  ;;  %v1522_v3 = vmul.f32 %v4697_v57, %v1500_v6  ;;  %v5289_v19 = vpop.permute.xlu0 %2027 }
 0x4cf   : > { %6114 = vst [vmem:[#allocation109_spill] sm:$0xff] %v5271_v28  ;;  %6115 = vst [vmem:[#allocation110_spill] sm:$0xff] %v5274_v26  ;;  %v1523_v53 = vmul.f32 %v4700_v37, %v1499_v54  ;;  %v5287_v38 = vpop.permute.xlu1 %2029  ;;  %v5292_v23 = vrot.slane %v2904_v29, %v4343_v58  ;;  %v5295_v32 = vrot.slane %v2908_v41, %v4343_v58  ;;  %v3007_v26 = vld [vmem:[#allocation5 + $0xac] sm:$0xf] }
 0x4d0   : > { %6116 = vst [vmem:[#allocation111_spill] sm:$0xff] %v5280_v22  ;;  %v5298_v28 = vrot.slane %v2926_v9, %v4347_v60  ;;  %v5301_v57 = vrot.slane %v2930_v7, %v4347_v60  ;;  %v5304_v37 = vrot.slane %v2958_v35, %v4343_v58  ;;  %v5307_v52 = vrot.slane %v2962_v21, %v4343_v58 }
 0x4d1   : > { %v1544_v22 = vmul.f32 %v4710_v17, %v1500_v6  ;;  %v1545_v29 = vmul.f32 %v4713_v24, %v1499_v54  ;;  %v1553_v41 = vsel %vm1552_vm8, %v4982_v36, %v4980_v13  ;;  %v1554_v9 = vsel %vm1552_vm8, %v4980_v13, %v4982_v36 }
 0x4d2   : > { %6117 = vst [vmem:[#allocation112_spill] sm:$0xff] %v5304_v37  ;;  %6118 = vst [vmem:[#allocation113_spill] sm:$0xff] %v5307_v52  ;;  %v5321_v35 = vrot.slane %v2980_v15, %v4347_v60  ;;  %v5324_v21 = vrot.slane %v2984_v55, %v4347_v60  ;;  %v3012_v17 = vrot.slane %v3007_v26, %v4343_v58  ;;  %v5332_v52 = vpop.permute.xlu0 %2081  ;;  %v5336_v15 = vld [vmem:[#allocation5 + $0xb0] sm:$0xf]  ;;  %vm2463_vm8 = vcmp.lt.s32.totalorder %v4460_v48, 110 }
 0x4d3   : > { %v3016_v24 = vrot.slane %v3007_v26, %v4345_v59  ;;  %v1524_v7 = vadd.f32 %v1522_v3, %v4942_v56  ;;  %v1525_v54 = vadd.f32 %v1523_v53, %v4944_v40  ;;  %v5330_v6 = vpop.permute.xlu1 %2083  ;;  %v3034_v13 = vrot.slane %v3007_v26, %v4347_v60 }
 0x4d4   : > { %6119 = vst [vmem:[#allocation114_spill] sm:$0xff] %v5321_v35  ;;  %6120 = vst [vmem:[#allocation115_spill] sm:$0xff] %v5324_v21  ;;  %v3038_v36 = vrot.slane %v3007_v26, %v4349_v61  ;;  %v1576_v55 = vmul.f32 %v4731_v20, %v1554_v9  ;;  %v1577_v37 = vmul.f32 %v4734_v11, %v1553_v41 }
 0x4d5   : > { %v1607_v56 = vsel %vm1606_vm9, %v5024_v4, %v5022_v62  ;;  %v1608_v40 = vsel %vm1606_vm9, %v5022_v62, %v5024_v4  ;;  %v1546_v26 = vadd.f32 %v1544_v22, %v4946_v47  ;;  %v1547_v3 = vadd.f32 %v1545_v29, %v4948_v10 }
 0x4d6   : > { %v1598_v20 = vmul.f32 %v4743_v12, %v1554_v9  ;;  %v1599_v11 = vmul.f32 %v4746_v27, %v1553_v41  ;;  %v5354_v53 = vrot.slane %v3012_v17, %v4343_v58  ;;  %v5357_v21 = vrot.slane %v3016_v24, %v4343_v58  ;;  %v5376_v22 = vpop.permute.xlu0 %2135 }
 0x4d7   : > { %v3066_v35 = vrot.slane %v5336_v15, %v4343_v58  ;;  %v3070_v62 = vrot.slane %v5336_v15, %v4345_v59  ;;  %v1652_v47 = vmul.f32 %v4777_v33, %v1608_v40  ;;  %v1653_v10 = vmul.f32 %v4780_v63, %v1607_v56  ;;  %v5374_v4 = vpop.permute.xlu1 %2137 }
 0x4d8   : > { %6121 = vst [vmem:[#allocation116_spill] sm:$0xff] %v5357_v21  ;;  %v1661_v12 = vsel %vm1660_vm10, %v5058_v14, %v5056_v0  ;;  %v1662_v27 = vsel %vm1660_vm10, %v5056_v0, %v5058_v14  ;;  %v1578_v29 = vadd.f32 %v1576_v55, %v1524_v7  ;;  %v1579_v33 = vadd.f32 %v1577_v37, %v1525_v54 }
 0x4d9   : > { %v5379_v63 = vrot.slane %v3034_v13, %v4347_v60  ;;  %v5382_v41 = vrot.slane %v3038_v36, %v4347_v60  ;;  %v1600_v9 = vadd.f32 %v1598_v20, %v1546_v26  ;;  %v1601_v17 = vadd.f32 %v1599_v11, %v1547_v3 }
 0x4da   : > { %v1630_v24 = vmul.f32 %v4756_v43, %v1608_v40  ;;  %v1631_v0 = vmul.f32 %v4759_v42, %v1607_v56  ;;  %v1706_v14 = vmul.f32 %v4802_v44, %v1662_v27  ;;  %v1707_v21 = vmul.f32 %v4805_v45, %v1661_v12  ;;  %v5399_v42 = vpop.permute.xlu0 %2189 }
 0x4db   : > { %v1715_v37 = vsel %vm1714_vm11, %v5100_v8, %v5098_v30  ;;  %v1716_v7 = vsel %vm1714_vm11, %v5098_v30, %v5100_v8  ;;  %v1654_v54 = vadd.f32 %v1652_v47, %v1600_v9  ;;  %v1655_v43 = vadd.f32 %v1653_v10, %v1601_v17  ;;  %v5397_v13 = vpop.permute.xlu1 %2191  ;;  %v6125_v10 = vld [vmem:[#allocation88_spill] sm:$0xff] }
 0x4dc   : > { %v5402_v44 = vrot.slane %v3066_v35, %v4343_v58  ;;  %v5405_v45 = vrot.slane %v3070_v62, %v4343_v58  ;;  %v1684_v36 = vmul.f32 %v4789_v39, %v1662_v27  ;;  %v1685_v55 = vmul.f32 %v4792_v49, %v1661_v12  ;;  %v6124_v62 = vld [vmem:[#allocation33_spill] sm:$0xff]  ;;  %v6128_v17 = vld [vmem:[#allocation32_spill] sm:$0xff] }
 0x4dd   : > { %v1769_v30 = vsel %vm1768_vm12, %v5132_v31, %v5130_v16  ;;  %v1770_v8 = vsel %vm1768_vm12, %v5130_v16, %v5132_v31  ;;  %v1632_v56 = vadd.f32 %v1630_v24, %v1578_v29  ;;  %v1633_v35 = vadd.f32 %v1631_v0, %v1579_v33  ;;  %v6126_v12 = vld [vmem:[#allocation89_spill] sm:$0xff]  ;;  %v6127_v33 = vld [vmem:[#allocation31_spill] sm:$0xff]  ;;  %v6129_v0 = vld [vmem:[#allocation36_spill] sm:$0xff] }
 0x4de   : > { %6122 = vst [vmem:[#allocation117_spill] sm:$0xff] %v5402_v44  ;;  %6123 = vst [vmem:[#allocation118_spill] sm:$0xff] %v5405_v45  ;;  %v1760_v40 = vmul.f32 %v4835_v1, %v1716_v7  ;;  %v1761_v26 = vmul.f32 %v4838_v2, %v1715_v37  ;;  %v1708_v3 = vadd.f32 %v1706_v14, %v1654_v54  ;;  %v5433_v31 = vpop.permute.xlu0 %2243  ;;  %vm2517_vm9 = vcmp.lt.s32.totalorder %v4460_v48, 109 }
 0x4df   : > { %v1709_v39 = vadd.f32 %v1707_v21, %v1655_v43  ;;  %v1738_v49 = vmul.f32 %v4823_v34, %v1716_v7  ;;  %v1739_v20 = vmul.f32 %v4826_v25, %v1715_v37  ;;  %v1814_v11 = vmul.f32 %v4869_v50, %v1770_v8  ;;  %v5431_v2 = vpop.permute.xlu1 %2245  ;;  %v6130_v37 = vld [vmem:[#allocation37_spill] sm:$0xff] }
 0x4e0   : > { %v1815_v47 = vmul.f32 %v6124_v62, %v1769_v30  ;;  %v1823_v16 = vsel %vm1822_vm13, %v6126_v12, %v6125_v10  ;;  %v1824_v1 = vsel %vm1822_vm13, %v6125_v10, %v6126_v12  ;;  %v1686_v34 = vadd.f32 %v1684_v36, %v1632_v56  ;;  %v3115_v43 = vld [vmem:[#allocation5 + $0xb4] sm:$0xf]  ;;  %v6134_v62 = vld [vmem:[#allocation107_spill] sm:$0xff] }
 0x4e1   : > { %v1687_v25 = vadd.f32 %v1685_v55, %v1633_v35  ;;  %v3088_v50 = vrot.slane %v5336_v15, %v4347_v60  ;;  %v3092_v21 = vrot.slane %v5336_v15, %v4349_v61  ;;  %v1762_v27 = vadd.f32 %v1760_v40, %v1708_v3  ;;  %v6131_v35 = vld [vmem:[#allocation34_spill] sm:$0xff] }
 0x4e2   : > { %v1763_v29 = vadd.f32 %v1761_v26, %v1709_v39  ;;  %v1792_v9 = vmul.f32 %v6127_v33, %v1770_v8  ;;  %v1793_v24 = vmul.f32 %v6128_v17, %v1769_v30  ;;  %v1868_v14 = vmul.f32 %v6129_v0, %v1824_v1  ;;  %v6132_v26 = vld [vmem:[#allocation35_spill] sm:$0xff]  ;;  %v6133_v39 = vld [vmem:[#allocation106_spill] sm:$0xff] }
 0x4e3   : > { %v1869_v7 = vmul.f32 %v6130_v37, %v1823_v16  ;;  %v1877_v54 = vsel %vm1876_vm14, %v5206_v5, %v5204_v46  ;;  %v1878_v15 = vsel %vm1876_vm14, %v5204_v46, %v5206_v5  ;;  %v1740_v36 = vadd.f32 %v1738_v49, %v1686_v34  ;;  %v5452_v56 = vpop.permute.xlu1 %2299  ;;  %v5464_v5 = vpop.permute.xlu0 %2297  ;;  %v6135_v49 = vld [vmem:[#allocation40_spill] sm:$0xff]  ;;  %v6138_v17 = vld [vmem:[#allocation39_spill] sm:$0xff] }
 0x4e4   : > { %v1741_v55 = vadd.f32 %v1739_v20, %v1687_v25  ;;  %v1816_v30 = vadd.f32 %v1814_v11, %v1762_v27  ;;  %v1817_v8 = vadd.f32 %v1815_v47, %v1763_v29  ;;  %v1846_v40 = vmul.f32 %v6131_v35, %v1824_v1  ;;  %v6136_v11 = vld [vmem:[#allocation41_spill] sm:$0xff]  ;;  %v6137_v29 = vld [vmem:[#allocation38_spill] sm:$0xff]  ;;  %v6139_v37 = vld [vmem:[#allocation44_spill] sm:$0xff] }
 0x4e5   : > { %v1847_v3 = vmul.f32 %v6132_v26, %v1823_v16  ;;  %v1931_v10 = vsel %vm1930_vm15, %v6134_v62, %v6133_v39  ;;  %v1932_v46 = vsel %vm1930_vm15, %v6133_v39, %v6134_v62  ;;  %v1922_v20 = vmul.f32 %v6135_v49, %v1878_v15  ;;  %v6140_v26 = vld [vmem:[#allocation45_spill] sm:$0xff] }
 0x4e6   : > { %v1923_v47 = vmul.f32 %v6136_v11, %v1877_v54  ;;  %v3120_v12 = vrot.slane %v3115_v43, %v4343_v58  ;;  %v3124_v16 = vrot.slane %v3115_v43, %v4345_v59  ;;  %v1794_v1 = vadd.f32 %v1792_v9, %v1740_v36  ;;  %v3169_v49 = vld [vmem:[#allocation5 + $0xb8] sm:$0xf]  ;;  %v6142_v36 = vld [vmem:[#allocation43_spill] sm:$0xff] }
 0x4e7   : > { %v1795_v34 = vadd.f32 %v1793_v24, %v1741_v55  ;;  %v1870_v25 = vadd.f32 %v1868_v14, %v1816_v30  ;;  %v1871_v27 = vadd.f32 %v1869_v7, %v1817_v8  ;;  %v1900_v33 = vmul.f32 %v6137_v29, %v1878_v15  ;;  %v5476_v62 = vpop.permute.xlu1 %2353  ;;  %v5478_v44 = vpop.permute.xlu0 %2351 }
 0x4e8   : > { %v1901_v0 = vmul.f32 %v6138_v17, %v1877_v54  ;;  %v1976_v35 = vmul.f32 %v6139_v37, %v1932_v46  ;;  %v1977_v39 = vmul.f32 %v6140_v26, %v1931_v10  ;;  %v1848_v11 = vadd.f32 %v1846_v40, %v1794_v1  ;;  %v6141_v54 = vld [vmem:[#allocation42_spill] sm:$0xff] }
 0x4e9   : > { %v1849_v45 = vadd.f32 %v1847_v3, %v1795_v34  ;;  %v3142_v9 = vrot.slane %v3115_v43, %v4347_v60  ;;  %v3146_v24 = vrot.slane %v3115_v43, %v4349_v61  ;;  %v1924_v14 = vadd.f32 %v1922_v20, %v1870_v25  ;;  %v5526_v37 = vld [vmem:[#allocation5 + $0xbc] sm:$0xf] }
 0x4ea   : > { %v1925_v7 = vadd.f32 %v1923_v47, %v1871_v27  ;;  %v1954_v15 = vmul.f32 %v6141_v54, %v1932_v46  ;;  %v1955_v55 = vmul.f32 %v6142_v36, %v1931_v10  ;;  %v3174_v30 = vrot.slane %v3169_v49, %v4343_v58 }
 0x4eb   : > { %v3178_v8 = vrot.slane %v3169_v49, %v4345_v59  ;;  %v3196_v40 = vrot.slane %v3169_v49, %v4347_v60  ;;  %v3200_v3 = vrot.slane %v3169_v49, %v4349_v61  ;;  %v1902_v1 = vadd.f32 %v1900_v33, %v1848_v11  ;;  %v5489_v20 = vpop.permute.xlu1 %2407  ;;  %v5491_v47 = vpop.permute.xlu0 %2405 }
 0x4ec   : > { %v1903_v34 = vadd.f32 %v1901_v0, %v1849_v45  ;;  %v1978_v29 = vadd.f32 %v1976_v35, %v1924_v14  ;;  %v1979_v43 = vadd.f32 %v1977_v39, %v1925_v7  ;;  %v5494_v10 = vrot.slane %v3088_v50, %v4347_v60  ;;  %v6146_v35 = vld [vmem:[#allocation28_spill] sm:$0xff]  ;;  %v6147_v39 = vld [vmem:[#allocation30_spill] sm:$0xff]  ;;  %v6151_v14 = vld [vmem:[#allocation49_spill] sm:$0xff] }
 0x4ed   : > { %v5497_v46 = vrot.slane %v3092_v21, %v4347_v60  ;;  %v5500_v25 = vrot.slane %v3120_v12, %v4343_v58  ;;  %v5503_v27 = vrot.slane %v3124_v16, %v4343_v58  ;;  %v1956_v33 = vadd.f32 %v1954_v15, %v1902_v1 }
 0x4ee   : > { %v1957_v45 = vadd.f32 %v1955_v55, %v1903_v34  ;;  %v2032_v17 = vsel %vm2031_vm0, %v5289_v19, %v5287_v38  ;;  %v2033_v50 = vsel %vm2031_vm0, %v5287_v38, %v5289_v19  ;;  %v5515_v21 = vrot.slane %v3142_v9, %v4347_v60  ;;  %v6150_v9 = vld [vmem:[#allocation48_spill] sm:$0xff]  ;;  %v6152_v55 = vld [vmem:[#allocation27_spill] sm:$0xff]  ;;  %v6154_v34 = vld [vmem:[#allocation46_spill] sm:$0xff] }
 0x4ef   : > { %6143 = vst [vmem:[#allocation33_spill] sm:$0xff] %v5503_v27  ;;  %v5518_v12 = vrot.slane %v3146_v24, %v4347_v60  ;;  %v5521_v16 = vrot.slane %v3174_v30, %v4343_v58  ;;  %v5524_v0 = vrot.slane %v3178_v8, %v4343_v58  ;;  %v2026_v26 = vadd.f32 %v6146_v35, %v1979_v43  ;;  %v5531_v19 = vpop.permute.xlu1 %2461  ;;  %v5549_v36 = vpop.permute.xlu0 %2459  ;;  %v6153_v8 = vld [vmem:[#allocation29_spill] sm:$0xff]  ;;  %v6155_v43 = vld [vmem:[#allocation47_spill] sm:$0xff] }
 0x4f0   : > { %v2025_v38 = vadd.f32 %v6147_v39, %v1978_v29  ;;  %v5534_v49 = vrot.slane %v3196_v40, %v4347_v60  ;;  %v5537_v11 = vrot.slane %v3200_v3, %v4347_v60  ;;  %v2077_v24 = vmul.f32 %v6150_v9, %v2032_v17  ;;  %v6157_v39 = vld [vmem:[#allocation53_spill] sm:$0xff] }
 0x4f1   : > { %6144 = vst [vmem:[#allocation88_spill] sm:$0xff] %v5521_v16  ;;  %6145 = vst [vmem:[#allocation89_spill] sm:$0xff] %v5524_v0  ;;  %v2078_v7 = vmul.f32 %v6151_v14, %v2033_v50  ;;  %v2086_v54 = vsel %vm2085_vm1, %v5332_v52, %v5330_v6  ;;  %v2087_v15 = vsel %vm2085_vm1, %v5330_v6, %v5332_v52  ;;  %v6159_v0 = vld [vmem:[#allocation51_spill] sm:$0xff]  ;;  %v6160_v16 = vld [vmem:[#allocation56_spill] sm:$0xff]  ;;  %vm2571_vm10 = vcmp.lt.s32.totalorder %v4460_v48, 99 }
 0x4f2   : > { %6148 = vst [vmem:[#allocation31_spill] sm:$0xff] %v5534_v49  ;;  %6149 = vst [vmem:[#allocation32_spill] sm:$0xff] %v5537_v11  ;;  %v2004_v30 = vadd.f32 %v6152_v55, %v1957_v45  ;;  %v2003_v40 = vadd.f32 %v6153_v8, %v1956_v33  ;;  %v3228_v3 = vrot.slane %v5526_v37, %v4343_v58  ;;  %v6156_v33 = vld [vmem:[#allocation52_spill] sm:$0xff]  ;;  %v6161_v11 = vld [vmem:[#allocation57_spill] sm:$0xff]  ;;  %vm2625_vm11 = vcmp.lt.s32.totalorder %v4460_v48, 98 }
 0x4f3   : > { %v3232_v1 = vrot.slane %v5526_v37, %v4345_v59  ;;  %v2055_v29 = vmul.f32 %v6154_v34, %v2032_v17  ;;  %v2056_v35 = vmul.f32 %v6155_v43, %v2033_v50  ;;  %v2140_v52 = vsel %vm2139_vm2, %v5376_v22, %v5374_v4  ;;  %v5570_v14 = vpop.permute.xlu1 %2515  ;;  %v6158_v34 = vld [vmem:[#allocation50_spill] sm:$0xff] }
 0x4f4   : > { %v2141_v6 = vsel %vm2139_vm2, %v5374_v4, %v5376_v22  ;;  %v2131_v45 = vmul.f32 %v6156_v33, %v2086_v54  ;;  %v2132_v9 = vmul.f32 %v6157_v39, %v2087_v15  ;;  %v3250_v17 = vrot.slane %v5526_v37, %v4347_v60  ;;  %v5578_v22 = vpop.permute.xlu0 %2513 }
 0x4f5   : > { %v3254_v50 = vrot.slane %v5526_v37, %v4349_v61  ;;  %v2079_v55 = vadd.f32 %v2077_v24, %v2025_v38  ;;  %v2080_v8 = vadd.f32 %v2078_v7, %v2026_v26  ;;  %v2109_v43 = vmul.f32 %v6158_v34, %v2086_v54  ;;  %v6163_v7 = vld [vmem:[#allocation54_spill] sm:$0xff] }
 0x4f6   : > { %v2110_v4 = vmul.f32 %v6159_v0, %v2087_v15  ;;  %v2185_v33 = vmul.f32 %v6160_v16, %v2140_v52  ;;  %v2186_v39 = vmul.f32 %v6161_v11, %v2141_v6  ;;  %v2194_v49 = vsel %vm2193_vm3, %v5399_v42, %v5397_v13  ;;  %v6164_v15 = vld [vmem:[#allocation55_spill] sm:$0xff] }
 0x4f7   : > { %v2195_v37 = vsel %vm2193_vm3, %v5397_v13, %v5399_v42  ;;  %v2057_v26 = vadd.f32 %v2055_v29, %v2003_v40  ;;  %v2058_v0 = vadd.f32 %v2056_v35, %v2004_v30  ;;  %v5592_v38 = vrot.slane %v3228_v3, %v4343_v58  ;;  %v5600_v27 = vpop.permute.xlu1 %2569  ;;  %v6165_v13 = vld [vmem:[#allocation60_spill] sm:$0xff]  ;;  %v6166_v40 = vld [vmem:[#allocation61_spill] sm:$0xff] }
 0x4f8   : > { %v5595_v16 = vrot.slane %v3232_v1, %v4343_v58  ;;  %v2133_v11 = vadd.f32 %v2131_v45, %v2079_v55  ;;  %v2134_v24 = vadd.f32 %v2132_v9, %v2080_v8  ;;  %v2163_v54 = vmul.f32 %v6163_v7, %v2140_v52  ;;  %v5612_v29 = vpop.permute.xlu0 %2567  ;;  %v6167_v9 = vld [vmem:[#allocation58_spill] sm:$0xff]  ;;  %v6168_v8 = vld [vmem:[#allocation59_spill] sm:$0xff] }
 0x4f9   : > { %v2164_v34 = vmul.f32 %v6164_v15, %v2141_v6  ;;  %v2239_v42 = vmul.f32 %v6165_v13, %v2194_v49  ;;  %v2240_v30 = vmul.f32 %v6166_v40, %v2195_v37  ;;  %v2248_v3 = vsel %vm2247_vm4, %v5433_v31, %v5431_v2  ;;  %v6172_v13 = vld [vmem:[#allocation63_spill] sm:$0xff] }
 0x4fa   : > { %6162 = vst [vmem:[#allocation36_spill] sm:$0xff] %v5595_v16  ;;  %v2249_v1 = vsel %vm2247_vm4, %v5431_v2, %v5433_v31  ;;  %v2111_v35 = vadd.f32 %v2109_v43, %v2057_v26  ;;  %v2112_v52 = vadd.f32 %v2110_v4, %v2058_v0  ;;  %v2187_v6 = vadd.f32 %v2185_v33, %v2133_v11  ;;  %v6169_v4 = vld [vmem:[#allocation64_spill] sm:$0xff]  ;;  %v6171_v11 = vld [vmem:[#allocation62_spill] sm:$0xff] }
 0x4fb   : > { %v2188_v45 = vadd.f32 %v2186_v39, %v2134_v24  ;;  %v2217_v55 = vmul.f32 %v6167_v9, %v2194_v49  ;;  %v2218_v7 = vmul.f32 %v6168_v8, %v2195_v37  ;;  %v2302_v15 = vsel %vm2301_vm5, %v5464_v5, %v5452_v56  ;;  %v6170_v39 = vld [vmem:[#allocation65_spill] sm:$0xff]  ;;  %v5627_v26 = vpop.permute.xlu1 %2623  ;;  %v6173_v8 = vld [vmem:[#allocation68_spill] sm:$0xff] }
 0x4fc   : > { %v2303_v2 = vsel %vm2301_vm5, %v5452_v56, %v5464_v5  ;;  %v2165_v31 = vadd.f32 %v2163_v54, %v2111_v35  ;;  %v2166_v43 = vadd.f32 %v2164_v34, %v2112_v52  ;;  %v2293_v33 = vmul.f32 %v6169_v4, %v2248_v3  ;;  %v5631_v9 = vpop.permute.xlu0 %2621  ;;  %v6174_v5 = vld [vmem:[#allocation69_spill] sm:$0xff]  ;;  %v6176_v4 = vld [vmem:[#allocation67_spill] sm:$0xff] }
 0x4fd   : > { %v2294_v49 = vmul.f32 %v6170_v39, %v2249_v1  ;;  %v2241_v37 = vadd.f32 %v2239_v42, %v2187_v6  ;;  %v2242_v0 = vadd.f32 %v2240_v30, %v2188_v45  ;;  %v2271_v24 = vmul.f32 %v6171_v11, %v2248_v3  ;;  %v6175_v6 = vld [vmem:[#allocation66_spill] sm:$0xff] }
 0x4fe   : > { %v2272_v40 = vmul.f32 %v6172_v13, %v2249_v1  ;;  %v2347_v56 = vmul.f32 %v6173_v8, %v2302_v15  ;;  %v2348_v16 = vmul.f32 %v6174_v5, %v2303_v2  ;;  %v2356_v54 = vsel %vm2355_vm6, %v5478_v44, %v5476_v62 }
 0x4ff   : > { %v2357_v34 = vsel %vm2355_vm6, %v5476_v62, %v5478_v44  ;;  %v2219_v42 = vadd.f32 %v2217_v55, %v2165_v31  ;;  %v2220_v30 = vadd.f32 %v2218_v7, %v2166_v43  ;;  %v5645_v3 = vrot.slane %v3250_v17, %v4347_v60  ;;  %v5653_v11 = vpop.permute.xlu1 %2677  ;;  %v6177_v44 = vld [vmem:[#allocation72_spill] sm:$0xff]  ;;  %v6178_v55 = vld [vmem:[#allocation73_spill] sm:$0xff] }
 0x500   : > { %v5648_v1 = vrot.slane %v3254_v50, %v4347_v60  ;;  %v2295_v35 = vadd.f32 %v2293_v33, %v2241_v37  ;;  %v2296_v52 = vadd.f32 %v2294_v49, %v2242_v0  ;;  %v2325_v45 = vmul.f32 %v6175_v6, %v2302_v15  ;;  %v5665_v15 = vpop.permute.xlu0 %2675  ;;  %v6179_v49 = vld [vmem:[#allocation70_spill] sm:$0xff]  ;;  %v6180_v0 = vld [vmem:[#allocation71_spill] sm:$0xff] }
 0x501   : > { %v2326_v39 = vmul.f32 %v6176_v4, %v2303_v2  ;;  %v2401_v62 = vmul.f32 %v6177_v44, %v2356_v54  ;;  %v2402_v7 = vmul.f32 %v6178_v55, %v2357_v34  ;;  %v2410_v17 = vsel %vm2409_vm7, %v5491_v47, %v5489_v20  ;;  %v6184_v6 = vld [vmem:[#allocation75_spill] sm:$0xff]  ;;  %v6186_v55 = vld [vmem:[#allocation81_spill] sm:$0xff] }
 0x502   : > { %v2411_v50 = vsel %vm2409_vm7, %v5489_v20, %v5491_v47  ;;  %v2273_v2 = vadd.f32 %v2271_v24, %v2219_v42  ;;  %v2274_v31 = vadd.f32 %v2272_v40, %v2220_v30  ;;  %v2349_v43 = vadd.f32 %v2347_v56, %v2295_v35  ;;  %v6181_v40 = vld [vmem:[#allocation76_spill] sm:$0xff]  ;;  %v6182_v56 = vld [vmem:[#allocation77_spill] sm:$0xff]  ;;  %v6183_v35 = vld [vmem:[#allocation74_spill] sm:$0xff] }
 0x503   : > { %v2350_v33 = vadd.f32 %v2348_v16, %v2296_v52  ;;  %v2379_v37 = vmul.f32 %v6179_v49, %v2356_v54  ;;  %v2380_v13 = vmul.f32 %v6180_v0, %v2357_v34  ;;  %v2464_v8 = vsel %vm2463_vm8, %v5549_v36, %v5531_v19  ;;  %v5680_v54 = vpop.permute.xlu1 %2731  ;;  %v5682_v34 = vld [vmem:[#allocation5 + $0xc0] sm:$0xf]  ;;  %v6188_v0 = vld [vmem:[#allocation79_spill] sm:$0xff] }
 0x504   : > { %v2465_v20 = vsel %vm2463_vm8, %v5531_v19, %v5549_v36  ;;  %vm2679_vm12 = vcmp.lt.s32.totalorder %v4460_v48, 97  ;;  %v2327_v47 = vadd.f32 %v2325_v45, %v2273_v2  ;;  %v2328_v24 = vadd.f32 %v2326_v39, %v2274_v31  ;;  %v2730_v44 = vpop.permute.xlu0 %2729  ;;  %v6185_v19 = vld [vmem:[#allocation80_spill] sm:$0xff] }
 0x505   : > { %v2455_v16 = vmul.f32 %v6181_v40, %v2410_v17  ;;  %v2456_v5 = vmul.f32 %v6182_v56, %v2411_v50  ;;  %v2403_v42 = vadd.f32 %v2401_v62, %v2349_v43  ;;  %v2404_v30 = vadd.f32 %v2402_v7, %v2350_v33  ;;  %v6187_v33 = vld [vmem:[#allocation78_spill] sm:$0xff] }
 0x506   : > { %v2433_v52 = vmul.f32 %v6183_v35, %v2410_v17  ;;  %v2434_v4 = vmul.f32 %v6184_v6, %v2411_v50  ;;  %v2509_v36 = vmul.f32 %v6185_v19, %v2464_v8  ;;  %v2510_v45 = vmul.f32 %v6186_v55, %v2465_v20  ;;  %v6190_v35 = vld [vmem:[#allocation85_spill] sm:$0xff] }
 0x507   : > { %v2518_v39 = vsel %vm2517_vm9, %v5578_v22, %v5570_v14  ;;  %v2519_v62 = vsel %vm2517_vm9, %v5570_v14, %v5578_v22  ;;  %vm2733_vm13 = vcmp.lt.s32.totalorder %v4460_v48, 96  ;;  %v2381_v7 = vadd.f32 %v2379_v37, %v2327_v47  ;;  %v2786_v56 = vpop.permute.xlu1 %2785  ;;  %v6189_v14 = vld [vmem:[#allocation84_spill] sm:$0xff] }
 0x508   : > { %v2382_v17 = vadd.f32 %v2380_v13, %v2328_v24  ;;  %v3282_v50 = vrot.slane %v5682_v34, %v4343_v58  ;;  %v3286_v2 = vrot.slane %v5682_v34, %v4345_v59  ;;  %v2457_v31 = vadd.f32 %v2455_v16, %v2403_v42 }
 0x509   : > { %v2458_v43 = vadd.f32 %v2456_v5, %v2404_v30  ;;  %v2487_v49 = vmul.f32 %v6187_v33, %v2464_v8  ;;  %v2488_v40 = vmul.f32 %v6188_v0, %v2465_v20  ;;  %vm2787_vm14 = vcmp.lt.s32.totalorder %v4460_v48, 95  ;;  %v2784_v8 = vpop.permute.xlu0 %2783  ;;  %v6191_v5 = vld [vmem:[#allocation82_spill] sm:$0xff]  ;;  %v6192_v30 = vld [vmem:[#allocation83_spill] sm:$0xff] }
 0x50a   : > { %v2563_v22 = vmul.f32 %v6189_v14, %v2518_v39  ;;  %v2564_v37 = vmul.f32 %v6190_v35, %v2519_v62  ;;  %v2572_v13 = vsel %vm2571_vm10, %v5612_v29, %v5600_v27  ;;  %v2573_v59 = vsel %vm2571_vm10, %v5600_v27, %v5612_v29  ;;  %v6197_v14 = vld [vmem:[#allocation94_spill] sm:$0xff] }
 0x50b   : > { %v2435_v47 = vadd.f32 %v2433_v52, %v2381_v7  ;;  %v2436_v20 = vadd.f32 %v2434_v4, %v2382_v17  ;;  %v2511_v24 = vadd.f32 %v2509_v36, %v2457_v31  ;;  %v2512_v16 = vadd.f32 %v2510_v45, %v2458_v43  ;;  %v6193_v52 = vld [vmem:[#allocation90_spill] sm:$0xff]  ;;  %v6194_v36 = vld [vmem:[#allocation91_spill] sm:$0xff] }
 0x50c   : > { %v2541_v42 = vmul.f32 %v6191_v5, %v2518_v39  ;;  %v2542_v6 = vmul.f32 %v6192_v30, %v2519_v62  ;;  %v2626_v19 = vsel %vm2625_vm11, %v5631_v9, %v5627_v26  ;;  %v2627_v55 = vsel %vm2625_vm11, %v5627_v26, %v5631_v9  ;;  %v2840_v39 = vpop.permute.xlu1 %2839  ;;  %v6195_v17 = vld [vmem:[#allocation86_spill] sm:$0xff]  ;;  %v6196_v43 = vld [vmem:[#allocation87_spill] sm:$0xff] }
 0x50d   : > { %vm2841_vm15 = vcmp.lt.s32.totalorder %v4460_v48, 94  ;;  %v2489_v27 = vadd.f32 %v2487_v49, %v2435_v47  ;;  %v2490_v29 = vadd.f32 %v2488_v40, %v2436_v20  ;;  %v2617_v4 = vmul.f32 %v6193_v52, %v2572_v13  ;;  %v2838_v0 = vpop.permute.xlu0 %2837  ;;  %v6198_v5 = vld [vmem:[#allocation95_spill] sm:$0xff]  ;;  %v6199_v20 = vld [vmem:[#allocation92_spill] sm:$0xff] }
 0x50e   : > { %v2618_v45 = vmul.f32 %v6194_v36, %v2573_v59  ;;  %v2565_v62 = vadd.f32 %v2563_v22, %v2511_v24  ;;  %v2566_v7 = vadd.f32 %v2564_v37, %v2512_v16  ;;  %v2595_v31 = vmul.f32 %v6195_v17, %v2572_v13  ;;  %v6200_v16 = vld [vmem:[#allocation93_spill] sm:$0xff]  ;;  %v6202_v36 = vld [vmem:[#allocation99_spill] sm:$0xff] }
 0x50f   : > { %v2596_v33 = vmul.f32 %v6196_v43, %v2573_v59  ;;  %v2671_v35 = vmul.f32 %v6197_v14, %v2626_v19  ;;  %v2672_v26 = vmul.f32 %v6198_v5, %v2627_v55  ;;  %v2680_v9 = vsel %vm2679_vm12, %v5665_v15, %v5653_v11 }
 0x510   : > { %v2681_v49 = vsel %vm2679_vm12, %v5653_v11, %v5665_v15  ;;  %vm2895_vm0 = vcmp.lt.s32.totalorder %v4460_v48, 93  ;;  %v2543_v40 = vadd.f32 %v2541_v42, %v2489_v27  ;;  %v2544_v22 = vadd.f32 %v2542_v6, %v2490_v29  ;;  %v2894_v52 = vpop.permute.xlu1 %2893  ;;  %v6201_v11 = vld [vmem:[#allocation98_spill] sm:$0xff] }
 0x511   : > { %v5741_v37 = vrot.slane %v3282_v50, %v4343_v58  ;;  %v5744_v13 = vrot.slane %v3286_v2, %v4343_v58  ;;  %v2619_v59 = vadd.f32 %v2617_v4, %v2565_v62  ;;  %v2620_v47 = vadd.f32 %v2618_v45, %v2566_v7  ;;  %v2892_v6 = vpop.permute.xlu0 %2891  ;;  %v6203_v4 = vld [vmem:[#allocation96_spill] sm:$0xff]  ;;  %v6204_v62 = vld [vmem:[#allocation97_spill] sm:$0xff] }
 0x512   : > { %v2649_v24 = vmul.f32 %v6199_v20, %v2626_v19  ;;  %v2650_v30 = vmul.f32 %v6200_v16, %v2627_v55  ;;  %vm2949_vm1 = vcmp.lt.s32.totalorder %v4460_v48, 83  ;;  %v2725_v15 = vmul.f32 %v6201_v11, %v2680_v9  ;;  %v6209_v20 = vld [vmem:[#allocation108_spill] sm:$0xff] }
 0x513   : > { %v2726_v42 = vmul.f32 %v6202_v36, %v2681_v49  ;;  %v2734_v50 = vsel %vm2733_vm13, %v2730_v44, %v5680_v54  ;;  %v2735_v2 = vsel %vm2733_vm13, %v5680_v54, %v2730_v44  ;;  %v2597_v27 = vadd.f32 %v2595_v31, %v2543_v40  ;;  %v6205_v54 = vld [vmem:[#allocation102_spill] sm:$0xff]  ;;  %v6206_v31 = vld [vmem:[#allocation103_spill] sm:$0xff] }
 0x514   : > { %v2598_v19 = vadd.f32 %v2596_v33, %v2544_v22  ;;  %v2673_v29 = vadd.f32 %v2671_v35, %v2619_v59  ;;  %v2674_v55 = vadd.f32 %v2672_v26, %v2620_v47  ;;  %v2703_v45 = vmul.f32 %v6203_v4, %v2680_v9  ;;  %v2948_v35 = vpop.permute.xlu1 %2947  ;;  %v6207_v9 = vld [vmem:[#allocation100_spill] sm:$0xff] }
 0x515   : > { %v2704_v7 = vmul.f32 %v6204_v62, %v2681_v49  ;;  %v2788_v17 = vsel %vm2787_vm14, %v2784_v8, %v2786_v56  ;;  %v2789_v43 = vsel %vm2787_vm14, %v2786_v56, %v2784_v8  ;;  %vm3003_vm2 = vcmp.lt.s32.totalorder %v4460_v48, 82  ;;  %v6208_v49 = vld [vmem:[#allocation101_spill] sm:$0xff]  ;;  %v2946_v47 = vpop.permute.xlu0 %2945 }
 0x516   : > { %v2651_v14 = vadd.f32 %v2649_v24, %v2597_v27  ;;  %v2652_v5 = vadd.f32 %v2650_v30, %v2598_v19  ;;  %v2779_v44 = vmul.f32 %v6205_v54, %v2734_v50  ;;  %v2780_v33 = vmul.f32 %v6206_v31, %v2735_v2  ;;  %v6211_v27 = vld [vmem:[#allocation105_spill] sm:$0xff] }
 0x517   : > { %v2727_v26 = vadd.f32 %v2725_v15, %v2673_v29  ;;  %v2728_v40 = vadd.f32 %v2726_v42, %v2674_v55  ;;  %v2757_v22 = vmul.f32 %v6207_v9, %v2734_v50  ;;  %v2758_v59 = vmul.f32 %v6208_v49, %v2735_v2  ;;  %v6210_v2 = vld [vmem:[#allocation104_spill] sm:$0xff] }
 0x518   : > { %v2833_v16 = vmul.f32 %v6209_v20, %v2788_v17  ;;  %v2834_v56 = vmul.f32 %v5268_v51, %v2789_v43  ;;  %v2842_v8 = vsel %vm2841_vm15, %v2838_v0, %v2840_v39  ;;  %v2843_v24 = vsel %vm2841_vm15, %v2840_v39, %v2838_v0  ;;  %v3002_v29 = vpop.permute.xlu1 %3001  ;;  %v6212_v0 = vld [vmem:[#allocation111_spill] sm:$0xff]  ;;  %v6215_v20 = vld [vmem:[#allocation114_spill] sm:$0xff] }
 0x519   : > { %vm3057_vm3 = vcmp.lt.s32.totalorder %v4460_v48, 81  ;;  %v2705_v30 = vadd.f32 %v2703_v45, %v2651_v14  ;;  %v2706_v11 = vadd.f32 %v2704_v7, %v2652_v5  ;;  %v3304_v15 = vrot.slane %v5682_v34, %v4347_v60  ;;  %v6213_v14 = vld [vmem:[#allocation109_spill] sm:$0xff]  ;;  %v6214_v5 = vld [vmem:[#allocation110_spill] sm:$0xff] }
 0x51a   : > { %v3308_v36 = vrot.slane %v5682_v34, %v4349_v61  ;;  %v2781_v42 = vadd.f32 %v2779_v44, %v2727_v26  ;;  %v2782_v50 = vadd.f32 %v2780_v33, %v2728_v40  ;;  %v2811_v51 = vmul.f32 %v6210_v2, %v2788_v17  ;;  %v3000_v61 = vpop.permute.xlu0 %2999 }
 0x51b   : > { %v2812_v19 = vmul.f32 %v6211_v27, %v2789_v43  ;;  %vm3111_vm4 = vcmp.lt.s32.totalorder %v4460_v48, 80  ;;  %v2887_v39 = vmul.f32 %v5277_v18, %v2842_v8  ;;  %v2888_v55 = vmul.f32 %v6212_v0, %v2843_v24 }
 0x51c   : > { %v2896_v4 = vsel %vm2895_vm0, %v2892_v6, %v2894_v52  ;;  %v2897_v45 = vsel %vm2895_vm0, %v2894_v52, %v2892_v6  ;;  %v2759_v34 = vadd.f32 %v2757_v22, %v2705_v30  ;;  %v2760_v62 = vadd.f32 %v2758_v59, %v2706_v11  ;;  %v3056_v26 = vpop.permute.xlu1 %3055  ;;  %v6217_v11 = vld [vmem:[#allocation112_spill] sm:$0xff] }
 0x51d   : > { %v2835_v7 = vadd.f32 %v2833_v16, %v2781_v42  ;;  %v2836_v17 = vadd.f32 %v2834_v56, %v2782_v50  ;;  %v2865_v43 = vmul.f32 %v6213_v14, %v2842_v8  ;;  %v2866_v54 = vmul.f32 %v6214_v5, %v2843_v24  ;;  %v6216_v56 = vld [vmem:[#allocation115_spill] sm:$0xff]  ;;  %v6218_v50 = vld [vmem:[#allocation113_spill] sm:$0xff] }
 0x51e   : > { %v2950_v18 = vsel %vm2949_vm1, %v2946_v47, %v2948_v35  ;;  %v2951_v44 = vsel %vm2949_vm1, %v2948_v35, %v2946_v47  ;;  %vm3165_vm5 = vcmp.lt.s32.totalorder %v4460_v48, 79  ;;  %v2813_v31 = vadd.f32 %v2811_v51, %v2759_v34  ;;  %v3054_v59 = vpop.permute.xlu0 %3053 }
 0x51f   : > { %v2814_v33 = vadd.f32 %v2812_v19, %v2760_v62  ;;  %v2941_v52 = vmul.f32 %v5298_v28, %v2896_v4  ;;  %v2942_v6 = vmul.f32 %v5301_v57, %v2897_v45  ;;  %v2889_v40 = vadd.f32 %v2887_v39, %v2835_v7 }
 0x520   : > { %v2890_v9 = vadd.f32 %v2888_v55, %v2836_v17  ;;  %v2919_v22 = vmul.f32 %v5292_v23, %v2896_v4  ;;  %v2920_v49 = vmul.f32 %v5295_v32, %v2897_v45  ;;  %v2995_v16 = vmul.f32 %v6215_v20, %v2950_v18  ;;  %v3110_v51 = vpop.permute.xlu1 %3109 }
 0x521   : > { %v2996_v35 = vmul.f32 %v6216_v56, %v2951_v44  ;;  %v3004_v47 = vsel %vm3003_vm2, %v3000_v61, %v3002_v29  ;;  %v3005_v28 = vsel %vm3003_vm2, %v3002_v29, %v3000_v61  ;;  %v2867_v8 = vadd.f32 %v2865_v43, %v2813_v31  ;;  %v6219_v61 = vld [vmem:[#allocation116_spill] sm:$0xff] }
 0x522   : > { %v2868_v57 = vadd.f32 %v2866_v54, %v2814_v33  ;;  %vm3219_vm6 = vcmp.lt.s32.totalorder %v4460_v48, 78  ;;  %v5807_v24 = vrot.slane %v3304_v15, %v4347_v60  ;;  %v5810_v23 = vrot.slane %v3308_v36, %v4347_v60  ;;  %v3108_v39 = vpop.permute.xlu0 %3107 }
 0x523   : > { %v2943_v32 = vadd.f32 %v2941_v52, %v2889_v40  ;;  %v2944_v30 = vadd.f32 %v2942_v6, %v2890_v9  ;;  %v2973_v42 = vmul.f32 %v6217_v11, %v2950_v18  ;;  %v2974_v2 = vmul.f32 %v6218_v50, %v2951_v44  ;;  %v6221_v44 = vld [vmem:[#allocation118_spill] sm:$0xff] }
 0x524   : > { %v3049_v27 = vmul.f32 %v5379_v63, %v3004_v47  ;;  %v3050_v19 = vmul.f32 %v5382_v41, %v3005_v28  ;;  %v3058_v29 = vsel %vm3057_vm3, %v3054_v59, %v3056_v26  ;;  %v3059_v15 = vsel %vm3057_vm3, %v3056_v26, %v3054_v59  ;;  %v3164_v43 = vpop.permute.xlu1 %3163 }
 0x525   : > { %v2921_v36 = vadd.f32 %v2919_v22, %v2867_v8  ;;  %v2922_v0 = vadd.f32 %v2920_v49, %v2868_v57  ;;  %v2997_v55 = vadd.f32 %v2995_v16, %v2943_v32  ;;  %v2998_v4 = vadd.f32 %v2996_v35, %v2944_v30  ;;  %v6222_v22 = vld [vmem:[#allocation33_spill] sm:$0xff]  ;;  %v6223_v16 = vld [vmem:[#allocation31_spill] sm:$0xff]  ;;  %v6224_v35 = vld [vmem:[#allocation32_spill] sm:$0xff] }
 0x526   : > { %v3027_v45 = vmul.f32 %v5354_v53, %v3004_v47  ;;  %v3028_v34 = vmul.f32 %v6219_v61, %v3005_v28  ;;  %v3112_v63 = vsel %vm3111_vm4, %v3108_v39, %v3110_v51  ;;  %v3113_v41 = vsel %vm3111_vm4, %v3110_v51, %v3108_v39  ;;  %v6220_v53 = vld [vmem:[#allocation117_spill] sm:$0xff]  ;;  %v3162_v33 = vpop.permute.xlu0 %3161  ;;  %v6225_v8 = vld [vmem:[#allocation88_spill] sm:$0xff] }
 0x527   : > { %vm3273_vm7 = vcmp.lt.s32.totalorder %v4460_v48, 77  ;;  %v2975_v62 = vadd.f32 %v2973_v42, %v2921_v36  ;;  %v2976_v7 = vadd.f32 %v2974_v2, %v2922_v0  ;;  %v3103_v17 = vmul.f32 %v5494_v10, %v3058_v29  ;;  %v6226_v32 = vld [vmem:[#allocation89_spill] sm:$0xff] }
 0x528   : > { %v3104_v14 = vmul.f32 %v5497_v46, %v3059_v15  ;;  %v3051_v5 = vadd.f32 %v3049_v27, %v2997_v55  ;;  %v3052_v54 = vadd.f32 %v3050_v19, %v2998_v4  ;;  %v3081_v18 = vmul.f32 %v6220_v53, %v3058_v29  ;;  %v3218_v47 = vpop.permute.xlu1 %3217 }
 0x529   : > { %v3082_v31 = vmul.f32 %v6221_v44, %v3059_v15  ;;  %v3157_v52 = vmul.f32 %v5515_v21, %v3112_v63  ;;  %v3158_v6 = vmul.f32 %v5518_v12, %v3113_v41  ;;  %v3166_v26 = vsel %vm3165_vm5, %v3162_v33, %v3164_v43 }
 0x52a   : > { %v3167_v10 = vsel %vm3165_vm5, %v3164_v43, %v3162_v33  ;;  %v3029_v40 = vadd.f32 %v3027_v45, %v2975_v62  ;;  %v3030_v46 = vadd.f32 %v3028_v34, %v2976_v7  ;;  %v3135_v9 = vmul.f32 %v5500_v25, %v3112_v63  ;;  %v3216_v11 = vpop.permute.xlu0 %3215  ;;  %v6227_v45 = vld [vmem:[#allocation36_spill] sm:$0xff] }
 0x52b   : > { %v3136_v49 = vmul.f32 %v6222_v22, %v3113_v41  ;;  %v3105_v59 = vadd.f32 %v3103_v17, %v3051_v5  ;;  %v3106_v20 = vadd.f32 %v3104_v14, %v3052_v54  ;;  %v3211_v56 = vmul.f32 %v6223_v16, %v3166_v26 }
 0x52c   : > { %v3212_v21 = vmul.f32 %v6224_v35, %v3167_v10  ;;  %v3083_v12 = vadd.f32 %v3081_v18, %v3029_v40  ;;  %v3084_v28 = vadd.f32 %v3082_v31, %v3030_v46  ;;  %v3189_v57 = vmul.f32 %v6225_v8, %v3166_v26  ;;  %v3272_v36 = vpop.permute.xlu1 %3271  ;;  %v6234_v8 = vld [vmem:[#allocation26_spill] sm:$0xff] }
 0x52d   : > { %v3190_v30 = vmul.f32 %v6226_v32, %v3167_v10  ;;  %v3159_v42 = vadd.f32 %v3157_v52, %v3105_v59  ;;  %v3160_v50 = vadd.f32 %v3158_v6, %v3106_v20  ;;  %v3220_v25 = vsel %vm3219_vm6, %v3216_v11, %v3218_v47  ;;  %v6229_v20 = vld [vmem:[#allocation17_spill] sm:$0xff]  ;;  %v6235_v32 = vld [vmem:[#allocation24_spill] sm:$0xff] }
 0x52e   : > { %v3221_v2 = vsel %vm3219_vm6, %v3218_v47, %v3216_v11  ;;  %v3137_v51 = vadd.f32 %v3135_v9, %v3083_v12  ;;  %v3138_v27 = vadd.f32 %v3136_v49, %v3084_v28  ;;  %v3265_v19 = vmul.f32 %v5645_v3, %v3220_v25  ;;  %v3270_v34 = vpop.permute.xlu0 %3269  ;;  %v6228_v49 = vld [vmem:[#allocation19_spill] sm:$0xff]  ;;  %v6233_v12 = vld [vmem:[#allocation18_spill] sm:$0xff] }
 0x52f   : > { %v3266_v29 = vmul.f32 %v5648_v1, %v3221_v2  ;;  %v3213_v15 = vadd.f32 %v3211_v56, %v3159_v42  ;;  %v3214_v39 = vadd.f32 %v3212_v21, %v3160_v50  ;;  %v3243_v4 = vmul.f32 %v5592_v38, %v3220_v25  ;;  %v6230_v56 = vld [vmem:[#allocation25_spill] sm:$0xff]  ;;  %v6231_v21 = vld [vmem:[#allocation23_spill] sm:$0xff]  ;;  %v6237_v50 = vld [vmem:[#allocation12_spill] sm:$0xff] }
 0x530   : > { %v3191_v0 = vadd.f32 %v3189_v57, %v3137_v51  ;;  %v3192_v55 = vadd.f32 %v3190_v30, %v3138_v27  ;;  %v3244_v61 = vmul.f32 %v6227_v45, %v3221_v2  ;;  %v3274_v62 = vsel %vm3273_vm7, %v3270_v34, %v3272_v36  ;;  %v6236_v11 = vld [vmem:[#allocation11_spill] sm:$0xff]  ;;  %v6238_v2 = vld [vmem:[#allocation13_spill] sm:$0xff]  ;;  %v6239_v27 = vld [vmem:[#allocation14_spill] sm:$0xff] }
 0x531   : > { %v3267_v63 = vadd.f32 %v3265_v19, %v3213_v15  ;;  %v3268_v41 = vadd.f32 %v3266_v29, %v3214_v39  ;;  %v3275_v3 = vsel %vm3273_vm7, %v3272_v36, %v3270_v34  ;;  %v3297_v1 = vmul.f32 %v5741_v37, %v3274_v62  ;;  %v6240_v29 = vld [vmem:[#allocation15_spill] sm:$0xff]  ;;  %v6241_v39 = vld [vmem:[#allocation16_spill] sm:$0xff] }
 0x532   : > { %v3298_v7 = vmul.f32 %v5744_v13, %v3275_v3  ;;  %v3319_v17 = vmul.f32 %v5807_v24, %v3274_v62  ;;  %v3320_v14 = vmul.f32 %v5810_v23, %v3275_v3  ;;  %v3245_v38 = vadd.f32 %v3243_v4, %v3191_v0  ;;  %v6242_v0 = vld [vmem:[#allocation21_spill] sm:$0xff]  ;;  %v6243_v4 = vld [vmem:[#allocation22_spill] sm:$0xff] }
 0x533   : > { %v3246_v43 = vadd.f32 %v3244_v61, %v3192_v55 }
 0x534   : > { %v3321_v5 = vadd.f32 %v3319_v17, %v3267_v63  ;;  %v3322_v54 = vadd.f32 %v3320_v14, %v3268_v41  ;;  %v3299_v53 = vadd.f32 %v3297_v1, %v3245_v38 }
 0x535   : > { %v3300_v18 = vadd.f32 %v3298_v7, %v3246_v43 }
 0x536   : > { %v3325_v44 = vrot.slane %v3321_v5, 2  ;;  %v3326_v31 = vrot.slane %v3322_v54, 2 }
 0x538   : > { %v3329_v33 = vadd.f32 %v3325_v44, %v3299_v53  ;;  %v3330_v52 = vadd.f32 %v3326_v31, %v3300_v18 }
 0x53a   : > { %v3520_v48 = vmul.f32 -1.442695, %v3329_v33  ;;  %v3521_v6 = vmul.f32 -1.442695, %v3330_v52 }
 0x53c   : > { %3714 = vpow2.f32 %v3520_v48 }
 0x53d   : > { %3716 = vpow2.f32 %v3521_v6 }
 0x546   : > { %v3715_v37 = vpop.eup %3714 }
 0x547   : > { %v3717_v13 = vpop.eup %3716  ;;  %v3337_v24 = vadd.f32 1.0, %v3715_v37 }
 0x548   : > { %v3338_v23 = vadd.f32 1.0, %v3717_v13 }
 0x549   : > { %3718 = vrcp.f32 %v3337_v24 }
 0x54a   : > { %3720 = vrcp.f32 %v3338_v23 }
 0x553   : > { %v3719_v26 = vpop.eup %3718 }
 0x554   : > { %v3721_v10 = vpop.eup %3720  ;;  %v3346_v40 = vrot.slane %v3719_v26, %v4343_v58  ;;  %v3370_v46 = vrot.slane %v3719_v26, %v4347_v60 }
 0x555   : > { %v3350_v9 = vrot.slane %v3721_v10, %v4343_v58  ;;  %v3374_v22 = vrot.slane %v3721_v10, %v4347_v60  ;;  %v6232_v58 = vld [vmem:[#allocation20_spill] sm:$0xff] }
 0x556   : > { %v3351_v59 = vmul.f32 %v3346_v40, %v6228_v49  ;;  %v3353_v16 = vmul.f32 %v3346_v40, %v6229_v20  ;;  %v3355_v35 = vmul.f32 %v3346_v40, %v6230_v56  ;;  %v3357_v47 = vmul.f32 %v3346_v40, %v6231_v21 }
 0x557   : > { %v3352_v60 = vmul.f32 %v3350_v9, %v6232_v58  ;;  %v3354_v28 = vmul.f32 %v3350_v9, %v6233_v12  ;;  %v3356_v57 = vmul.f32 %v3350_v9, %v6234_v8  ;;  %v3358_v30 = vmul.f32 %v3350_v9, %v6235_v32 }
 0x558   : > { %3359 = vst [vmem:[%s5870_s9] sm:$0xff] %v3351_v59  ;;  %3361 = vst [vmem:[%s5870_s9 + $0x10] sm:$0xff] %v3353_v16  ;;  %v3375_v42 = vmul.f32 %v3370_v46, %v6236_v11  ;;  %v3376_v25 = vmul.f32 %v3374_v22, %v6237_v50  ;;  %v3377_v51 = vmul.f32 %v3370_v46, %v6238_v2 }
 0x559   : > { %3363 = vst [vmem:[%s5870_s9 + $0x20] sm:$0xff] %v3355_v35  ;;  %3365 = vst [vmem:[%s5870_s9 + $0x30] sm:$0xff] %v3357_v47  ;;  %v3378_v19 = vmul.f32 %v3374_v22, %v6239_v27  ;;  %v3379_v15 = vmul.f32 %v3370_v46, %v6240_v29  ;;  %v3380_v36 = vmul.f32 %v3374_v22, %v6241_v39 }
 0x55a   : > { %3360 = vst [vmem:[%s5870_s9 + $0x8] sm:$0xff] %v3352_v60  ;;  %3362 = vst [vmem:[%s5870_s9 + $0x18] sm:$0xff] %v3354_v28  ;;  %v3381_v55 = vmul.f32 %v3370_v46, %v6242_v0  ;;  %v3382_v45 = vmul.f32 %v3374_v22, %v6243_v4 }
 0x55b   : > { %3364 = vst [vmem:[%s5870_s9 + $0x28] sm:$0xff] %v3356_v57  ;;  %3366 = vst [vmem:[%s5870_s9 + $0x38] sm:$0xff] %v3358_v30 }
 0x55c   : > { %3522 = vst [vmem:[%s5870_s9 + $0x40] sm:$0xff] %v3375_v42  ;;  %3523 = vst [vmem:[%s5870_s9 + $0x48] sm:$0xff] %v3376_v25 }
 0x55d   : > { %3524 = vst [vmem:[%s5870_s9 + $0x50] sm:$0xff] %v3377_v51  ;;  %3525 = vst [vmem:[%s5870_s9 + $0x58] sm:$0xff] %v3378_v19 }
 0x55e   : > { %3526 = vst [vmem:[%s5870_s9 + $0x60] sm:$0xff] %v3379_v15  ;;  %3527 = vst [vmem:[%s5870_s9 + $0x68] sm:$0xff] %v3380_v36 }
 0x55f   : > { %3528 = vst [vmem:[%s5870_s9 + $0x70] sm:$0xff] %v3381_v55  ;;  %3529 = vst [vmem:[%s5870_s9 + $0x78] sm:$0xff] %v3382_v45 }
 0x560   : > { %3793 = shalt.err (!%p3790_p7)
}
 0x561   : > { %s3794_s26 = scalar_lea.hbm %s5888_s29, 2048  ;;  %s3798_s14 = scalar_lea.hbm %s5955_s4, 4096 }
 0x562   : > { %p3795_p9 = scmp.ne.s32.totalorder %s5888_s29, %s3794_s26  ;;  %p3799_p5 = scmp.lt.u32.totalorder %s5888_s29, %s5955_s4 }
 0x563   : > { %p3800_p11 = scmp.lt.u32.totalorder %s3798_s14, %s3794_s26  ;;  %p3802_p4 = scmp.lt.u32.totalorder %s3794_s26, %s5888_s29 }
 0x564   : > { %p3796_p2 = pnand %p3795_p9, %p4029_p12 }
 0x565   : > { %p3801_p1 = por %p3800_p11, %p3799_p5 }
 0x566   : > { %p3797_p0 = pneg %p3796_p2 }
 0x567   : > { %p3803_p6 = por %p3802_p4, %p3801_p1 }
 0x569   : > { %p3804_p8 = pnand %p3803_p6, %p3797_p0 }
 0x56b   : > { %3807 = shalt.err (!%p3804_p8)
}
 0x56c   : > { %s3912_s9 = smov 256  }
 0x56d   : > { %3581 = dma.vmem_to_hbm [thread:$0]  (%p4029_p12), %s5898_s28, 2048, %s5888_s29, %s3393_s10, %s3912_s9, %s3912_s9, %s3881_s20  }
 0x56e PF: > { %s3422_s19 = sand.u32 1, %s3838_s15   ;;  %p6244_p10 = scmp.ne.s32.totalorder %s5980_s22, 0 }
 0x56f   : > { %p6245_p13 = scmp.ge.s32.totalorder %s3850_s18, 2  ;;  %s3423_s13 = scalar_lea.sflag [#allocation4], %s3422_s19 }
 0x571   : > { %p3592_p3 = pnand %p6245_p13, %p6244_p10 }
 0x573   : > { %3833 = dma.done.wait (!%p3592_p3), %s3423_s13, 2048  }
 0x574   : > { %3835 = vsyncadd (!%p3592_p3), %s3423_s13, 4294965248  ;;  %p18_p7 = scmp.ge.s32.totalorder %s3994_s27, 4   ;;  %s6246_s15 = smov %s3842_s16 }
 0x575   : > { %s6247_s16 = smov %s3846_s17  ;;  %s6248_s17 = smov %s4025_s24 }
 0x576   : > { %s6249_s18 = smov %s3994_s27  ;;  %20 = sbr.rel (!%p18_p7) target bundleno = 6 (0x6), region = 135 }
 0x57d   :  { %3428 = vsyncpa [#allocation3], 1 }
 0x57e   :  { %3430 = vsyncpa [#allocation3 + $0x1], 1 }
 0x57f   :  { %3431 = vsyncpa [#allocation6], 1 }
 0x580   :  { %3432 = vsyncpa [#allocation4], 1 }
 0x581   :  { %3434 = vsyncpa [#allocation4 + $0x1], 1 }

</bundles_post_ra>
